<compile_context>
chip_gen: v6e
topology: v6e:2x2x1
jax: 0.10.0
libtpu: 0.0.40
codegen_flags: <defaults>
</compile_context>

<pallas_src>
import functools
import math

import jax
import jax.numpy as jnp
import numpy as np
from jax import lax
from jax.experimental import pallas as pl
from jax.experimental.pallas import tpu as pltpu

# ----- config (module defaults, small batch/seq) -----
B, S = 2, 8          # batch, sequence length (token ids x: (B, S))
E = 64               # embedding_dim
H = 128              # hidden_size
O = 5                # output_size
OPAD = 128           # lane-padded output width (sliced back to O in the wrapper)
V = 1000             # vocab_size
NH = 8               # num_heads
HD = H // NH         # head dim = 16
LN_EPS = 1e-5
F32 = jnp.float32


# ---------------------------------------------------------------------------
# Fused Pallas kernel: LSTM -> (batch-axis) MHA @ last step -> residual+LN -> MLP head
# ---------------------------------------------------------------------------
def _fused_kernel(x_ref,        # (S*B, E)   embedded tokens, sequence-major rows (r = s*B + b)
                  w_ih_ref,     # (E, 4H)
                  w_hh_ref,     # (H, 4H)
                  b_lstm_ref,   # (1, 4H)    (= b_ih + b_hh)
                  w_qkv_ref,    # (H, 3H)
                  b_qkv_ref,    # (1, 3H)
                  w_o_ref,      # (H, H)
                  b_o_ref,      # (1, H)
                  ln_g_ref,     # (1, H)
                  ln_b_ref,     # (1, H)
                  w1_ref,       # (H, H)
                  b1_ref,       # (1, H)
                  w2_ref,       # (H, OPAD)  (lane-padded fc2 weight)
                  b2_ref,       # (1, OPAD)
                  out_ref):     # (B, OPAD)
    # ---------------- LSTM ----------------
    # Input projection hoisted out of the recurrence: one (S*B, E) x (E, 4H) matmul,
    # bias folded in once.
    gx = (jnp.dot(x_ref[...], w_ih_ref[...], preferred_element_type=F32)
          + b_lstm_ref[...])                                            # (S*B, 4H)

    # h / c live in vregs; loop is fully unrolled (S is a small static constant), so
    # per-step slices of gx are static and the LLO scheduler sees the whole chain.
    h = jnp.zeros((B, H), F32)
    c = jnp.zeros((B, H), F32)
    for t in range(S):
        gates = (jnp.dot(h, w_hh_ref[...], preferred_element_type=F32)
                 + gx[t * B:(t + 1) * B, :])                            # (B, 4H)
        i_g = jax.nn.sigmoid(gates[:, 0:H])
        f_g = jax.nn.sigmoid(gates[:, H:2 * H])
        g_g = jnp.tanh(gates[:, 2 * H:3 * H])
        o_g = jax.nn.sigmoid(gates[:, 3 * H:4 * H])
        c = f_g * c + i_g * g_g
        h = o_g * jnp.tanh(c)

    last = h                                                            # (B, H) = lstm_out[:, -1, :]

    # ---------------- Multi-head attention over the BATCH axis, last time step only -------
    # (exact: the returned output depends only on attention at t = S-1, and that attention
    #  only reads lstm_out at t = S-1, since the batch-axis MHA is independent per step)
    qkv = (jnp.dot(last, w_qkv_ref[...], preferred_element_type=F32)
           + b_qkv_ref[...])                                            # (B, 3H)
    scale = 1.0 / math.sqrt(HD)
    q = qkv[:, 0:H] * scale
    k = qkv[:, H:2 * H]
    v = qkv[:, 2 * H:3 * H]

    # Per-head 2x2 attention; head outputs are folded directly into the output projection
    # (concat_h(oh_h) @ W_o == sum_h oh_h @ W_o[h*HD:(h+1)*HD, :]), so no attention scratch
    # and no lane-masked stores.
    attn_proj = jnp.zeros((B, H), F32)
    for hh in range(NH):                                  # static unrolled head loop
        lo, hi = hh * HD, (hh + 1) * HD
        qh, kh, vh = q[:, lo:hi], k[:, lo:hi], v[:, lo:hi]              # (B, HD)
        sc = jnp.einsum('bd,cd->bc', qh, kh, preferred_element_type=F32)  # (B, B)
        m = jnp.max(sc, axis=-1, keepdims=True)
        e = jnp.exp(sc - m)
        p_attn = e / jnp.sum(e, axis=-1, keepdims=True)
        oh = jnp.dot(p_attn, vh, preferred_element_type=F32)            # (B, HD)
        attn_proj = attn_proj + jnp.dot(oh, w_o_ref[pl.ds(hh * HD, HD), :],
                                        preferred_element_type=F32)     # (B, H)

    # ---------------- residual + LayerNorm ----------------
    resid = attn_proj + b_o_ref[...] + last                             # (B, H)
    mu = jnp.mean(resid, axis=-1, keepdims=True)
    var = jnp.mean((resid - mu) ** 2, axis=-1, keepdims=True)
    normed = (resid - mu) * lax.rsqrt(var + LN_EPS) * ln_g_ref[...] + ln_b_ref[...]

    # ---------------- head: dropout(identity) -> fc1 -> ReLU -> fc2 (lane-padded) ---------
    h1 = jnp.maximum(jnp.dot(normed, w1_ref[...], preferred_element_type=F32)
                     + b1_ref[...], 0.0)
    out_ref[...] = jnp.dot(h1, w2_ref[...], preferred_element_type=F32) + b2_ref[...]


def _full_spec(shape):
    zeros = (0,) * len(shape)
    return pl.BlockSpec(shape, lambda i, _z=zeros: _z)


@jax.jit
def enhanced_transformer_forward(tokens, p):
    # Embedding lookup (gather) is JAX glue; everything else runs in the Pallas kernel.
    emb = p['embedding'][tokens]                                    # (B, S, E)
    x = jnp.transpose(emb, (1, 0, 2)).reshape(S * B, E).astype(F32)  # sequence-major flat rows

    args = (x, p['w_ih_t'], p['w_hh_t'], p['b_lstm'],
            p['w_qkv_t'], p['b_qkv'], p['w_o_t'], p['b_o'],
            p['ln_g'], p['ln_b'], p['w1_t'], p['b1'],
            p['w2_pad'], p['b2_pad'])

    out_pad = pl.pallas_call(
        _fused_kernel,
        out_shape=jax.ShapeDtypeStruct((B, OPAD), F32),
        grid=(1,),
        in_specs=[_full_spec(a.shape) for a in args],
        out_specs=_full_spec((B, OPAD)),
        compiler_params=pltpu.CompilerParams(dimension_semantics=("arbitrary",)),
    )(*args)
    return out_pad[:, :O]


# ---------------------------------------------------------------------------
# Deterministic parameter init (synthetic; shapes from the module's __init__)
# ---------------------------------------------------------------------------
def init_params(key):
    ks = jax.random.split(key, 13)
    u = lambda k, shape, s=0.1: jax.random.uniform(k, shape, F32, -s, s)
    emb = jax.random.normal(ks[0], (V, E), F32) * 0.5
    w_ih = u(ks[1], (4 * H, E))
    w_hh = u(ks[2], (4 * H, H))
    b_ih = u(ks[3], (4 * H,))
    b_hh = u(ks[4], (4 * H,))
    w_qkv = u(ks[5], (3 * H, H))      # in_proj_weight (rows: Wq;Wk;Wv)
    b_qkv = u(ks[6], (3 * H,))
    w_o = u(ks[7], (H, H))
    b_o = u(ks[8], (H,))
    w1 = u(ks[9], (H, H))
    b1 = u(ks[10], (H,))
    w2 = u(ks[11], (O, H))
    b2 = u(ks[12], (O,))
    w2_pad = jnp.zeros((H, OPAD), F32).at[:, :O].set(w2.T)
    b2_pad = jnp.zeros((1, OPAD), F32).at[0, :O].set(b2)
    return {
        'embedding': emb,
        'w_ih_t': w_ih.T, 'w_hh_t': w_hh.T,
        'b_lstm': (b_ih + b_hh).reshape(1, 4 * H),
        'w_qkv_t': w_qkv.T, 'b_qkv': b_qkv.reshape(1, 3 * H),
        'w_o_t': w_o.T, 'b_o': b_o.reshape(1, H),
        'ln_g': jnp.ones((1, H), F32), 'ln_b': jnp.zeros((1, H), F32),
        'w1_t': w1.T, 'b1': b1.reshape(1, H),
        'w2_t': w2.T, 'b2': b2.reshape(1, O),
        'w2_pad': w2_pad, 'b2_pad': b2_pad,
    }


# ---------------------------------------------------------------------------
# Pure-JAX reference (full module math, all timesteps) for a correctness check
# ---------------------------------------------------------------------------
def forward_ref(tokens, p):
    hp = lax.Precision.HIGHEST
    dot = functools.partial(jnp.dot, precision=hp)
    x = jnp.transpose(p['embedding'][tokens], (1, 0, 2)).astype(F32)    # (S, B, E)

    def step(carry, x_t):
        h, c = carry
        g = dot(x_t, p['w_ih_t']) + dot(h, p['w_hh_t']) + p['b_lstm'][0]
        i = jax.nn.sigmoid(g[:, :H]); f = jax.nn.sigmoid(g[:, H:2 * H])
        gg = jnp.tanh(g[:, 2 * H:3 * H]); o = jax.nn.sigmoid(g[:, 3 * H:])
        c = f * c + i * gg
        h = o * jnp.tanh(c)
        return (h, c), h

    (_, _), lstm_out = lax.scan(step, (jnp.zeros((B, H), F32), jnp.zeros((B, H), F32)), x)

    qkv = (dot(lstm_out.reshape(S * B, H), p['w_qkv_t']) + p['b_qkv'][0]).reshape(S, B, 3 * H)
    q = qkv[..., :H] / math.sqrt(HD)
    k = qkv[..., H:2 * H]
    v = qkv[..., 2 * H:]
    qh = q.reshape(S, B, NH, HD); kh = k.reshape(S, B, NH, HD); vh = v.reshape(S, B, NH, HD)
    sc = jnp.einsum('sind,sjnd->snij', qh, kh, precision=hp)            # attn over batch axis
    pa = jax.nn.softmax(sc, axis=-1)
    oh = jnp.einsum('snij,sjnd->sind', pa, vh, precision=hp)
    attn = oh.reshape(S, B, H)
    proj = dot(attn.reshape(S * B, H), p['w_o_t']).reshape(S, B, H) + p['b_o'][0]

    resid = proj + lstm_out
    mu = resid.mean(-1, keepdims=True)
    var = ((resid - mu) ** 2).mean(-1, keepdims=True)
    normed = (resid - mu) / jnp.sqrt(var + LN_EPS) * p['ln_g'][0] + p['ln_b'][0]

    last = normed[S - 1]
    h1 = jax.nn.relu(dot(last, p['w1_t']) + p['b1'][0])
    return dot(h1, p['w2_t']) + p['b2'][0]


if __name__ == "__main__":
    key = jax.random.PRNGKey(0)
    pkey, tkey = jax.random.split(key)
    params = init_params(pkey)
    tokens = jax.random.randint(tkey, (B, S), 0, V, dtype=jnp.int32)    # x: (B, S) token ids

    out = enhanced_transformer_forward(tokens, params)
    out = jax.block_until_ready(out)

    ref = forward_ref(tokens, params)
    np.testing.assert_allclose(np.asarray(out), np.asarray(ref), rtol=2e-3, atol=2e-3)
    assert out.shape == (B, O)
    print("KERNEL_OK")
</pallas_src>

<mosaic_0001>
module attributes {stable_mosaic.version = 11 : i64} {
  func.func @_fused_kernel(%arg0: i32, %arg1: memref<16x64xf32, #tpu.memory_space<vmem>>, %arg2: memref<64x512xf32, #tpu.memory_space<vmem>>, %arg3: memref<128x512xf32, #tpu.memory_space<vmem>>, %arg4: memref<1x512xf32, #tpu.memory_space<vmem>>, %arg5: memref<128x384xf32, #tpu.memory_space<vmem>>, %arg6: memref<1x384xf32, #tpu.memory_space<vmem>>, %arg7: memref<128x128xf32, #tpu.memory_space<vmem>>, %arg8: memref<1x128xf32, #tpu.memory_space<vmem>>, %arg9: memref<1x128xf32, #tpu.memory_space<vmem>>, %arg10: memref<1x128xf32, #tpu.memory_space<vmem>>, %arg11: memref<128x128xf32, #tpu.memory_space<vmem>>, %arg12: memref<1x128xf32, #tpu.memory_space<vmem>>, %arg13: memref<128x128xf32, #tpu.memory_space<vmem>>, %arg14: memref<1x128xf32, #tpu.memory_space<vmem>>, %arg15: memref<2x128xf32, #tpu.memory_space<vmem>>) attributes {dimension_semantics = [#tpu.dimension_semantics<arbitrary>], iteration_bounds = array<i64: 1>, scalar_prefetch = 0 : i64, scratch_operands = 0 : i64, tpu.core_type = #tpu.core_type<tc>, window_params = [{pipeline_mode = #tpu.pipeline_mode<synchronous>, transform_indices = @transform_0, window_bounds = array<i64: 16, 64>}, {pipeline_mode = #tpu.pipeline_mode<synchronous>, transform_indices = @transform_1, window_bounds = array<i64: 64, 512>}, {pipeline_mode = #tpu.pipeline_mode<synchronous>, transform_indices = @transform_2, window_bounds = array<i64: 128, 512>}, {pipeline_mode = #tpu.pipeline_mode<synchronous>, transform_indices = @transform_3, window_bounds = array<i64: 1, 512>}, {pipeline_mode = #tpu.pipeline_mode<synchronous>, transform_indices = @transform_4, window_bounds = array<i64: 128, 384>}, {pipeline_mode = #tpu.pipeline_mode<synchronous>, transform_indices = @transform_5, window_bounds = array<i64: 1, 384>}, {pipeline_mode = #tpu.pipeline_mode<synchronous>, transform_indices = @transform_6, window_bounds = array<i64: 128, 128>}, {pipeline_mode = #tpu.pipeline_mode<synchronous>, transform_indices = @transform_7, window_bounds = array<i64: 1, 128>}, {pipeline_mode = #tpu.pipeline_mode<synchronous>, transform_indices = @transform_8, window_bounds = array<i64: 1, 128>}, {pipeline_mode = #tpu.pipeline_mode<synchronous>, transform_indices = @transform_9, window_bounds = array<i64: 1, 128>}, {pipeline_mode = #tpu.pipeline_mode<synchronous>, transform_indices = @transform_10, window_bounds = array<i64: 128, 128>}, {pipeline_mode = #tpu.pipeline_mode<synchronous>, transform_indices = @transform_11, window_bounds = array<i64: 1, 128>}, {pipeline_mode = #tpu.pipeline_mode<synchronous>, transform_indices = @transform_12, window_bounds = array<i64: 128, 128>}, {pipeline_mode = #tpu.pipeline_mode<synchronous>, transform_indices = @transform_13, window_bounds = array<i64: 1, 128>}, {pipeline_mode = #tpu.pipeline_mode<synchronous>, transform_indices = @transform_14, window_bounds = array<i64: 2, 128>}]} {
    %c0 = arith.constant 0 : index
    %c0_0 = arith.constant 0 : index
    %0 = vector.load %arg1[%c0, %c0_0] : memref<16x64xf32, #tpu.memory_space<vmem>>, vector<16x64xf32>
    %c0_1 = arith.constant 0 : index
    %c0_2 = arith.constant 0 : index
    %1 = vector.load %arg2[%c0_1, %c0_2] : memref<64x512xf32, #tpu.memory_space<vmem>>, vector<64x512xf32>
    %cst = arith.constant dense<0.000000e+00> : vector<16x512xf32>
    %2 = tpu.matmul %0, %1, %cst {dimension_numbers = #tpu.dot_dimension_numbers<[1], [0], [0], [1], [0, 0, 1, 1], [], []>} : vector<16x64xf32>, vector<64x512xf32>, vector<16x512xf32> -> vector<16x512xf32>
    %c0_3 = arith.constant 0 : index
    %c0_4 = arith.constant 0 : index
    %3 = vector.load %arg4[%c0_3, %c0_4] : memref<1x512xf32, #tpu.memory_space<vmem>>, vector<1x512xf32>
    %4 = vector.broadcast %3 : vector<1x512xf32> to vector<16x512xf32>
    %5 = arith.addf %2, %4 : vector<16x512xf32>
    %cst_5 = arith.constant 0.000000e+00 : f32
    %6 = vector.broadcast %cst_5 : f32 to vector<2x128xf32>
    %cst_6 = arith.constant 0.000000e+00 : f32
    %7 = vector.broadcast %cst_6 : f32 to vector<2x128xf32>
    %c0_7 = arith.constant 0 : index
    %c0_8 = arith.constant 0 : index
    %8 = vector.load %arg3[%c0_7, %c0_8] : memref<128x512xf32, #tpu.memory_space<vmem>>, vector<128x512xf32>
    %cst_9 = arith.constant dense<0.000000e+00> : vector<2x512xf32>
    %9 = tpu.matmul %6, %8, %cst_9 {dimension_numbers = #tpu.dot_dimension_numbers<[1], [0], [0], [1], [0, 0, 1, 1], [], []>} : vector<2x128xf32>, vector<128x512xf32>, vector<2x512xf32> -> vector<2x512xf32>
    %10 = vector.extract_strided_slice %5 {offsets = [0, 0], sizes = [2, 512], strides = [1, 1]} : vector<16x512xf32> to vector<2x512xf32>
    %11 = arith.addf %9, %10 : vector<2x512xf32>
    %12 = vector.extract_strided_slice %11 {offsets = [0, 0], sizes = [2, 128], strides = [1, 1]} : vector<2x512xf32> to vector<2x128xf32>
    %13 = arith.negf %12 : vector<2x128xf32>
    %14 = math.exp %13 : vector<2x128xf32>
    %cst_10 = arith.constant 1.000000e+00 : f32
    %15 = vector.broadcast %cst_10 : f32 to vector<2x128xf32>
    %16 = arith.addf %15, %14 : vector<2x128xf32>
    %17 = arith.divf %15, %16 : vector<2x128xf32>
    %18 = vector.extract_strided_slice %11 {offsets = [0, 128], sizes = [2, 128], strides = [1, 1]} : vector<2x512xf32> to vector<2x128xf32>
    %19 = arith.negf %18 : vector<2x128xf32>
    %20 = math.exp %19 : vector<2x128xf32>
    %cst_11 = arith.constant 1.000000e+00 : f32
    %21 = vector.broadcast %cst_11 : f32 to vector<2x128xf32>
    %22 = arith.addf %21, %20 : vector<2x128xf32>
    %23 = arith.divf %21, %22 : vector<2x128xf32>
    %24 = vector.extract_strided_slice %11 {offsets = [0, 256], sizes = [2, 128], strides = [1, 1]} : vector<2x512xf32> to vector<2x128xf32>
    %25 = math.tanh %24 : vector<2x128xf32>
    %26 = vector.extract_strided_slice %11 {offsets = [0, 384], sizes = [2, 128], strides = [1, 1]} : vector<2x512xf32> to vector<2x128xf32>
    %27 = arith.negf %26 : vector<2x128xf32>
    %28 = math.exp %27 : vector<2x128xf32>
    %cst_12 = arith.constant 1.000000e+00 : f32
    %29 = vector.broadcast %cst_12 : f32 to vector<2x128xf32>
    %30 = arith.addf %29, %28 : vector<2x128xf32>
    %31 = arith.divf %29, %30 : vector<2x128xf32>
    %32 = arith.mulf %23, %7 : vector<2x128xf32>
    %33 = arith.mulf %17, %25 : vector<2x128xf32>
    %34 = arith.addf %32, %33 : vector<2x128xf32>
    %35 = math.tanh %34 : vector<2x128xf32>
    %36 = arith.mulf %31, %35 : vector<2x128xf32>
    %c0_13 = arith.constant 0 : index
    %c0_14 = arith.constant 0 : index
    %37 = vector.load %arg3[%c0_13, %c0_14] : memref<128x512xf32, #tpu.memory_space<vmem>>, vector<128x512xf32>
    %cst_15 = arith.constant dense<0.000000e+00> : vector<2x512xf32>
    %38 = tpu.matmul %36, %37, %cst_15 {dimension_numbers = #tpu.dot_dimension_numbers<[1], [0], [0], [1], [0, 0, 1, 1], [], []>} : vector<2x128xf32>, vector<128x512xf32>, vector<2x512xf32> -> vector<2x512xf32>
    %39 = vector.extract_strided_slice %5 {offsets = [2, 0], sizes = [2, 512], strides = [1, 1]} : vector<16x512xf32> to vector<2x512xf32>
    %40 = arith.addf %38, %39 : vector<2x512xf32>
    %41 = vector.extract_strided_slice %40 {offsets = [0, 0], sizes = [2, 128], strides = [1, 1]} : vector<2x512xf32> to vector<2x128xf32>
    %42 = arith.negf %41 : vector<2x128xf32>
    %43 = math.exp %42 : vector<2x128xf32>
    %cst_16 = arith.constant 1.000000e+00 : f32
    %44 = vector.broadcast %cst_16 : f32 to vector<2x128xf32>
    %45 = arith.addf %44, %43 : vector<2x128xf32>
    %46 = arith.divf %44, %45 : vector<2x128xf32>
    %47 = vector.extract_strided_slice %40 {offsets = [0, 128], sizes = [2, 128], strides = [1, 1]} : vector<2x512xf32> to vector<2x128xf32>
    %48 = arith.negf %47 : vector<2x128xf32>
    %49 = math.exp %48 : vector<2x128xf32>
    %cst_17 = arith.constant 1.000000e+00 : f32
    %50 = vector.broadcast %cst_17 : f32 to vector<2x128xf32>
    %51 = arith.addf %50, %49 : vector<2x128xf32>
    %52 = arith.divf %50, %51 : vector<2x128xf32>
    %53 = vector.extract_strided_slice %40 {offsets = [0, 256], sizes = [2, 128], strides = [1, 1]} : vector<2x512xf32> to vector<2x128xf32>
    %54 = math.tanh %53 : vector<2x128xf32>
    %55 = vector.extract_strided_slice %40 {offsets = [0, 384], sizes = [2, 128], strides = [1, 1]} : vector<2x512xf32> to vector<2x128xf32>
    %56 = arith.negf %55 : vector<2x128xf32>
    %57 = math.exp %56 : vector<2x128xf32>
    %cst_18 = arith.constant 1.000000e+00 : f32
    %58 = vector.broadcast %cst_18 : f32 to vector<2x128xf32>
    %59 = arith.addf %58, %57 : vector<2x128xf32>
    %60 = arith.divf %58, %59 : vector<2x128xf32>
    %61 = arith.mulf %52, %34 : vector<2x128xf32>
    %62 = arith.mulf %46, %54 : vector<2x128xf32>
    %63 = arith.addf %61, %62 : vector<2x128xf32>
    %64 = math.tanh %63 : vector<2x128xf32>
    %65 = arith.mulf %60, %64 : vector<2x128xf32>
    %c0_19 = arith.constant 0 : index
    %c0_20 = arith.constant 0 : index
    %66 = vector.load %arg3[%c0_19, %c0_20] : memref<128x512xf32, #tpu.memory_space<vmem>>, vector<128x512xf32>
    %cst_21 = arith.constant dense<0.000000e+00> : vector<2x512xf32>
    %67 = tpu.matmul %65, %66, %cst_21 {dimension_numbers = #tpu.dot_dimension_numbers<[1], [0], [0], [1], [0, 0, 1, 1], [], []>} : vector<2x128xf32>, vector<128x512xf32>, vector<2x512xf32> -> vector<2x512xf32>
    %68 = vector.extract_strided_slice %5 {offsets = [4, 0], sizes = [2, 512], strides = [1, 1]} : vector<16x512xf32> to vector<2x512xf32>
    %69 = arith.addf %67, %68 : vector<2x512xf32>
    %70 = vector.extract_strided_slice %69 {offsets = [0, 0], sizes = [2, 128], strides = [1, 1]} : vector<2x512xf32> to vector<2x128xf32>
    %71 = arith.negf %70 : vector<2x128xf32>
    %72 = math.exp %71 : vector<2x128xf32>
    %cst_22 = arith.constant 1.000000e+00 : f32
    %73 = vector.broadcast %cst_22 : f32 to vector<2x128xf32>
    %74 = arith.addf %73, %72 : vector<2x128xf32>
    %75 = arith.divf %73, %74 : vector<2x128xf32>
    %76 = vector.extract_strided_slice %69 {offsets = [0, 128], sizes = [2, 128], strides = [1, 1]} : vector<2x512xf32> to vector<2x128xf32>
    %77 = arith.negf %76 : vector<2x128xf32>
    %78 = math.exp %77 : vector<2x128xf32>
    %cst_23 = arith.constant 1.000000e+00 : f32
    %79 = vector.broadcast %cst_23 : f32 to vector<2x128xf32>
    %80 = arith.addf %79, %78 : vector<2x128xf32>
    %81 = arith.divf %79, %80 : vector<2x128xf32>
    %82 = vector.extract_strided_slice %69 {offsets = [0, 256], sizes = [2, 128], strides = [1, 1]} : vector<2x512xf32> to vector<2x128xf32>
    %83 = math.tanh %82 : vector<2x128xf32>
    %84 = vector.extract_strided_slice %69 {offsets = [0, 384], sizes = [2, 128], strides = [1, 1]} : vector<2x512xf32> to vector<2x128xf32>
    %85 = arith.negf %84 : vector<2x128xf32>
    %86 = math.exp %85 : vector<2x128xf32>
    %cst_24 = arith.constant 1.000000e+00 : f32
    %87 = vector.broadcast %cst_24 : f32 to vector<2x128xf32>
    %88 = arith.addf %87, %86 : vector<2x128xf32>
    %89 = arith.divf %87, %88 : vector<2x128xf32>
    %90 = arith.mulf %81, %63 : vector<2x128xf32>
    %91 = arith.mulf %75, %83 : vector<2x128xf32>
    %92 = arith.addf %90, %91 : vector<2x128xf32>
    %93 = math.tanh %92 : vector<2x128xf32>
    %94 = arith.mulf %89, %93 : vector<2x128xf32>
    %c0_25 = arith.constant 0 : index
    %c0_26 = arith.constant 0 : index
    %95 = vector.load %arg3[%c0_25, %c0_26] : memref<128x512xf32, #tpu.memory_space<vmem>>, vector<128x512xf32>
    %cst_27 = arith.constant dense<0.000000e+00> : vector<2x512xf32>
    %96 = tpu.matmul %94, %95, %cst_27 {dimension_numbers = #tpu.dot_dimension_numbers<[1], [0], [0], [1], [0, 0, 1, 1], [], []>} : vector<2x128xf32>, vector<128x512xf32>, vector<2x512xf32> -> vector<2x512xf32>
    %97 = vector.extract_strided_slice %5 {offsets = [6, 0], sizes = [2, 512], strides = [1, 1]} : vector<16x512xf32> to vector<2x512xf32>
    %98 = arith.addf %96, %97 : vector<2x512xf32>
    %99 = vector.extract_strided_slice %98 {offsets = [0, 0], sizes = [2, 128], strides = [1, 1]} : vector<2x512xf32> to vector<2x128xf32>
    %100 = arith.negf %99 : vector<2x128xf32>
    %101 = math.exp %100 : vector<2x128xf32>
    %cst_28 = arith.constant 1.000000e+00 : f32
    %102 = vector.broadcast %cst_28 : f32 to vector<2x128xf32>
    %103 = arith.addf %102, %101 : vector<2x128xf32>
    %104 = arith.divf %102, %103 : vector<2x128xf32>
    %105 = vector.extract_strided_slice %98 {offsets = [0, 128], sizes = [2, 128], strides = [1, 1]} : vector<2x512xf32> to vector<2x128xf32>
    %106 = arith.negf %105 : vector<2x128xf32>
    %107 = math.exp %106 : vector<2x128xf32>
    %cst_29 = arith.constant 1.000000e+00 : f32
    %108 = vector.broadcast %cst_29 : f32 to vector<2x128xf32>
    %109 = arith.addf %108, %107 : vector<2x128xf32>
    %110 = arith.divf %108, %109 : vector<2x128xf32>
    %111 = vector.extract_strided_slice %98 {offsets = [0, 256], sizes = [2, 128], strides = [1, 1]} : vector<2x512xf32> to vector<2x128xf32>
    %112 = math.tanh %111 : vector<2x128xf32>
    %113 = vector.extract_strided_slice %98 {offsets = [0, 384], sizes = [2, 128], strides = [1, 1]} : vector<2x512xf32> to vector<2x128xf32>
    %114 = arith.negf %113 : vector<2x128xf32>
    %115 = math.exp %114 : vector<2x128xf32>
    %cst_30 = arith.constant 1.000000e+00 : f32
    %116 = vector.broadcast %cst_30 : f32 to vector<2x128xf32>
    %117 = arith.addf %116, %115 : vector<2x128xf32>
    %118 = arith.divf %116, %117 : vector<2x128xf32>
    %119 = arith.mulf %110, %92 : vector<2x128xf32>
    %120 = arith.mulf %104, %112 : vector<2x128xf32>
    %121 = arith.addf %119, %120 : vector<2x128xf32>
    %122 = math.tanh %121 : vector<2x128xf32>
    %123 = arith.mulf %118, %122 : vector<2x128xf32>
    %c0_31 = arith.constant 0 : index
    %c0_32 = arith.constant 0 : index
    %124 = vector.load %arg3[%c0_31, %c0_32] : memref<128x512xf32, #tpu.memory_space<vmem>>, vector<128x512xf32>
    %cst_33 = arith.constant dense<0.000000e+00> : vector<2x512xf32>
    %125 = tpu.matmul %123, %124, %cst_33 {dimension_numbers = #tpu.dot_dimension_numbers<[1], [0], [0], [1], [0, 0, 1, 1], [], []>} : vector<2x128xf32>, vector<128x512xf32>, vector<2x512xf32> -> vector<2x512xf32>
    %126 = vector.extract_strided_slice %5 {offsets = [8, 0], sizes = [2, 512], strides = [1, 1]} : vector<16x512xf32> to vector<2x512xf32>
    %127 = arith.addf %125, %126 : vector<2x512xf32>
    %128 = vector.extract_strided_slice %127 {offsets = [0, 0], sizes = [2, 128], strides = [1, 1]} : vector<2x512xf32> to vector<2x128xf32>
    %129 = arith.negf %128 : vector<2x128xf32>
    %130 = math.exp %129 : vector<2x128xf32>
    %cst_34 = arith.constant 1.000000e+00 : f32
    %131 = vector.broadcast %cst_34 : f32 to vector<2x128xf32>
    %132 = arith.addf %131, %130 : vector<2x128xf32>
    %133 = arith.divf %131, %132 : vector<2x128xf32>
    %134 = vector.extract_strided_slice %127 {offsets = [0, 128], sizes = [2, 128], strides = [1, 1]} : vector<2x512xf32> to vector<2x128xf32>
    %135 = arith.negf %134 : vector<2x128xf32>
    %136 = math.exp %135 : vector<2x128xf32>
    %cst_35 = arith.constant 1.000000e+00 : f32
    %137 = vector.broadcast %cst_35 : f32 to vector<2x128xf32>
    %138 = arith.addf %137, %136 : vector<2x128xf32>
    %139 = arith.divf %137, %138 : vector<2x128xf32>
    %140 = vector.extract_strided_slice %127 {offsets = [0, 256], sizes = [2, 128], strides = [1, 1]} : vector<2x512xf32> to vector<2x128xf32>
    %141 = math.tanh %140 : vector<2x128xf32>
    %142 = vector.extract_strided_slice %127 {offsets = [0, 384], sizes = [2, 128], strides = [1, 1]} : vector<2x512xf32> to vector<2x128xf32>
    %143 = arith.negf %142 : vector<2x128xf32>
    %144 = math.exp %143 : vector<2x128xf32>
    %cst_36 = arith.constant 1.000000e+00 : f32
    %145 = vector.broadcast %cst_36 : f32 to vector<2x128xf32>
    %146 = arith.addf %145, %144 : vector<2x128xf32>
    %147 = arith.divf %145, %146 : vector<2x128xf32>
    %148 = arith.mulf %139, %121 : vector<2x128xf32>
    %149 = arith.mulf %133, %141 : vector<2x128xf32>
    %150 = arith.addf %148, %149 : vector<2x128xf32>
    %151 = math.tanh %150 : vector<2x128xf32>
    %152 = arith.mulf %147, %151 : vector<2x128xf32>
    %c0_37 = arith.constant 0 : index
    %c0_38 = arith.constant 0 : index
    %153 = vector.load %arg3[%c0_37, %c0_38] : memref<128x512xf32, #tpu.memory_space<vmem>>, vector<128x512xf32>
    %cst_39 = arith.constant dense<0.000000e+00> : vector<2x512xf32>
    %154 = tpu.matmul %152, %153, %cst_39 {dimension_numbers = #tpu.dot_dimension_numbers<[1], [0], [0], [1], [0, 0, 1, 1], [], []>} : vector<2x128xf32>, vector<128x512xf32>, vector<2x512xf32> -> vector<2x512xf32>
    %155 = vector.extract_strided_slice %5 {offsets = [10, 0], sizes = [2, 512], strides = [1, 1]} : vector<16x512xf32> to vector<2x512xf32>
    %156 = arith.addf %154, %155 : vector<2x512xf32>
    %157 = vector.extract_strided_slice %156 {offsets = [0, 0], sizes = [2, 128], strides = [1, 1]} : vector<2x512xf32> to vector<2x128xf32>
    %158 = arith.negf %157 : vector<2x128xf32>
    %159 = math.exp %158 : vector<2x128xf32>
    %cst_40 = arith.constant 1.000000e+00 : f32
    %160 = vector.broadcast %cst_40 : f32 to vector<2x128xf32>
    %161 = arith.addf %160, %159 : vector<2x128xf32>
    %162 = arith.divf %160, %161 : vector<2x128xf32>
    %163 = vector.extract_strided_slice %156 {offsets = [0, 128], sizes = [2, 128], strides = [1, 1]} : vector<2x512xf32> to vector<2x128xf32>
    %164 = arith.negf %163 : vector<2x128xf32>
    %165 = math.exp %164 : vector<2x128xf32>
    %cst_41 = arith.constant 1.000000e+00 : f32
    %166 = vector.broadcast %cst_41 : f32 to vector<2x128xf32>
    %167 = arith.addf %166, %165 : vector<2x128xf32>
    %168 = arith.divf %166, %167 : vector<2x128xf32>
    %169 = vector.extract_strided_slice %156 {offsets = [0, 256], sizes = [2, 128], strides = [1, 1]} : vector<2x512xf32> to vector<2x128xf32>
    %170 = math.tanh %169 : vector<2x128xf32>
    %171 = vector.extract_strided_slice %156 {offsets = [0, 384], sizes = [2, 128], strides = [1, 1]} : vector<2x512xf32> to vector<2x128xf32>
    %172 = arith.negf %171 : vector<2x128xf32>
    %173 = math.exp %172 : vector<2x128xf32>
    %cst_42 = arith.constant 1.000000e+00 : f32
    %174 = vector.broadcast %cst_42 : f32 to vector<2x128xf32>
    %175 = arith.addf %174, %173 : vector<2x128xf32>
    %176 = arith.divf %174, %175 : vector<2x128xf32>
    %177 = arith.mulf %168, %150 : vector<2x128xf32>
    %178 = arith.mulf %162, %170 : vector<2x128xf32>
    %179 = arith.addf %177, %178 : vector<2x128xf32>
    %180 = math.tanh %179 : vector<2x128xf32>
    %181 = arith.mulf %176, %180 : vector<2x128xf32>
    %c0_43 = arith.constant 0 : index
    %c0_44 = arith.constant 0 : index
    %182 = vector.load %arg3[%c0_43, %c0_44] : memref<128x512xf32, #tpu.memory_space<vmem>>, vector<128x512xf32>
    %cst_45 = arith.constant dense<0.000000e+00> : vector<2x512xf32>
    %183 = tpu.matmul %181, %182, %cst_45 {dimension_numbers = #tpu.dot_dimension_numbers<[1], [0], [0], [1], [0, 0, 1, 1], [], []>} : vector<2x128xf32>, vector<128x512xf32>, vector<2x512xf32> -> vector<2x512xf32>
    %184 = vector.extract_strided_slice %5 {offsets = [12, 0], sizes = [2, 512], strides = [1, 1]} : vector<16x512xf32> to vector<2x512xf32>
    %185 = arith.addf %183, %184 : vector<2x512xf32>
    %186 = vector.extract_strided_slice %185 {offsets = [0, 0], sizes = [2, 128], strides = [1, 1]} : vector<2x512xf32> to vector<2x128xf32>
    %187 = arith.negf %186 : vector<2x128xf32>
    %188 = math.exp %187 : vector<2x128xf32>
    %cst_46 = arith.constant 1.000000e+00 : f32
    %189 = vector.broadcast %cst_46 : f32 to vector<2x128xf32>
    %190 = arith.addf %189, %188 : vector<2x128xf32>
    %191 = arith.divf %189, %190 : vector<2x128xf32>
    %192 = vector.extract_strided_slice %185 {offsets = [0, 128], sizes = [2, 128], strides = [1, 1]} : vector<2x512xf32> to vector<2x128xf32>
    %193 = arith.negf %192 : vector<2x128xf32>
    %194 = math.exp %193 : vector<2x128xf32>
    %cst_47 = arith.constant 1.000000e+00 : f32
    %195 = vector.broadcast %cst_47 : f32 to vector<2x128xf32>
    %196 = arith.addf %195, %194 : vector<2x128xf32>
    %197 = arith.divf %195, %196 : vector<2x128xf32>
    %198 = vector.extract_strided_slice %185 {offsets = [0, 256], sizes = [2, 128], strides = [1, 1]} : vector<2x512xf32> to vector<2x128xf32>
    %199 = math.tanh %198 : vector<2x128xf32>
    %200 = vector.extract_strided_slice %185 {offsets = [0, 384], sizes = [2, 128], strides = [1, 1]} : vector<2x512xf32> to vector<2x128xf32>
    %201 = arith.negf %200 : vector<2x128xf32>
    %202 = math.exp %201 : vector<2x128xf32>
    %cst_48 = arith.constant 1.000000e+00 : f32
    %203 = vector.broadcast %cst_48 : f32 to vector<2x128xf32>
    %204 = arith.addf %203, %202 : vector<2x128xf32>
    %205 = arith.divf %203, %204 : vector<2x128xf32>
    %206 = arith.mulf %197, %179 : vector<2x128xf32>
    %207 = arith.mulf %191, %199 : vector<2x128xf32>
    %208 = arith.addf %206, %207 : vector<2x128xf32>
    %209 = math.tanh %208 : vector<2x128xf32>
    %210 = arith.mulf %205, %209 : vector<2x128xf32>
    %c0_49 = arith.constant 0 : index
    %c0_50 = arith.constant 0 : index
    %211 = vector.load %arg3[%c0_49, %c0_50] : memref<128x512xf32, #tpu.memory_space<vmem>>, vector<128x512xf32>
    %cst_51 = arith.constant dense<0.000000e+00> : vector<2x512xf32>
    %212 = tpu.matmul %210, %211, %cst_51 {dimension_numbers = #tpu.dot_dimension_numbers<[1], [0], [0], [1], [0, 0, 1, 1], [], []>} : vector<2x128xf32>, vector<128x512xf32>, vector<2x512xf32> -> vector<2x512xf32>
    %213 = vector.extract_strided_slice %5 {offsets = [14, 0], sizes = [2, 512], strides = [1, 1]} : vector<16x512xf32> to vector<2x512xf32>
    %214 = arith.addf %212, %213 : vector<2x512xf32>
    %215 = vector.extract_strided_slice %214 {offsets = [0, 0], sizes = [2, 128], strides = [1, 1]} : vector<2x512xf32> to vector<2x128xf32>
    %216 = arith.negf %215 : vector<2x128xf32>
    %217 = math.exp %216 : vector<2x128xf32>
    %cst_52 = arith.constant 1.000000e+00 : f32
    %218 = vector.broadcast %cst_52 : f32 to vector<2x128xf32>
    %219 = arith.addf %218, %217 : vector<2x128xf32>
    %220 = arith.divf %218, %219 : vector<2x128xf32>
    %221 = vector.extract_strided_slice %214 {offsets = [0, 128], sizes = [2, 128], strides = [1, 1]} : vector<2x512xf32> to vector<2x128xf32>
    %222 = arith.negf %221 : vector<2x128xf32>
    %223 = math.exp %222 : vector<2x128xf32>
    %cst_53 = arith.constant 1.000000e+00 : f32
    %224 = vector.broadcast %cst_53 : f32 to vector<2x128xf32>
    %225 = arith.addf %224, %223 : vector<2x128xf32>
    %226 = arith.divf %224, %225 : vector<2x128xf32>
    %227 = vector.extract_strided_slice %214 {offsets = [0, 256], sizes = [2, 128], strides = [1, 1]} : vector<2x512xf32> to vector<2x128xf32>
    %228 = math.tanh %227 : vector<2x128xf32>
    %229 = vector.extract_strided_slice %214 {offsets = [0, 384], sizes = [2, 128], strides = [1, 1]} : vector<2x512xf32> to vector<2x128xf32>
    %230 = arith.negf %229 : vector<2x128xf32>
    %231 = math.exp %230 : vector<2x128xf32>
    %cst_54 = arith.constant 1.000000e+00 : f32
    %232 = vector.broadcast %cst_54 : f32 to vector<2x128xf32>
    %233 = arith.addf %232, %231 : vector<2x128xf32>
    %234 = arith.divf %232, %233 : vector<2x128xf32>
    %235 = arith.mulf %226, %208 : vector<2x128xf32>
    %236 = arith.mulf %220, %228 : vector<2x128xf32>
    %237 = arith.addf %235, %236 : vector<2x128xf32>
    %238 = math.tanh %237 : vector<2x128xf32>
    %239 = arith.mulf %234, %238 : vector<2x128xf32>
    %c0_55 = arith.constant 0 : index
    %c0_56 = arith.constant 0 : index
    %240 = vector.load %arg5[%c0_55, %c0_56] : memref<128x384xf32, #tpu.memory_space<vmem>>, vector<128x384xf32>
    %cst_57 = arith.constant dense<0.000000e+00> : vector<2x384xf32>
    %241 = tpu.matmul %239, %240, %cst_57 {dimension_numbers = #tpu.dot_dimension_numbers<[1], [0], [0], [1], [0, 0, 1, 1], [], []>} : vector<2x128xf32>, vector<128x384xf32>, vector<2x384xf32> -> vector<2x384xf32>
    %c0_58 = arith.constant 0 : index
    %c0_59 = arith.constant 0 : index
    %242 = vector.load %arg6[%c0_58, %c0_59] : memref<1x384xf32, #tpu.memory_space<vmem>>, vector<1x384xf32>
    %243 = vector.broadcast %242 : vector<1x384xf32> to vector<2x384xf32>
    %244 = arith.addf %241, %243 : vector<2x384xf32>
    %245 = vector.extract_strided_slice %244 {offsets = [0, 0], sizes = [2, 128], strides = [1, 1]} : vector<2x384xf32> to vector<2x128xf32>
    %cst_60 = arith.constant 2.500000e-01 : f32
    %246 = vector.broadcast %cst_60 : f32 to vector<2x128xf32>
    %247 = arith.mulf %245, %246 : vector<2x128xf32>
    %248 = vector.extract_strided_slice %244 {offsets = [0, 128], sizes = [2, 128], strides = [1, 1]} : vector<2x384xf32> to vector<2x128xf32>
    %249 = vector.extract_strided_slice %244 {offsets = [0, 256], sizes = [2, 128], strides = [1, 1]} : vector<2x384xf32> to vector<2x128xf32>
    %cst_61 = arith.constant 0.000000e+00 : f32
    %250 = vector.broadcast %cst_61 : f32 to vector<2x128xf32>
    %251 = vector.extract_strided_slice %247 {offsets = [0, 0], sizes = [2, 16], strides = [1, 1]} : vector<2x128xf32> to vector<2x16xf32>
    %252 = vector.extract_strided_slice %248 {offsets = [0, 0], sizes = [2, 16], strides = [1, 1]} : vector<2x128xf32> to vector<2x16xf32>
    %253 = vector.extract_strided_slice %249 {offsets = [0, 0], sizes = [2, 16], strides = [1, 1]} : vector<2x128xf32> to vector<2x16xf32>
    "tpu.trace_start"() <{level = 10 : i32, message = "bd,cd->bc"}> : () -> ()
    %cst_62 = arith.constant dense<0.000000e+00> : vector<2x2xf32>
    %254 = tpu.matmul %251, %252, %cst_62 {dimension_numbers = #tpu.dot_dimension_numbers<[1], [1], [0], [0], [0, 0, 1, 0], [], []>} : vector<2x16xf32>, vector<2x16xf32>, vector<2x2xf32> -> vector<2x2xf32>
    "tpu.trace_stop"() : () -> ()
    %cst_63 = arith.constant dense<0xFF800000> : vector<2xf32>
    %255 = vector.multi_reduction <maximumf>, %254, %cst_63 [1] : vector<2x2xf32> to vector<2xf32>
    %256 = vector.shape_cast %255 : vector<2xf32> to vector<2x1xf32>
    %257 = vector.broadcast %256 : vector<2x1xf32> to vector<2x2xf32>
    %258 = arith.subf %254, %257 : vector<2x2xf32>
    %259 = math.exp %258 : vector<2x2xf32>
    %cst_64 = arith.constant dense<0.000000e+00> : vector<2xf32>
    %260 = vector.multi_reduction <add>, %259, %cst_64 [1] : vector<2x2xf32> to vector<2xf32>
    %261 = vector.shape_cast %260 : vector<2xf32> to vector<2x1xf32>
    %262 = vector.broadcast %261 : vector<2x1xf32> to vector<2x2xf32>
    %263 = arith.divf %259, %262 : vector<2x2xf32>
    %cst_65 = arith.constant dense<0.000000e+00> : vector<2x16xf32>
    %264 = tpu.matmul %263, %253, %cst_65 {dimension_numbers = #tpu.dot_dimension_numbers<[1], [0], [0], [1], [0, 0, 1, 1], [], []>} : vector<2x2xf32>, vector<2x16xf32>, vector<2x16xf32> -> vector<2x16xf32>
    %c0_66 = arith.constant 0 : index
    %c0_67 = arith.constant 0 : index
    %265 = vector.load %arg7[%c0_66, %c0_67] : memref<128x128xf32, #tpu.memory_space<vmem>>, vector<16x128xf32>
    %cst_68 = arith.constant dense<0.000000e+00> : vector<2x128xf32>
    %266 = tpu.matmul %264, %265, %cst_68 {dimension_numbers = #tpu.dot_dimension_numbers<[1], [0], [0], [1], [0, 0, 1, 1], [], []>} : vector<2x16xf32>, vector<16x128xf32>, vector<2x128xf32> -> vector<2x128xf32>
    %267 = arith.addf %250, %266 : vector<2x128xf32>
    %268 = vector.extract_strided_slice %247 {offsets = [0, 16], sizes = [2, 16], strides = [1, 1]} : vector<2x128xf32> to vector<2x16xf32>
    %269 = vector.extract_strided_slice %248 {offsets = [0, 16], sizes = [2, 16], strides = [1, 1]} : vector<2x128xf32> to vector<2x16xf32>
    %270 = vector.extract_strided_slice %249 {offsets = [0, 16], sizes = [2, 16], strides = [1, 1]} : vector<2x128xf32> to vector<2x16xf32>
    "tpu.trace_start"() <{level = 10 : i32, message = "bd,cd->bc"}> : () -> ()
    %cst_69 = arith.constant dense<0.000000e+00> : vector<2x2xf32>
    %271 = tpu.matmul %268, %269, %cst_69 {dimension_numbers = #tpu.dot_dimension_numbers<[1], [1], [0], [0], [0, 0, 1, 0], [], []>} : vector<2x16xf32>, vector<2x16xf32>, vector<2x2xf32> -> vector<2x2xf32>
    "tpu.trace_stop"() : () -> ()
    %cst_70 = arith.constant dense<0xFF800000> : vector<2xf32>
    %272 = vector.multi_reduction <maximumf>, %271, %cst_70 [1] : vector<2x2xf32> to vector<2xf32>
    %273 = vector.shape_cast %272 : vector<2xf32> to vector<2x1xf32>
    %274 = vector.broadcast %273 : vector<2x1xf32> to vector<2x2xf32>
    %275 = arith.subf %271, %274 : vector<2x2xf32>
    %276 = math.exp %275 : vector<2x2xf32>
    %cst_71 = arith.constant dense<0.000000e+00> : vector<2xf32>
    %277 = vector.multi_reduction <add>, %276, %cst_71 [1] : vector<2x2xf32> to vector<2xf32>
    %278 = vector.shape_cast %277 : vector<2xf32> to vector<2x1xf32>
    %279 = vector.broadcast %278 : vector<2x1xf32> to vector<2x2xf32>
    %280 = arith.divf %276, %279 : vector<2x2xf32>
    %cst_72 = arith.constant dense<0.000000e+00> : vector<2x16xf32>
    %281 = tpu.matmul %280, %270, %cst_72 {dimension_numbers = #tpu.dot_dimension_numbers<[1], [0], [0], [1], [0, 0, 1, 1], [], []>} : vector<2x2xf32>, vector<2x16xf32>, vector<2x16xf32> -> vector<2x16xf32>
    %c16 = arith.constant 16 : index
    %c0_73 = arith.constant 0 : index
    %282 = vector.load %arg7[%c16, %c0_73] : memref<128x128xf32, #tpu.memory_space<vmem>>, vector<16x128xf32>
    %cst_74 = arith.constant dense<0.000000e+00> : vector<2x128xf32>
    %283 = tpu.matmul %281, %282, %cst_74 {dimension_numbers = #tpu.dot_dimension_numbers<[1], [0], [0], [1], [0, 0, 1, 1], [], []>} : vector<2x16xf32>, vector<16x128xf32>, vector<2x128xf32> -> vector<2x128xf32>
    %284 = arith.addf %267, %283 : vector<2x128xf32>
    %285 = vector.extract_strided_slice %247 {offsets = [0, 32], sizes = [2, 16], strides = [1, 1]} : vector<2x128xf32> to vector<2x16xf32>
    %286 = vector.extract_strided_slice %248 {offsets = [0, 32], sizes = [2, 16], strides = [1, 1]} : vector<2x128xf32> to vector<2x16xf32>
    %287 = vector.extract_strided_slice %249 {offsets = [0, 32], sizes = [2, 16], strides = [1, 1]} : vector<2x128xf32> to vector<2x16xf32>
    "tpu.trace_start"() <{level = 10 : i32, message = "bd,cd->bc"}> : () -> ()
    %cst_75 = arith.constant dense<0.000000e+00> : vector<2x2xf32>
    %288 = tpu.matmul %285, %286, %cst_75 {dimension_numbers = #tpu.dot_dimension_numbers<[1], [1], [0], [0], [0, 0, 1, 0], [], []>} : vector<2x16xf32>, vector<2x16xf32>, vector<2x2xf32> -> vector<2x2xf32>
    "tpu.trace_stop"() : () -> ()
    %cst_76 = arith.constant dense<0xFF800000> : vector<2xf32>
    %289 = vector.multi_reduction <maximumf>, %288, %cst_76 [1] : vector<2x2xf32> to vector<2xf32>
    %290 = vector.shape_cast %289 : vector<2xf32> to vector<2x1xf32>
    %291 = vector.broadcast %290 : vector<2x1xf32> to vector<2x2xf32>
    %292 = arith.subf %288, %291 : vector<2x2xf32>
    %293 = math.exp %292 : vector<2x2xf32>
    %cst_77 = arith.constant dense<0.000000e+00> : vector<2xf32>
    %294 = vector.multi_reduction <add>, %293, %cst_77 [1] : vector<2x2xf32> to vector<2xf32>
    %295 = vector.shape_cast %294 : vector<2xf32> to vector<2x1xf32>
    %296 = vector.broadcast %295 : vector<2x1xf32> to vector<2x2xf32>
    %297 = arith.divf %293, %296 : vector<2x2xf32>
    %cst_78 = arith.constant dense<0.000000e+00> : vector<2x16xf32>
    %298 = tpu.matmul %297, %287, %cst_78 {dimension_numbers = #tpu.dot_dimension_numbers<[1], [0], [0], [1], [0, 0, 1, 1], [], []>} : vector<2x2xf32>, vector<2x16xf32>, vector<2x16xf32> -> vector<2x16xf32>
    %c32 = arith.constant 32 : index
    %c0_79 = arith.constant 0 : index
    %299 = vector.load %arg7[%c32, %c0_79] : memref<128x128xf32, #tpu.memory_space<vmem>>, vector<16x128xf32>
    %cst_80 = arith.constant dense<0.000000e+00> : vector<2x128xf32>
    %300 = tpu.matmul %298, %299, %cst_80 {dimension_numbers = #tpu.dot_dimension_numbers<[1], [0], [0], [1], [0, 0, 1, 1], [], []>} : vector<2x16xf32>, vector<16x128xf32>, vector<2x128xf32> -> vector<2x128xf32>
    %301 = arith.addf %284, %300 : vector<2x128xf32>
    %302 = vector.extract_strided_slice %247 {offsets = [0, 48], sizes = [2, 16], strides = [1, 1]} : vector<2x128xf32> to vector<2x16xf32>
    %303 = vector.extract_strided_slice %248 {offsets = [0, 48], sizes = [2, 16], strides = [1, 1]} : vector<2x128xf32> to vector<2x16xf32>
    %304 = vector.extract_strided_slice %249 {offsets = [0, 48], sizes = [2, 16], strides = [1, 1]} : vector<2x128xf32> to vector<2x16xf32>
    "tpu.trace_start"() <{level = 10 : i32, message = "bd,cd->bc"}> : () -> ()
    %cst_81 = arith.constant dense<0.000000e+00> : vector<2x2xf32>
    %305 = tpu.matmul %302, %303, %cst_81 {dimension_numbers = #tpu.dot_dimension_numbers<[1], [1], [0], [0], [0, 0, 1, 0], [], []>} : vector<2x16xf32>, vector<2x16xf32>, vector<2x2xf32> -> vector<2x2xf32>
    "tpu.trace_stop"() : () -> ()
    %cst_82 = arith.constant dense<0xFF800000> : vector<2xf32>
    %306 = vector.multi_reduction <maximumf>, %305, %cst_82 [1] : vector<2x2xf32> to vector<2xf32>
    %307 = vector.shape_cast %306 : vector<2xf32> to vector<2x1xf32>
    %308 = vector.broadcast %307 : vector<2x1xf32> to vector<2x2xf32>
    %309 = arith.subf %305, %308 : vector<2x2xf32>
    %310 = math.exp %309 : vector<2x2xf32>
    %cst_83 = arith.constant dense<0.000000e+00> : vector<2xf32>
    %311 = vector.multi_reduction <add>, %310, %cst_83 [1] : vector<2x2xf32> to vector<2xf32>
    %312 = vector.shape_cast %311 : vector<2xf32> to vector<2x1xf32>
    %313 = vector.broadcast %312 : vector<2x1xf32> to vector<2x2xf32>
    %314 = arith.divf %310, %313 : vector<2x2xf32>
    %cst_84 = arith.constant dense<0.000000e+00> : vector<2x16xf32>
    %315 = tpu.matmul %314, %304, %cst_84 {dimension_numbers = #tpu.dot_dimension_numbers<[1], [0], [0], [1], [0, 0, 1, 1], [], []>} : vector<2x2xf32>, vector<2x16xf32>, vector<2x16xf32> -> vector<2x16xf32>
    %c48 = arith.constant 48 : index
    %c0_85 = arith.constant 0 : index
    %316 = vector.load %arg7[%c48, %c0_85] : memref<128x128xf32, #tpu.memory_space<vmem>>, vector<16x128xf32>
    %cst_86 = arith.constant dense<0.000000e+00> : vector<2x128xf32>
    %317 = tpu.matmul %315, %316, %cst_86 {dimension_numbers = #tpu.dot_dimension_numbers<[1], [0], [0], [1], [0, 0, 1, 1], [], []>} : vector<2x16xf32>, vector<16x128xf32>, vector<2x128xf32> -> vector<2x128xf32>
    %318 = arith.addf %301, %317 : vector<2x128xf32>
    %319 = vector.extract_strided_slice %247 {offsets = [0, 64], sizes = [2, 16], strides = [1, 1]} : vector<2x128xf32> to vector<2x16xf32>
    %320 = vector.extract_strided_slice %248 {offsets = [0, 64], sizes = [2, 16], strides = [1, 1]} : vector<2x128xf32> to vector<2x16xf32>
    %321 = vector.extract_strided_slice %249 {offsets = [0, 64], sizes = [2, 16], strides = [1, 1]} : vector<2x128xf32> to vector<2x16xf32>
    "tpu.trace_start"() <{level = 10 : i32, message = "bd,cd->bc"}> : () -> ()
    %cst_87 = arith.constant dense<0.000000e+00> : vector<2x2xf32>
    %322 = tpu.matmul %319, %320, %cst_87 {dimension_numbers = #tpu.dot_dimension_numbers<[1], [1], [0], [0], [0, 0, 1, 0], [], []>} : vector<2x16xf32>, vector<2x16xf32>, vector<2x2xf32> -> vector<2x2xf32>
    "tpu.trace_stop"() : () -> ()
    %cst_88 = arith.constant dense<0xFF800000> : vector<2xf32>
    %323 = vector.multi_reduction <maximumf>, %322, %cst_88 [1] : vector<2x2xf32> to vector<2xf32>
    %324 = vector.shape_cast %323 : vector<2xf32> to vector<2x1xf32>
    %325 = vector.broadcast %324 : vector<2x1xf32> to vector<2x2xf32>
    %326 = arith.subf %322, %325 : vector<2x2xf32>
    %327 = math.exp %326 : vector<2x2xf32>
    %cst_89 = arith.constant dense<0.000000e+00> : vector<2xf32>
    %328 = vector.multi_reduction <add>, %327, %cst_89 [1] : vector<2x2xf32> to vector<2xf32>
    %329 = vector.shape_cast %328 : vector<2xf32> to vector<2x1xf32>
    %330 = vector.broadcast %329 : vector<2x1xf32> to vector<2x2xf32>
    %331 = arith.divf %327, %330 : vector<2x2xf32>
    %cst_90 = arith.constant dense<0.000000e+00> : vector<2x16xf32>
    %332 = tpu.matmul %331, %321, %cst_90 {dimension_numbers = #tpu.dot_dimension_numbers<[1], [0], [0], [1], [0, 0, 1, 1], [], []>} : vector<2x2xf32>, vector<2x16xf32>, vector<2x16xf32> -> vector<2x16xf32>
    %c64 = arith.constant 64 : index
    %c0_91 = arith.constant 0 : index
    %333 = vector.load %arg7[%c64, %c0_91] : memref<128x128xf32, #tpu.memory_space<vmem>>, vector<16x128xf32>
    %cst_92 = arith.constant dense<0.000000e+00> : vector<2x128xf32>
    %334 = tpu.matmul %332, %333, %cst_92 {dimension_numbers = #tpu.dot_dimension_numbers<[1], [0], [0], [1], [0, 0, 1, 1], [], []>} : vector<2x16xf32>, vector<16x128xf32>, vector<2x128xf32> -> vector<2x128xf32>
    %335 = arith.addf %318, %334 : vector<2x128xf32>
    %336 = vector.extract_strided_slice %247 {offsets = [0, 80], sizes = [2, 16], strides = [1, 1]} : vector<2x128xf32> to vector<2x16xf32>
    %337 = vector.extract_strided_slice %248 {offsets = [0, 80], sizes = [2, 16], strides = [1, 1]} : vector<2x128xf32> to vector<2x16xf32>
    %338 = vector.extract_strided_slice %249 {offsets = [0, 80], sizes = [2, 16], strides = [1, 1]} : vector<2x128xf32> to vector<2x16xf32>
    "tpu.trace_start"() <{level = 10 : i32, message = "bd,cd->bc"}> : () -> ()
    %cst_93 = arith.constant dense<0.000000e+00> : vector<2x2xf32>
    %339 = tpu.matmul %336, %337, %cst_93 {dimension_numbers = #tpu.dot_dimension_numbers<[1], [1], [0], [0], [0, 0, 1, 0], [], []>} : vector<2x16xf32>, vector<2x16xf32>, vector<2x2xf32> -> vector<2x2xf32>
    "tpu.trace_stop"() : () -> ()
    %cst_94 = arith.constant dense<0xFF800000> : vector<2xf32>
    %340 = vector.multi_reduction <maximumf>, %339, %cst_94 [1] : vector<2x2xf32> to vector<2xf32>
    %341 = vector.shape_cast %340 : vector<2xf32> to vector<2x1xf32>
    %342 = vector.broadcast %341 : vector<2x1xf32> to vector<2x2xf32>
    %343 = arith.subf %339, %342 : vector<2x2xf32>
    %344 = math.exp %343 : vector<2x2xf32>
    %cst_95 = arith.constant dense<0.000000e+00> : vector<2xf32>
    %345 = vector.multi_reduction <add>, %344, %cst_95 [1] : vector<2x2xf32> to vector<2xf32>
    %346 = vector.shape_cast %345 : vector<2xf32> to vector<2x1xf32>
    %347 = vector.broadcast %346 : vector<2x1xf32> to vector<2x2xf32>
    %348 = arith.divf %344, %347 : vector<2x2xf32>
    %cst_96 = arith.constant dense<0.000000e+00> : vector<2x16xf32>
    %349 = tpu.matmul %348, %338, %cst_96 {dimension_numbers = #tpu.dot_dimension_numbers<[1], [0], [0], [1], [0, 0, 1, 1], [], []>} : vector<2x2xf32>, vector<2x16xf32>, vector<2x16xf32> -> vector<2x16xf32>
    %c80 = arith.constant 80 : index
    %c0_97 = arith.constant 0 : index
    %350 = vector.load %arg7[%c80, %c0_97] : memref<128x128xf32, #tpu.memory_space<vmem>>, vector<16x128xf32>
    %cst_98 = arith.constant dense<0.000000e+00> : vector<2x128xf32>
    %351 = tpu.matmul %349, %350, %cst_98 {dimension_numbers = #tpu.dot_dimension_numbers<[1], [0], [0], [1], [0, 0, 1, 1], [], []>} : vector<2x16xf32>, vector<16x128xf32>, vector<2x128xf32> -> vector<2x128xf32>
    %352 = arith.addf %335, %351 : vector<2x128xf32>
    %353 = vector.extract_strided_slice %247 {offsets = [0, 96], sizes = [2, 16], strides = [1, 1]} : vector<2x128xf32> to vector<2x16xf32>
    %354 = vector.extract_strided_slice %248 {offsets = [0, 96], sizes = [2, 16], strides = [1, 1]} : vector<2x128xf32> to vector<2x16xf32>
    %355 = vector.extract_strided_slice %249 {offsets = [0, 96], sizes = [2, 16], strides = [1, 1]} : vector<2x128xf32> to vector<2x16xf32>
    "tpu.trace_start"() <{level = 10 : i32, message = "bd,cd->bc"}> : () -> ()
    %cst_99 = arith.constant dense<0.000000e+00> : vector<2x2xf32>
    %356 = tpu.matmul %353, %354, %cst_99 {dimension_numbers = #tpu.dot_dimension_numbers<[1], [1], [0], [0], [0, 0, 1, 0], [], []>} : vector<2x16xf32>, vector<2x16xf32>, vector<2x2xf32> -> vector<2x2xf32>
    "tpu.trace_stop"() : () -> ()
    %cst_100 = arith.constant dense<0xFF800000> : vector<2xf32>
    %357 = vector.multi_reduction <maximumf>, %356, %cst_100 [1] : vector<2x2xf32> to vector<2xf32>
    %358 = vector.shape_cast %357 : vector<2xf32> to vector<2x1xf32>
    %359 = vector.broadcast %358 : vector<2x1xf32> to vector<2x2xf32>
    %360 = arith.subf %356, %359 : vector<2x2xf32>
    %361 = math.exp %360 : vector<2x2xf32>
    %cst_101 = arith.constant dense<0.000000e+00> : vector<2xf32>
    %362 = vector.multi_reduction <add>, %361, %cst_101 [1] : vector<2x2xf32> to vector<2xf32>
    %363 = vector.shape_cast %362 : vector<2xf32> to vector<2x1xf32>
    %364 = vector.broadcast %363 : vector<2x1xf32> to vector<2x2xf32>
    %365 = arith.divf %361, %364 : vector<2x2xf32>
    %cst_102 = arith.constant dense<0.000000e+00> : vector<2x16xf32>
    %366 = tpu.matmul %365, %355, %cst_102 {dimension_numbers = #tpu.dot_dimension_numbers<[1], [0], [0], [1], [0, 0, 1, 1], [], []>} : vector<2x2xf32>, vector<2x16xf32>, vector<2x16xf32> -> vector<2x16xf32>
    %c96 = arith.constant 96 : index
    %c0_103 = arith.constant 0 : index
    %367 = vector.load %arg7[%c96, %c0_103] : memref<128x128xf32, #tpu.memory_space<vmem>>, vector<16x128xf32>
    %cst_104 = arith.constant dense<0.000000e+00> : vector<2x128xf32>
    %368 = tpu.matmul %366, %367, %cst_104 {dimension_numbers = #tpu.dot_dimension_numbers<[1], [0], [0], [1], [0, 0, 1, 1], [], []>} : vector<2x16xf32>, vector<16x128xf32>, vector<2x128xf32> -> vector<2x128xf32>
    %369 = arith.addf %352, %368 : vector<2x128xf32>
    %370 = vector.extract_strided_slice %247 {offsets = [0, 112], sizes = [2, 16], strides = [1, 1]} : vector<2x128xf32> to vector<2x16xf32>
    %371 = vector.extract_strided_slice %248 {offsets = [0, 112], sizes = [2, 16], strides = [1, 1]} : vector<2x128xf32> to vector<2x16xf32>
    %372 = vector.extract_strided_slice %249 {offsets = [0, 112], sizes = [2, 16], strides = [1, 1]} : vector<2x128xf32> to vector<2x16xf32>
    "tpu.trace_start"() <{level = 10 : i32, message = "bd,cd->bc"}> : () -> ()
    %cst_105 = arith.constant dense<0.000000e+00> : vector<2x2xf32>
    %373 = tpu.matmul %370, %371, %cst_105 {dimension_numbers = #tpu.dot_dimension_numbers<[1], [1], [0], [0], [0, 0, 1, 0], [], []>} : vector<2x16xf32>, vector<2x16xf32>, vector<2x2xf32> -> vector<2x2xf32>
    "tpu.trace_stop"() : () -> ()
    %cst_106 = arith.constant dense<0xFF800000> : vector<2xf32>
    %374 = vector.multi_reduction <maximumf>, %373, %cst_106 [1] : vector<2x2xf32> to vector<2xf32>
    %375 = vector.shape_cast %374 : vector<2xf32> to vector<2x1xf32>
    %376 = vector.broadcast %375 : vector<2x1xf32> to vector<2x2xf32>
    %377 = arith.subf %373, %376 : vector<2x2xf32>
    %378 = math.exp %377 : vector<2x2xf32>
    %cst_107 = arith.constant dense<0.000000e+00> : vector<2xf32>
    %379 = vector.multi_reduction <add>, %378, %cst_107 [1] : vector<2x2xf32> to vector<2xf32>
    %380 = vector.shape_cast %379 : vector<2xf32> to vector<2x1xf32>
    %381 = vector.broadcast %380 : vector<2x1xf32> to vector<2x2xf32>
    %382 = arith.divf %378, %381 : vector<2x2xf32>
    %cst_108 = arith.constant dense<0.000000e+00> : vector<2x16xf32>
    %383 = tpu.matmul %382, %372, %cst_108 {dimension_numbers = #tpu.dot_dimension_numbers<[1], [0], [0], [1], [0, 0, 1, 1], [], []>} : vector<2x2xf32>, vector<2x16xf32>, vector<2x16xf32> -> vector<2x16xf32>
    %c112 = arith.constant 112 : index
    %c0_109 = arith.constant 0 : index
    %384 = vector.load %arg7[%c112, %c0_109] : memref<128x128xf32, #tpu.memory_space<vmem>>, vector<16x128xf32>
    %cst_110 = arith.constant dense<0.000000e+00> : vector<2x128xf32>
    %385 = tpu.matmul %383, %384, %cst_110 {dimension_numbers = #tpu.dot_dimension_numbers<[1], [0], [0], [1], [0, 0, 1, 1], [], []>} : vector<2x16xf32>, vector<16x128xf32>, vector<2x128xf32> -> vector<2x128xf32>
    %386 = arith.addf %369, %385 : vector<2x128xf32>
    %c0_111 = arith.constant 0 : index
    %c0_112 = arith.constant 0 : index
    %387 = vector.load %arg8[%c0_111, %c0_112] : memref<1x128xf32, #tpu.memory_space<vmem>>, vector<1x128xf32>
    %388 = vector.broadcast %387 : vector<1x128xf32> to vector<2x128xf32>
    %389 = arith.addf %386, %388 : vector<2x128xf32>
    %390 = arith.addf %389, %239 : vector<2x128xf32>
    %cst_113 = arith.constant dense<0.000000e+00> : vector<2xf32>
    %391 = vector.multi_reduction <add>, %390, %cst_113 [1] : vector<2x128xf32> to vector<2xf32>
    %392 = vector.shape_cast %391 : vector<2xf32> to vector<2x1xf32>
    %cst_114 = arith.constant 1.280000e+02 : f32
    %393 = vector.broadcast %cst_114 : f32 to vector<2x1xf32>
    %394 = arith.divf %392, %393 : vector<2x1xf32>
    %395 = vector.broadcast %394 : vector<2x1xf32> to vector<2x128xf32>
    %396 = arith.subf %390, %395 : vector<2x128xf32>
    %397 = arith.mulf %396, %396 : vector<2x128xf32>
    %cst_115 = arith.constant dense<0.000000e+00> : vector<2xf32>
    %398 = vector.multi_reduction <add>, %397, %cst_115 [1] : vector<2x128xf32> to vector<2xf32>
    %399 = vector.shape_cast %398 : vector<2xf32> to vector<2x1xf32>
    %cst_116 = arith.constant 1.280000e+02 : f32
    %400 = vector.broadcast %cst_116 : f32 to vector<2x1xf32>
    %401 = arith.divf %399, %400 : vector<2x1xf32>
    %402 = vector.broadcast %394 : vector<2x1xf32> to vector<2x128xf32>
    %403 = arith.subf %390, %402 : vector<2x128xf32>
    %cst_117 = arith.constant 9.99999974E-6 : f32
    %404 = vector.broadcast %cst_117 : f32 to vector<2x1xf32>
    %405 = arith.addf %401, %404 : vector<2x1xf32>
    %406 = math.rsqrt %405 : vector<2x1xf32>
    %407 = vector.broadcast %406 : vector<2x1xf32> to vector<2x128xf32>
    %408 = arith.mulf %403, %407 : vector<2x128xf32>
    %c0_118 = arith.constant 0 : index
    %c0_119 = arith.constant 0 : index
    %409 = vector.load %arg9[%c0_118, %c0_119] : memref<1x128xf32, #tpu.memory_space<vmem>>, vector<1x128xf32>
    %410 = vector.broadcast %409 : vector<1x128xf32> to vector<2x128xf32>
    %411 = arith.mulf %408, %410 : vector<2x128xf32>
    %c0_120 = arith.constant 0 : index
    %c0_121 = arith.constant 0 : index
    %412 = vector.load %arg10[%c0_120, %c0_121] : memref<1x128xf32, #tpu.memory_space<vmem>>, vector<1x128xf32>
    %413 = vector.broadcast %412 : vector<1x128xf32> to vector<2x128xf32>
    %414 = arith.addf %411, %413 : vector<2x128xf32>
    %c0_122 = arith.constant 0 : index
    %c0_123 = arith.constant 0 : index
    %415 = vector.load %arg11[%c0_122, %c0_123] : memref<128x128xf32, #tpu.memory_space<vmem>>, vector<128x128xf32>
    %cst_124 = arith.constant dense<0.000000e+00> : vector<2x128xf32>
    %416 = tpu.matmul %414, %415, %cst_124 {dimension_numbers = #tpu.dot_dimension_numbers<[1], [0], [0], [1], [0, 0, 1, 1], [], []>} : vector<2x128xf32>, vector<128x128xf32>, vector<2x128xf32> -> vector<2x128xf32>
    %c0_125 = arith.constant 0 : index
    %c0_126 = arith.constant 0 : index
    %417 = vector.load %arg12[%c0_125, %c0_126] : memref<1x128xf32, #tpu.memory_space<vmem>>, vector<1x128xf32>
    %418 = vector.broadcast %417 : vector<1x128xf32> to vector<2x128xf32>
    %419 = arith.addf %416, %418 : vector<2x128xf32>
    %cst_127 = arith.constant 0.000000e+00 : f32
    %420 = vector.broadcast %cst_127 : f32 to vector<2x128xf32>
    %421 = arith.maximumf %419, %420 : vector<2x128xf32>
    %c0_128 = arith.constant 0 : index
    %c0_129 = arith.constant 0 : index
    %422 = vector.load %arg13[%c0_128, %c0_129] : memref<128x128xf32, #tpu.memory_space<vmem>>, vector<128x128xf32>
    %cst_130 = arith.constant dense<0.000000e+00> : vector<2x128xf32>
    %423 = tpu.matmul %421, %422, %cst_130 {dimension_numbers = #tpu.dot_dimension_numbers<[1], [0], [0], [1], [0, 0, 1, 1], [], []>} : vector<2x128xf32>, vector<128x128xf32>, vector<2x128xf32> -> vector<2x128xf32>
    %c0_131 = arith.constant 0 : index
    %c0_132 = arith.constant 0 : index
    %424 = vector.load %arg14[%c0_131, %c0_132] : memref<1x128xf32, #tpu.memory_space<vmem>>, vector<1x128xf32>
    %425 = vector.broadcast %424 : vector<1x128xf32> to vector<2x128xf32>
    %426 = arith.addf %423, %425 : vector<2x128xf32>
    %c0_133 = arith.constant 0 : index
    %c0_134 = arith.constant 0 : index
    %427 = vector.load %arg15[%c0_133, %c0_134] : memref<2x128xf32, #tpu.memory_space<vmem>>, vector<2x128xf32>
    tpu.vector_store %arg15[%c0_133, %c0_134], %426 {strides = array<i32>} : memref<2x128xf32, #tpu.memory_space<vmem>>, vector<2x128xf32>,
    return
  }
  func.func @transform_0(%arg0: i32) -> (i32, i32) {
    %c0_i32 = arith.constant 0 : i32
    %c0_i32_0 = arith.constant 0 : i32
    %c0_i32_1 = arith.constant 0 : i32
    return %c0_i32, %c0_i32_0 : i32, i32
  }
  func.func @transform_1(%arg0: i32) -> (i32, i32) {
    %c0_i32 = arith.constant 0 : i32
    %c0_i32_0 = arith.constant 0 : i32
    %c0_i32_1 = arith.constant 0 : i32
    return %c0_i32, %c0_i32_0 : i32, i32
  }
  func.func @transform_2(%arg0: i32) -> (i32, i32) {
    %c0_i32 = arith.constant 0 : i32
    %c0_i32_0 = arith.constant 0 : i32
    %c0_i32_1 = arith.constant 0 : i32
    return %c0_i32, %c0_i32_0 : i32, i32
  }
  func.func @transform_3(%arg0: i32) -> (i32, i32) {
    %c0_i32 = arith.constant 0 : i32
    %c0_i32_0 = arith.constant 0 : i32
    %c0_i32_1 = arith.constant 0 : i32
    return %c0_i32, %c0_i32_0 : i32, i32
  }
  func.func @transform_4(%arg0: i32) -> (i32, i32) {
    %c0_i32 = arith.constant 0 : i32
    %c0_i32_0 = arith.constant 0 : i32
    %c0_i32_1 = arith.constant 0 : i32
    return %c0_i32, %c0_i32_0 : i32, i32
  }
  func.func @transform_5(%arg0: i32) -> (i32, i32) {
    %c0_i32 = arith.constant 0 : i32
    %c0_i32_0 = arith.constant 0 : i32
    %c0_i32_1 = arith.constant 0 : i32
    return %c0_i32, %c0_i32_0 : i32, i32
  }
  func.func @transform_6(%arg0: i32) -> (i32, i32) {
    %c0_i32 = arith.constant 0 : i32
    %c0_i32_0 = arith.constant 0 : i32
    %c0_i32_1 = arith.constant 0 : i32
    return %c0_i32, %c0_i32_0 : i32, i32
  }
  func.func @transform_7(%arg0: i32) -> (i32, i32) {
    %c0_i32 = arith.constant 0 : i32
    %c0_i32_0 = arith.constant 0 : i32
    %c0_i32_1 = arith.constant 0 : i32
    return %c0_i32, %c0_i32_0 : i32, i32
  }
  func.func @transform_8(%arg0: i32) -> (i32, i32) {
    %c0_i32 = arith.constant 0 : i32
    %c0_i32_0 = arith.constant 0 : i32
    %c0_i32_1 = arith.constant 0 : i32
    return %c0_i32, %c0_i32_0 : i32, i32
  }
  func.func @transform_9(%arg0: i32) -> (i32, i32) {
    %c0_i32 = arith.constant 0 : i32
    %c0_i32_0 = arith.constant 0 : i32
    %c0_i32_1 = arith.constant 0 : i32
    return %c0_i32, %c0_i32_0 : i32, i32
  }
  func.func @transform_10(%arg0: i32) -> (i32, i32) {
    %c0_i32 = arith.constant 0 : i32
    %c0_i32_0 = arith.constant 0 : i32
    %c0_i32_1 = arith.constant 0 : i32
    return %c0_i32, %c0_i32_0 : i32, i32
  }
  func.func @transform_11(%arg0: i32) -> (i32, i32) {
    %c0_i32 = arith.constant 0 : i32
    %c0_i32_0 = arith.constant 0 : i32
    %c0_i32_1 = arith.constant 0 : i32
    return %c0_i32, %c0_i32_0 : i32, i32
  }
  func.func @transform_12(%arg0: i32) -> (i32, i32) {
    %c0_i32 = arith.constant 0 : i32
    %c0_i32_0 = arith.constant 0 : i32
    %c0_i32_1 = arith.constant 0 : i32
    return %c0_i32, %c0_i32_0 : i32, i32
  }
  func.func @transform_13(%arg0: i32) -> (i32, i32) {
    %c0_i32 = arith.constant 0 : i32
    %c0_i32_0 = arith.constant 0 : i32
    %c0_i32_1 = arith.constant 0 : i32
    return %c0_i32, %c0_i32_0 : i32, i32
  }
  func.func @transform_14(%arg0: i32) -> (i32, i32) {
    %c0_i32 = arith.constant 0 : i32
    %c0_i32_0 = arith.constant 0 : i32
    %c0_i32_1 = arith.constant 0 : i32
    return %c0_i32, %c0_i32_0 : i32, i32
  }
}

</mosaic_0001>

<bundles_post_ra>
// kernel: enhanced_transformer_forward.1
= control target key start
LH: loop header
LB: loop body
LE: loop exit
PB: predicated region body
PF: predicated region fallthrough
CT: control target
= control target key end

     0   :  { %vm104_vm0 = vcmask 523264   ;;  %v6806_v34 = vmov 0.0   ;;  %s6791_s0 = inlined_call_operand.vmem [shape: f32[16,64], index: 0, kind: input, shape index: {}]   ;;  %s6792_s1 = inlined_call_operand.vmem [shape: f32[64,512], index: 1, kind: input, shape index: {}]   ;;  %s6793_s2 = inlined_call_operand.vmem [shape: f32[128,512], index: 2, kind: input, shape index: {}]   ;;  %s6794_s3 = inlined_call_operand.vmem [shape: f32[1,512], index: 3, kind: input, shape index: {}]   ;;  %s6795_s4 = inlined_call_operand.vmem [shape: f32[128,384], index: 4, kind: input, shape index: {}]   ;;  %s6796_s5 = inlined_call_operand.vmem [shape: f32[1,384], index: 5, kind: input, shape index: {}]   ;;  %s6797_s6 = inlined_call_operand.vmem [shape: f32[128,128], index: 6, kind: input, shape index: {}]   ;;  %s6798_s7 = inlined_call_operand.vmem [shape: f32[1,128], index: 7, kind: input, shape index: {}]   ;;  %s6799_s8 = inlined_call_operand.vmem [shape: f32[1,128], index: 8, kind: input, shape index: {}]   ;;  %s6800_s9 = inlined_call_operand.vmem [shape: f32[1,128], index: 9, kind: input, shape index: {}]   ;;  %s6801_s10 = inlined_call_operand.vmem [shape: f32[128,128], index: 10, kind: input, shape index: {}]   ;;  %s6802_s11 = inlined_call_operand.vmem [shape: f32[1,128], index: 11, kind: input, shape index: {}]   ;;  %s6803_s12 = inlined_call_operand.vmem [shape: f32[128,128], index: 12, kind: input, shape index: {}]   ;;  %s6804_s13 = inlined_call_operand.vmem [shape: f32[1,128], index: 13, kind: input, shape index: {}]   ;;  %s6805_s14 = inlined_call_operand.hbm [shape: f32[2,128], index: 14, kind: output, shape index: {}]  }
   0x1   :  { %v79_v0 = vld [vmem:[%s6792_s1 + $0xe8] sm:$0xff]  ;;  %v81_v1 = vld [vmem:[%s6792_s1 + $0xf8] sm:$0xff]  ;;  %v78_v2 = vld [vmem:[%s6792_s1 + $0xe0] sm:$0xff]  ;;  %175 = vmatprep.mubr.f32.mxu0 %v6806_v34  ;;  %252 = vmatprep.mubr.f32.mxu1 %v6806_v34 }
   0x2   :  { %127 = vmatprep.subr.mxu0 %v79_v0  ;;  %204 = vmatprep.subr.mxu1 %v81_v1  ;;  %v80_v3 = vld [vmem:[%s6792_s1 + $0xf0] sm:$0xff]  ;;  %v75_v4 = vld [vmem:[%s6792_s1 + $0xc8] sm:$0xff]  ;;  %v77_v5 = vld [vmem:[%s6792_s1 + $0xd8] sm:$0xff] }
   0x3   :  { %128 = vmatpush1.msra.mxu0 %v78_v2  ;;  %205 = vmatpush1.msra.mxu1 %v80_v3  ;;  %v74_v6 = vld [vmem:[%s6792_s1 + $0xc0] sm:$0xff]  ;;  %v76_v7 = vld [vmem:[%s6792_s1 + $0xd0] sm:$0xff]  ;;  %v71_v8 = vld [vmem:[%s6792_s1 + $0xa8] sm:$0xff] }
   0x4   :  { %129 = vmatprep.subr.mxu0 %v75_v4  ;;  %206 = vmatprep.subr.mxu1 %v77_v5  ;;  %v73_v9 = vld [vmem:[%s6792_s1 + $0xb8] sm:$0xff]  ;;  %v70_v10 = vld [vmem:[%s6792_s1 + $0xa0] sm:$0xff]  ;;  %v72_v11 = vld [vmem:[%s6792_s1 + $0xb0] sm:$0xff] }
   0x5   :  { %130 = vmatpush1.msra.mxu0 %v74_v6  ;;  %207 = vmatpush1.msra.mxu1 %v76_v7  ;;  %v67_v12 = vld [vmem:[%s6792_s1 + $0x88] sm:$0xff]  ;;  %v69_v13 = vld [vmem:[%s6792_s1 + $0x98] sm:$0xff]  ;;  %v66_v14 = vld [vmem:[%s6792_s1 + $0x80] sm:$0xff] }
   0x6   :  { %131 = vmatprep.subr.mxu0 %v71_v8  ;;  %208 = vmatprep.subr.mxu1 %v73_v9  ;;  %v68_v15 = vld [vmem:[%s6792_s1 + $0x90] sm:$0xff]  ;;  %v63_v16 = vld [vmem:[%s6792_s1 + $0x68] sm:$0xff]  ;;  %v65_v17 = vld [vmem:[%s6792_s1 + $0x78] sm:$0xff] }
   0x7   :  { %132 = vmatpush1.msra.mxu0 %v70_v10  ;;  %209 = vmatpush1.msra.mxu1 %v72_v11  ;;  %v62_v18 = vld [vmem:[%s6792_s1 + $0x60] sm:$0xff]  ;;  %v64_v19 = vld [vmem:[%s6792_s1 + $0x70] sm:$0xff]  ;;  %v59_v20 = vld [vmem:[%s6792_s1 + $0x48] sm:$0xff] }
   0x8   :  { %133 = vmatprep.subr.mxu0 %v67_v12  ;;  %210 = vmatprep.subr.mxu1 %v69_v13  ;;  %v61_v21 = vld [vmem:[%s6792_s1 + $0x58] sm:$0xff]  ;;  %v58_v22 = vld [vmem:[%s6792_s1 + $0x40] sm:$0xff]  ;;  %v60_v23 = vld [vmem:[%s6792_s1 + $0x50] sm:$0xff] }
   0x9   :  { %134 = vmatpush1.msra.mxu0 %v66_v14  ;;  %211 = vmatpush1.msra.mxu1 %v68_v15  ;;  %v55_v24 = vld [vmem:[%s6792_s1 + $0x28] sm:$0xff]  ;;  %v57_v25 = vld [vmem:[%s6792_s1 + $0x38] sm:$0xff]  ;;  %v54_v26 = vld [vmem:[%s6792_s1 + $0x20] sm:$0xff] }
   0xa   :  { %135 = vmatprep.subr.mxu0 %v63_v16  ;;  %212 = vmatprep.subr.mxu1 %v65_v17  ;;  %v56_v27 = vld [vmem:[%s6792_s1 + $0x30] sm:$0xff]  ;;  %v51_v28 = vld [vmem:[%s6792_s1 + $0x8] sm:$0xff]  ;;  %v53_v29 = vld [vmem:[%s6792_s1 + $0x18] sm:$0xff] }
   0xb   :  { %136 = vmatpush1.msra.mxu0 %v62_v18  ;;  %213 = vmatpush1.msra.mxu1 %v64_v19  ;;  %v50_v30 = vld [vmem:[%s6792_s1] sm:$0xff]  ;;  %v52_v31 = vld [vmem:[%s6792_s1 + $0x10] sm:$0xff]  ;;  %v4962_v33 = vld [vmem:[%s6793_s2 + $0x1e8] sm:$0xff] }
   0xc   :  { %137 = vmatprep.subr.mxu0 %v59_v20  ;;  %214 = vmatprep.subr.mxu1 %v61_v21  ;;  %v48_v32 = vld [vmem:[%s6791_s0] sm:$0xff]  ;;  %6910 = vst [vmem:[#allocation5_spill] sm:$0xff] %v4962_v33  ;;  %v4968_v35 = vld [vmem:[%s6793_s2 + $0x1f8] sm:$0xff]  ;;  %v4979_v37 = vld [vmem:[%s6793_s2 + $0x1f0] sm:$0xff] }
   0xd   :  { %138 = vmatpush1.msra.mxu0 %v58_v22  ;;  %215 = vmatpush1.msra.mxu1 %v60_v23  ;;  %6911 = vst [vmem:[#allocation6_spill] sm:$0xff] %v4968_v35  ;;  %v4974_v36 = vld [vmem:[%s6793_s2 + $0x1e0] sm:$0xff]  ;;  %v4986_v38 = vld [vmem:[%s6793_s2 + $0x1c8] sm:$0xff]  ;;  %v4991_v39 = vld [vmem:[%s6793_s2 + $0x1d8] sm:$0xff] }
   0xe   :  { %139 = vmatprep.subr.mxu0 %v55_v24  ;;  %216 = vmatprep.subr.mxu1 %v57_v25  ;;  %v4998_v40 = vld [vmem:[%s6793_s2 + $0x1c0] sm:$0xff]  ;;  %v5003_v41 = vld [vmem:[%s6793_s2 + $0x1d0] sm:$0xff]  ;;  %v5010_v42 = vld [vmem:[%s6793_s2 + $0x1a8] sm:$0xff] }
   0xf   :  { %140 = vmatpush1.msra.mxu0 %v54_v26  ;;  %217 = vmatpush1.msra.mxu1 %v56_v27  ;;  %v5015_v43 = vld [vmem:[%s6793_s2 + $0x1b8] sm:$0xff]  ;;  %v5022_v44 = vld [vmem:[%s6793_s2 + $0x1a0] sm:$0xff]  ;;  %v5027_v45 = vld [vmem:[%s6793_s2 + $0x1b0] sm:$0xff] }
  0x10   :  { %141 = vmatprep.subr.mxu0 %v51_v28  ;;  %218 = vmatprep.subr.mxu1 %v53_v29  ;;  %v5034_v46 = vld [vmem:[%s6793_s2 + $0x188] sm:$0xff]  ;;  %v5039_v47 = vld [vmem:[%s6793_s2 + $0x198] sm:$0xff]  ;;  %v5046_v48 = vld [vmem:[%s6793_s2 + $0x180] sm:$0xff] }
  0x11   :  { %142 = vmatpush1.msra.mxu0 %v50_v30  ;;  %219 = vmatpush1.msra.mxu1 %v52_v31  ;;  %v5051_v49 = vld [vmem:[%s6793_s2 + $0x190] sm:$0xff]  ;;  %v5058_v50 = vld [vmem:[%s6793_s2 + $0x168] sm:$0xff]  ;;  %v5063_v51 = vld [vmem:[%s6793_s2 + $0x178] sm:$0xff] }
  0x12   :  { %4096 = vmatmul.mubr.msk.f32.vlgmr.msra.gmra.mxu0 %vm104_vm0, %v48_v32  ;;  %329 = vmatprep.subr.mxu0 %v4962_v33  ;;  %v5070_v52 = vld [vmem:[%s6793_s2 + $0x160] sm:$0xff]  ;;  %v5075_v53 = vld [vmem:[%s6793_s2 + $0x170] sm:$0xff]  ;;  %v5082_v54 = vld [vmem:[%s6793_s2 + $0x148] sm:$0xff] }
  0x13   :  { %400 = vmatprep.subr.mxu1 %v4968_v35  ;;  %4098 = vmatmul.mubr.msk.f32.vlgmr.msra.gmra.mxu1 %vm104_vm0, %v48_v32  ;;  %v5087_v55 = vld [vmem:[%s6793_s2 + $0x158] sm:$0xff]  ;;  %v5094_v56 = vld [vmem:[%s6793_s2 + $0x140] sm:$0xff]  ;;  %v5099_v57 = vld [vmem:[%s6793_s2 + $0x150] sm:$0xff] }
  0x14   :  { %330 = vmatpush1.msra.mxu0 %v4974_v36  ;;  %401 = vmatpush1.msra.mxu1 %v4979_v37  ;;  %v5106_v58 = vld [vmem:[%s6793_s2 + $0x128] sm:$0xff]  ;;  %v5111_v59 = vld [vmem:[%s6793_s2 + $0x138] sm:$0xff]  ;;  %v5118_v60 = vld [vmem:[%s6793_s2 + $0x120] sm:$0xff] }
  0x15   :  { %331 = vmatprep.subr.mxu0 %v4986_v38  ;;  %402 = vmatprep.subr.mxu1 %v4991_v39  ;;  %v5123_v61 = vld [vmem:[%s6793_s2 + $0x130] sm:$0xff]  ;;  %v5130_v62 = vld [vmem:[%s6793_s2 + $0x108] sm:$0xff]  ;;  %v5135_v63 = vld [vmem:[%s6793_s2 + $0x118] sm:$0xff] }
  0x16   :  { %332 = vmatpush1.msra.mxu0 %v4998_v40  ;;  %403 = vmatpush1.msra.mxu1 %v5003_v41  ;;  %v5142_v0 = vld [vmem:[%s6793_s2 + $0x100] sm:$0xff]  ;;  %v5147_v1 = vld [vmem:[%s6793_s2 + $0x110] sm:$0xff]  ;;  %v5154_v2 = vld [vmem:[%s6793_s2 + $0xe8] sm:$0xff] }
  0x17   :  { %333 = vmatprep.subr.mxu0 %v5010_v42  ;;  %404 = vmatprep.subr.mxu1 %v5015_v43  ;;  %v5159_v3 = vld [vmem:[%s6793_s2 + $0xf8] sm:$0xff]  ;;  %v5166_v4 = vld [vmem:[%s6793_s2 + $0xe0] sm:$0xff]  ;;  %v5171_v5 = vld [vmem:[%s6793_s2 + $0xf0] sm:$0xff] }
  0x18   :  { %334 = vmatpush1.msra.mxu0 %v5022_v44  ;;  %405 = vmatpush1.msra.mxu1 %v5027_v45 }
  0x19   :  { %335 = vmatprep.subr.mxu0 %v5034_v46  ;;  %406 = vmatprep.subr.mxu1 %v5039_v47 }
  0x1a   :  { %336 = vmatpush1.msra.mxu0 %v5046_v48  ;;  %407 = vmatpush1.msra.mxu1 %v5051_v49 }
  0x1b   :  { %337 = vmatprep.subr.mxu0 %v5058_v50  ;;  %408 = vmatprep.subr.mxu1 %v5063_v51 }
  0x1c   :  { %338 = vmatpush1.msra.mxu0 %v5070_v52  ;;  %409 = vmatpush1.msra.mxu1 %v5075_v53 }
  0x1d   :  { %339 = vmatprep.subr.mxu0 %v5082_v54  ;;  %410 = vmatprep.subr.mxu1 %v5087_v55 }
  0x1e   :  { %340 = vmatpush1.msra.mxu0 %v5094_v56  ;;  %411 = vmatpush1.msra.mxu1 %v5099_v57 }
  0x1f   :  { %341 = vmatprep.subr.mxu0 %v5106_v58  ;;  %412 = vmatprep.subr.mxu1 %v5111_v59 }
  0x20   :  { %342 = vmatpush1.msra.mxu0 %v5118_v60  ;;  %413 = vmatpush1.msra.mxu1 %v5123_v61 }
  0x21   :  { %343 = vmatprep.subr.mxu0 %v5130_v62  ;;  %414 = vmatprep.subr.mxu1 %v5135_v63 }
  0x22   :  { %19 = vsyncpa [#allocation3], 0  ;;  %344 = vmatpush1.msra.mxu0 %v5142_v0  ;;  %415 = vmatpush1.msra.mxu1 %v5147_v1  ;;  %v5178_v6 = vld [vmem:[%s6793_s2 + $0xc8] sm:$0xff]  ;;  %v5183_v7 = vld [vmem:[%s6793_s2 + $0xd8] sm:$0xff]  ;;  %vm4776_vm1 = vmmov 0   ;;  %vm2013_vm2 = vcmask 1041408  }
  0x23   :  { %345 = vmatprep.subr.mxu0 %v5154_v2  ;;  %416 = vmatprep.subr.mxu1 %v5159_v3  ;;  %v5190_v8 = vld [vmem:[%s6793_s2 + $0xc0] sm:$0xff]  ;;  %v5195_v9 = vld [vmem:[%s6793_s2 + $0xd0] sm:$0xff]  ;;  %v5202_v10 = vld [vmem:[%s6793_s2 + $0xa8] sm:$0xff]  ;;  %vm1920_vm3 = vcmask 130048   ;;  %vm1997_vm4 = vcmask 9216   ;;  %s4778_s1 = smov 96  }
  0x24   :  { %346 = vmatpush1.msra.mxu0 %v5166_v4  ;;  %417 = vmatpush1.msra.mxu1 %v5171_v5  ;;  %v5207_v11 = vld [vmem:[%s6793_s2 + $0xb8] sm:$0xff]  ;;  %v5214_v12 = vld [vmem:[%s6793_s2 + $0xa0] sm:$0xff]  ;;  %v5219_v13 = vld [vmem:[%s6793_s2 + $0xb0] sm:$0xff]  ;;  %vm2009_vm5 = vcmask 15360   ;;  %s4780_s25 = smov 64   ;;  %s4782_s18 = smov 32  }
  0x25   :  { %347 = vmatprep.subr.mxu0 %v5178_v6  ;;  %418 = vmatprep.subr.mxu1 %v5183_v7  ;;  %6912 = vst [vmem:[#allocation7_spill] sm:$0xff] %v5214_v12  ;;  %6913 = vst [vmem:[#allocation8_spill] sm:$0xff] %v5219_v13  ;;  %v5226_v14 = vld [vmem:[%s6793_s2 + $0x88] sm:$0xff]  ;;  %v5231_v15 = vld [vmem:[%s6793_s2 + $0x98] sm:$0xff]  ;;  %s4783_s23 = smov 16   ;;  %s4784_s29 = smov [#allocation2]  }
  0x26   :  { %348 = vmatpush1.msra.mxu0 %v5190_v8  ;;  %419 = vmatpush1.msra.mxu1 %v5195_v9  ;;  %6914 = vst [vmem:[#allocation9_spill] sm:$0xff] %v5226_v14  ;;  %6915 = vst [vmem:[#allocation10_spill] sm:$0xff] %v5231_v15  ;;  %v5238_v16 = vld [vmem:[%s6793_s2 + $0x80] sm:$0xff]  ;;  %v5243_v17 = vld [vmem:[%s6793_s2 + $0x90] sm:$0xff]  ;;  %s4088_s30 = sshll.u32 %s4784_s29, 4  ;;  %s4089_s30 = int_to_ptr.vmem [resolvable:$true] %s4088_s30 }
  0x27   :  { %349 = vmatprep.subr.mxu0 %v5202_v10  ;;  %420 = vmatprep.subr.mxu1 %v5207_v11  ;;  %6916 = vst [vmem:[#allocation11_spill] sm:$0xff] %v5238_v16  ;;  %6917 = vst [vmem:[#allocation12_spill] sm:$0xff] %v5243_v17  ;;  %v5250_v18 = vld [vmem:[%s6793_s2 + $0x68] sm:$0xff]  ;;  %v5255_v19 = vld [vmem:[%s6793_s2 + $0x78] sm:$0xff]  ;;  %p4758_p1 = scmp.lt.s32.totalorder %s4089_s30, %s4089_s30 }
  0x28   :  { %350 = vmatpush1.msra.mxu0 %v5214_v12  ;;  %421 = vmatpush1.msra.mxu1 %v5219_v13  ;;  %6918 = vst [vmem:[#allocation13_spill] sm:$0xff] %v5250_v18  ;;  %6919 = vst [vmem:[#allocation14_spill] sm:$0xff] %v5255_v19  ;;  %v5262_v20 = vld [vmem:[%s6793_s2 + $0x60] sm:$0xff]  ;;  %v5269_v21 = vld [vmem:[%s6793_s2 + $0x70] sm:$0xff] }
  0x29   :  { %351 = vmatprep.subr.mxu0 %v5226_v14  ;;  %422 = vmatprep.subr.mxu1 %v5231_v15  ;;  %6920 = vst [vmem:[#allocation15_spill] sm:$0xff] %v5262_v20  ;;  %6921 = vst [vmem:[#allocation16_spill] sm:$0xff] %v5269_v21  ;;  %v49_v22 = vld [vmem:[%s6791_s0 + $0x8] sm:$0xff]  ;;  %v5284_v24 = vld [vmem:[%s6793_s2 + $0x58] sm:$0xff] }
  0x2a   :  { %352 = vmatpush1.msra.mxu0 %v5238_v16  ;;  %423 = vmatpush1.msra.mxu1 %v5243_v17  ;;  %v5279_v23 = vld [vmem:[%s6793_s2 + $0x48] sm:$0xff]  ;;  %6923 = vst [vmem:[#allocation18_spill] sm:$0xff] %v5284_v24  ;;  %v5291_v25 = vld [vmem:[%s6793_s2 + $0x40] sm:$0xff]  ;;  %v5298_v26 = vld [vmem:[%s6793_s2 + $0x50] sm:$0xff] }
  0x2b   :  { %353 = vmatprep.subr.mxu0 %v5250_v18  ;;  %424 = vmatprep.subr.mxu1 %v5255_v19  ;;  %6922 = vst [vmem:[#allocation17_spill] sm:$0xff] %v5279_v23  ;;  %6924 = vst [vmem:[#allocation19_spill] sm:$0xff] %v5291_v25  ;;  %v5303_v27 = vld [vmem:[%s6793_s2 + $0x28] sm:$0xff]  ;;  %v5310_v28 = vld [vmem:[%s6793_s2 + $0x38] sm:$0xff] }
  0x2c   :  { %181 = vmatprep.mubr.f32.mxu0 %v6806_v34  ;;  %354 = vmatpush1.msra.mxu0 %v5262_v20  ;;  %6925 = vst [vmem:[#allocation20_spill] sm:$0xff] %v5298_v26  ;;  %6926 = vst [vmem:[#allocation21_spill] sm:$0xff] %v5303_v27  ;;  %v5317_v29 = vld [vmem:[%s6793_s2 + $0x20] sm:$0xff]  ;;  %v5322_v30 = vld [vmem:[%s6793_s2 + $0x30] sm:$0xff] }
  0x2d   :  { %425 = vmatpush1.msra.mxu1 %v5269_v21  ;;  %4097 = vmatmul.mubr.msk.f32.gmra.mxu0 %vm104_vm0, %v49_v22  ;;  %6927 = vst [vmem:[#allocation22_spill] sm:$0xff] %v5310_v28  ;;  %6928 = vst [vmem:[#allocation23_spill] sm:$0xff] %v5317_v29  ;;  %v5329_v31 = vld [vmem:[%s6793_s2 + $0x8] sm:$0xff]  ;;  %v5334_v32 = vld [vmem:[%s6793_s2 + $0x18] sm:$0xff] }
  0x2e   :  { %355 = vmatprep.subr.mxu0 %v5279_v23  ;;  %426 = vmatprep.subr.mxu1 %v5284_v24  ;;  %6929 = vst [vmem:[#allocation24_spill] sm:$0xff] %v5322_v30  ;;  %6930 = vst [vmem:[#allocation25_spill] sm:$0xff] %v5329_v31 }
  0x2f   :  { %258 = vmatprep.mubr.f32.mxu1 %v6806_v34  ;;  %356 = vmatpush1.msra.mxu0 %v5291_v25  ;;  %6931 = vst [vmem:[#allocation26_spill] sm:$0xff] %v5334_v32  ;;  %v5341_v34 = vld [vmem:[%s6793_s2] sm:$0xff] }
  0x30   :  { %427 = vmatpush1.msra.mxu1 %v5298_v26  ;;  %357 = vmatprep.subr.mxu0 %v5303_v27  ;;  %6932 = vst [vmem:[#allocation27_spill] sm:$0xff] %v5341_v34  ;;  %v5348_v27 = vld [vmem:[%s6793_s2 + $0x10] sm:$0xff] }
  0x31   :  { %4099 = vmatmul.mubr.msk.f32.gmra.mxu1 %vm104_vm0, %v49_v22  ;;  %428 = vmatprep.subr.mxu1 %v5310_v28  ;;  %6933 = vst [vmem:[#allocation28_spill] sm:$0xff] %v5348_v27  ;;  %v6934_v22 = vmov 0.0  }
  0x32   :  { %358 = vmatpush1.msra.mxu0 %v5317_v29  ;;  %429 = vmatpush1.msra.mxu1 %v5322_v30 }
  0x33   :  { %359 = vmatprep.subr.mxu0 %v5329_v31  ;;  %430 = vmatprep.subr.mxu1 %v5334_v32 }
  0x34   :  { %360 = vmatpush1.msra.mxu0 %v5341_v34  ;;  %393 = vmatprep.mubr.f32.mxu0 %v6934_v22 }
  0x35   :  { %431 = vmatpush1.msra.mxu1 %v5348_v27  ;;  %464 = vmatprep.mubr.f32.mxu1 %v6934_v22 }
  0x36   :  { %394 = vmatmul.mubr.f32.vlgmr.msra.gmra.mxu0 %v6934_v22  ;;  %465 = vmatmul.mubr.f32.vlgmr.msra.gmra.mxu1 %v6934_v22 }
  0x37   :  { %507 = vmatprep.subr.mxu0 %v4962_v33  ;;  %578 = vmatprep.subr.mxu1 %v4968_v35 }
  0x38   :  { %508 = vmatpush1.msra.mxu0 %v4974_v36  ;;  %579 = vmatpush1.msra.mxu1 %v4979_v37 }
  0x39   :  { %509 = vmatprep.subr.mxu0 %v4986_v38  ;;  %580 = vmatprep.subr.mxu1 %v4991_v39 }
  0x3a   :  { %510 = vmatpush1.msra.mxu0 %v4998_v40  ;;  %581 = vmatpush1.msra.mxu1 %v5003_v41 }
  0x3b   :  { %511 = vmatprep.subr.mxu0 %v5010_v42  ;;  %582 = vmatprep.subr.mxu1 %v5015_v43 }
  0x3c   :  { %512 = vmatpush1.msra.mxu0 %v5022_v44  ;;  %583 = vmatpush1.msra.mxu1 %v5027_v45 }
  0x3d   :  { %513 = vmatprep.subr.mxu0 %v5034_v46  ;;  %584 = vmatprep.subr.mxu1 %v5039_v47 }
  0x3e   :  { %514 = vmatpush1.msra.mxu0 %v5046_v48  ;;  %585 = vmatpush1.msra.mxu1 %v5051_v49 }
  0x3f   :  { %515 = vmatprep.subr.mxu0 %v5058_v50  ;;  %586 = vmatprep.subr.mxu1 %v5063_v51 }
  0x40   :  { %516 = vmatpush1.msra.mxu0 %v5070_v52  ;;  %587 = vmatpush1.msra.mxu1 %v5075_v53 }
  0x41   :  { %517 = vmatprep.subr.mxu0 %v5082_v54  ;;  %588 = vmatprep.subr.mxu1 %v5087_v55 }
  0x42   :  { %518 = vmatpush1.msra.mxu0 %v5094_v56  ;;  %589 = vmatpush1.msra.mxu1 %v5099_v57 }
  0x43   :  { %519 = vmatprep.subr.mxu0 %v5106_v58  ;;  %590 = vmatprep.subr.mxu1 %v5111_v59 }
  0x44   :  { %520 = vmatpush1.msra.mxu0 %v5118_v60  ;;  %591 = vmatpush1.msra.mxu1 %v5123_v61 }
  0x45   :  { %521 = vmatprep.subr.mxu0 %v5130_v62  ;;  %592 = vmatprep.subr.mxu1 %v5135_v63 }
  0x46   :  { %522 = vmatpush1.msra.mxu0 %v5142_v0  ;;  %593 = vmatpush1.msra.mxu1 %v5147_v1 }
  0x47   :  { %523 = vmatprep.subr.mxu0 %v5154_v2  ;;  %594 = vmatprep.subr.mxu1 %v5159_v3 }
  0x48   :  { %524 = vmatpush1.msra.mxu0 %v5166_v4  ;;  %595 = vmatpush1.msra.mxu1 %v5171_v5 }
  0x49   :  { %525 = vmatprep.subr.mxu0 %v5178_v6  ;;  %596 = vmatprep.subr.mxu1 %v5183_v7 }
  0x4a   :  { %526 = vmatpush1.msra.mxu0 %v5190_v8  ;;  %597 = vmatpush1.msra.mxu1 %v5195_v9 }
  0x4b   :  { %527 = vmatprep.subr.mxu0 %v5202_v10  ;;  %598 = vmatprep.subr.mxu1 %v5207_v11 }
  0x4c   :  { %528 = vmatpush1.msra.mxu0 %v5214_v12  ;;  %599 = vmatpush1.msra.mxu1 %v5219_v13 }
  0x4d   :  { %529 = vmatprep.subr.mxu0 %v5226_v14  ;;  %600 = vmatprep.subr.mxu1 %v5231_v15  ;;  %v6935_v15 = vld [vmem:[#allocation21_spill] sm:$0xff] }
  0x4e   :  { %530 = vmatpush1.msra.mxu0 %v5238_v16  ;;  %601 = vmatpush1.msra.mxu1 %v5243_v17 }
  0x4f   :  { %531 = vmatprep.subr.mxu0 %v5250_v18  ;;  %602 = vmatprep.subr.mxu1 %v5255_v19 }
  0x50   :  { %532 = vmatpush1.msra.mxu0 %v5262_v20  ;;  %603 = vmatpush1.msra.mxu1 %v5269_v21 }
  0x51   :  { %533 = vmatprep.subr.mxu0 %v5279_v23  ;;  %604 = vmatprep.subr.mxu1 %v5284_v24 }
  0x52   :  { %534 = vmatpush1.msra.mxu0 %v5291_v25  ;;  %605 = vmatpush1.msra.mxu1 %v5298_v26 }
  0x53   :  { %535 = vmatprep.subr.mxu0 %v6935_v15  ;;  %606 = vmatprep.subr.mxu1 %v5310_v28  ;;  %v84_v28 = vlaneseq }
  0x54   :  { %536 = vmatpush1.msra.mxu0 %v5317_v29  ;;  %607 = vmatpush1.msra.mxu1 %v5322_v30 }
  0x55   :  { %537 = vmatprep.subr.mxu0 %v5329_v31  ;;  %608 = vmatprep.subr.mxu1 %v5334_v32  ;;  %v5426_v29 = vshrl.u32 %v84_v28, 7 }
  0x56   :  { %538 = vmatpush1.msra.mxu0 %v5341_v34  ;;  %571 = vmatprep.mubr.f32.mxu0 %v6934_v22  ;;  %v82_v34 = vld [vmem:[%s6794_s3] sm:$0xf]  ;;  %s4779_s3 = smov 80  }
  0x57   :  { %609 = vmatpush1.msra.mxu1 %v5348_v27  ;;  %642 = vmatprep.mubr.f32.mxu1 %v6934_v22  ;;  %6936 = vst [vmem:[#allocation29_spill] sm:$0xff] %v5426_v29  ;;  %v6847_v31 = vsub.s32 0, %v5426_v29  ;;  %v6854_v32 = vsub.s32 1, %v5426_v29  ;;  %v98_v26 = vsub.s32 3, %v5426_v29 }
  0x58   :  { %681 = vmatprep.subr.mxu0 %v4962_v33  ;;  %752 = vmatprep.subr.mxu1 %v4968_v35  ;;  %v6860_v33 = vsub.s32 2, %v5426_v29 }
  0x59   :  { %v87_v22 = vrot.slane %v82_v34, %v6847_v31  ;;  %v91_v28 = vrot.slane %v82_v34, %v6854_v32  ;;  %v99_v18 = vrot.slane %v82_v34, %v98_v26 }
  0x5a   :  { %v95_v21 = vrot.slane %v82_v34, %v6860_v33 }
  0xd2   :  { %v177_v30 = vpop.f32.mrf.mxu0 }
  0xd3   :  { %v254_v27 = vpop.f32.mrf.mxu1  ;;  %v5449_v14 = vadd.f32 %v177_v30, %v87_v22 }
  0xd4   :  { %v179_v15 = vpop.f32.mrf.mxu0  ;;  %v5458_v26 = vadd.f32 %v254_v27, %v95_v21 }
  0xd5   :  { %v256_v24 = vpop.f32.mrf.mxu1  ;;  %6941 = vst [vmem:[#allocation34_spill] sm:$0xff] %v5449_v14  ;;  %v5451_v13 = vadd.f32 %v179_v15, %v91_v28 }
  0xed   :  { %v183_v35 = vpop.f32.mrf.mxu0 }
  0xee   :  { %v5439_v25 = vadd.f32 %v183_v35, %v87_v22 }
  0xef   :  { %v185_v23 = vpop.f32.mrf.mxu0 }
  0xf0   :  { %6937 = vst [vmem:[#allocation30_spill] sm:$0xff] %v5439_v25  ;;  %v5443_v20 = vadd.f32 %v185_v23, %v91_v28 }
  0xf1   :  { %v260_v19 = vpop.f32.mrf.mxu1 }
  0xf2   :  { %6938 = vst [vmem:[#allocation31_spill] sm:$0xff] %v5443_v20  ;;  %v5445_v31 = vadd.f32 %v260_v19, %v95_v21  ;;  %v5455_v19 = vadd.f32 %v256_v24, %v99_v18  ;;  %v6960_v20 = vld [vmem:[#allocation25_spill] sm:$0xff] }
  0xf3   :  { %v262_v17 = vpop.f32.mrf.mxu1 }
  0xf4   :  { %6939 = vst [vmem:[#allocation32_spill] sm:$0xff] %v5445_v31  ;;  %v5447_v16 = vadd.f32 %v262_v17, %v99_v18  ;;  %v6958_v31 = vld [vmem:[#allocation23_spill] sm:$0xff] }
  0xf6   :  { %6940 = vst [vmem:[#allocation33_spill] sm:$0xff] %v5447_v16  ;;  %v395_v32 = vpop.f32.mrf.mxu0  ;;  %v466_v23 = vpop.f32.mrf.mxu1  ;;  %v6959_v16 = vld [vmem:[#allocation24_spill] sm:$0xff] }
  0xf7   :  { %v396_v35 = vadd.f32 %v395_v32, %v5449_v14  ;;  %v467_v22 = vadd.f32 %v466_v23, %v5458_v26 }
  0xf8   :  { %v397_v25 = vpop.f32.mrf.mxu0  ;;  %v468_v34 = vpop.f32.mrf.mxu1 }
  0xf9   :  { %v4100_v12 = vmul.f32 -1.442695, %v396_v35  ;;  %v398_v33 = vadd.f32 %v397_v25, %v5451_v13  ;;  %v469_v17 = vadd.f32 %v468_v34, %v5455_v19 }
  0xfb   :  { %4527 = vpow2.f32 %v4100_v12  ;;  %v4101_v29 = vmul.f32 -1.442695, %v398_v33  ;;  %v4102_v30 = vmul.f32 -1.442695, %v469_v17 }
  0xfd   :  { %4529 = vpow2.f32 %v4101_v29 }
  0xfe   :  { %4531 = vpow2.f32 %v4102_v30  ;;  %v6942_v30 = vld [vmem:[#allocation7_spill] sm:$0xff] }
 0x108   :  { %v4528_v15 = vpop.eup %4527 }
 0x109   :  { %v474_v32 = vadd.f32 1.0, %v4528_v15  ;;  %v6943_v15 = vld [vmem:[#allocation8_spill] sm:$0xff] }
 0x10a   :  { %v4530_v28 = vpop.eup %4529 }
 0x10b   :  { %4533 = vrcp.f32 %v474_v32  ;;  %v480_v25 = vadd.f32 1.0, %v4530_v28  ;;  %v4532_v33 = vpop.eup %4531  ;;  %v6945_v32 = vld [vmem:[#allocation10_spill] sm:$0xff]  ;;  %v6946_v28 = vld [vmem:[#allocation11_spill] sm:$0xff] }
 0x10c   :  { %4535 = vtanh.f32 %v467_v22  ;;  %v487_v24 = vadd.f32 1.0, %v4532_v33  ;;  %v6944_v22 = vld [vmem:[#allocation9_spill] sm:$0xff] }
 0x10d   :  { %4537 = vrcp.f32 %v480_v25  ;;  %v6947_v25 = vld [vmem:[#allocation12_spill] sm:$0xff]  ;;  %v6948_v33 = vld [vmem:[#allocation13_spill] sm:$0xff] }
 0x10e   :  { %4539 = vrcp.f32 %v487_v24  ;;  %v6952_v24 = vld [vmem:[#allocation17_spill] sm:$0xff] }
 0x118   :  { %v4534_v12 = vpop.eup %4533 }
 0x119   :  { %v4536_v29 = vpop.eup %4535 }
 0x11a   :  { %v4538_v18 = vpop.eup %4537  ;;  %v491_v34 = vmul.f32 %v4536_v29, %v4534_v12  ;;  %v6949_v12 = vld [vmem:[#allocation14_spill] sm:$0xff]  ;;  %v6950_v29 = vld [vmem:[#allocation15_spill] sm:$0xff] }
 0x11b   :  { %v490_v35 = vmul.f32 0.0, %v4538_v18  ;;  %v4540_v27 = vpop.eup %4539  ;;  %v6951_v18 = vld [vmem:[#allocation16_spill] sm:$0xff] }
 0x11d   :  { %v5461_v21 = vadd.f32 %v491_v34, %v490_v35  ;;  %v6953_v35 = vld [vmem:[#allocation18_spill] sm:$0xff]  ;;  %v6954_v34 = vld [vmem:[#allocation19_spill] sm:$0xff] }
 0x11f   :  { %4541 = vtanh.f32 %v5461_v21 }
 0x12c   :  { %v4542_v23 = vpop.eup %4541 }
 0x12d   :  { %v494_v17 = vmul.f32 %v4542_v23, %v4540_v27  ;;  %v6955_v27 = vld [vmem:[#allocation20_spill] sm:$0xff]  ;;  %v6956_v23 = vld [vmem:[#allocation21_spill] sm:$0xff] }
 0x12f   :  { %572 = vmatmul.mubr.f32.vlgmr.msra.gmra.mxu0 %v494_v17  ;;  %643 = vmatmul.mubr.f32.vlgmr.msra.gmra.mxu1 %v494_v17  ;;  %v6957_v17 = vld [vmem:[#allocation22_spill] sm:$0xff] }
 0x130   :  { %682 = vmatpush1.msra.mxu0 %v4974_v36  ;;  %753 = vmatpush1.msra.mxu1 %v4979_v37 }
 0x131   :  { %683 = vmatprep.subr.mxu0 %v4986_v38  ;;  %754 = vmatprep.subr.mxu1 %v4991_v39 }
 0x132   :  { %684 = vmatpush1.msra.mxu0 %v4998_v40  ;;  %755 = vmatpush1.msra.mxu1 %v5003_v41 }
 0x133   :  { %685 = vmatprep.subr.mxu0 %v5010_v42  ;;  %756 = vmatprep.subr.mxu1 %v5015_v43 }
 0x134   :  { %686 = vmatpush1.msra.mxu0 %v5022_v44  ;;  %757 = vmatpush1.msra.mxu1 %v5027_v45 }
 0x135   :  { %687 = vmatprep.subr.mxu0 %v5034_v46  ;;  %758 = vmatprep.subr.mxu1 %v5039_v47 }
 0x136   :  { %688 = vmatpush1.msra.mxu0 %v5046_v48  ;;  %759 = vmatpush1.msra.mxu1 %v5051_v49 }
 0x137   :  { %689 = vmatprep.subr.mxu0 %v5058_v50  ;;  %760 = vmatprep.subr.mxu1 %v5063_v51 }
 0x138   :  { %690 = vmatpush1.msra.mxu0 %v5070_v52  ;;  %761 = vmatpush1.msra.mxu1 %v5075_v53 }
 0x139   :  { %691 = vmatprep.subr.mxu0 %v5082_v54  ;;  %762 = vmatprep.subr.mxu1 %v5087_v55 }
 0x13a   :  { %692 = vmatpush1.msra.mxu0 %v5094_v56  ;;  %763 = vmatpush1.msra.mxu1 %v5099_v57 }
 0x13b   :  { %693 = vmatprep.subr.mxu0 %v5106_v58  ;;  %764 = vmatprep.subr.mxu1 %v5111_v59 }
 0x13c   :  { %694 = vmatpush1.msra.mxu0 %v5118_v60  ;;  %765 = vmatpush1.msra.mxu1 %v5123_v61 }
 0x13d   :  { %695 = vmatprep.subr.mxu0 %v5130_v62  ;;  %766 = vmatprep.subr.mxu1 %v5135_v63 }
 0x13e   :  { %696 = vmatpush1.msra.mxu0 %v5142_v0  ;;  %767 = vmatpush1.msra.mxu1 %v5147_v1 }
 0x13f   :  { %697 = vmatprep.subr.mxu0 %v5154_v2  ;;  %768 = vmatprep.subr.mxu1 %v5159_v3 }
 0x140   :  { %698 = vmatpush1.msra.mxu0 %v5166_v4  ;;  %769 = vmatpush1.msra.mxu1 %v5171_v5 }
 0x141   :  { %699 = vmatprep.subr.mxu0 %v5178_v6  ;;  %770 = vmatprep.subr.mxu1 %v5183_v7 }
 0x142   :  { %700 = vmatpush1.msra.mxu0 %v5190_v8  ;;  %771 = vmatpush1.msra.mxu1 %v5195_v9 }
 0x143   :  { %701 = vmatprep.subr.mxu0 %v5202_v10  ;;  %772 = vmatprep.subr.mxu1 %v5207_v11 }
 0x144   :  { %702 = vmatpush1.msra.mxu0 %v6942_v30  ;;  %773 = vmatpush1.msra.mxu1 %v6943_v15 }
 0x145   :  { %703 = vmatprep.subr.mxu0 %v6944_v22  ;;  %774 = vmatprep.subr.mxu1 %v6945_v32 }
 0x146   :  { %704 = vmatpush1.msra.mxu0 %v6946_v28  ;;  %775 = vmatpush1.msra.mxu1 %v6947_v25 }
 0x147   :  { %705 = vmatprep.subr.mxu0 %v6948_v33  ;;  %776 = vmatprep.subr.mxu1 %v6949_v12 }
 0x148   :  { %706 = vmatpush1.msra.mxu0 %v6950_v29  ;;  %777 = vmatpush1.msra.mxu1 %v6951_v18  ;;  %v6961_v29 = vld [vmem:[#allocation26_spill] sm:$0xff]  ;;  %v6962_v18 = vld [vmem:[#allocation27_spill] sm:$0xff] }
 0x149   :  { %707 = vmatprep.subr.mxu0 %v6952_v24  ;;  %778 = vmatprep.subr.mxu1 %v6953_v35  ;;  %v6963_v24 = vmov 0.0   ;;  %v6964_v35 = vld [vmem:[#allocation28_spill] sm:$0xff] }
 0x14a   :  { %708 = vmatpush1.msra.mxu0 %v6954_v34  ;;  %779 = vmatpush1.msra.mxu1 %v6955_v27  ;;  %v6965_v27 = vld [vmem:[#allocation5_spill] sm:$0xff] }
 0x14b   :  { %709 = vmatprep.subr.mxu0 %v6956_v23  ;;  %780 = vmatprep.subr.mxu1 %v6957_v17  ;;  %v6966_v23 = vld [vmem:[#allocation6_spill] sm:$0xff] }
 0x14c   :  { %710 = vmatpush1.msra.mxu0 %v6958_v31  ;;  %781 = vmatpush1.msra.mxu1 %v6959_v16  ;;  %v499_v31 = vrot.slane %v5449_v14, 2 }
 0x14d   :  { %711 = vmatprep.subr.mxu0 %v6960_v20  ;;  %782 = vmatprep.subr.mxu1 %v6961_v29  ;;  %v500_v20 = vrot.slane %v5451_v13, 2 }
 0x14e   :  { %712 = vmatpush1.msra.mxu0 %v6962_v18  ;;  %745 = vmatprep.mubr.f32.mxu0 %v6963_v24 }
 0x14f   :  { %783 = vmatpush1.msra.mxu1 %v6964_v35  ;;  %816 = vmatprep.mubr.f32.mxu1 %v6963_v24  ;;  %v502_v24 = vrot.slane %v5455_v19, 2 }
 0x150   :  { %855 = vmatprep.subr.mxu0 %v6965_v27  ;;  %926 = vmatprep.subr.mxu1 %v6966_v23  ;;  %v501_v27 = vrot.slane %v5458_v26, 2 }
 0x1ef   :  { %v573_v17 = vpop.f32.mrf.mxu0  ;;  %v644_v18 = vpop.f32.mrf.mxu1 }
 0x1f0   :  { %v574_v16 = vadd.f32 %v573_v17, %v499_v31  ;;  %v645_v23 = vadd.f32 %v644_v18, %v501_v27  ;;  %v6970_v27 = vld [vmem:[#allocation13_spill] sm:$0xff] }
 0x1f1   :  { %v575_v34 = vpop.f32.mrf.mxu0  ;;  %v646_v35 = vpop.f32.mrf.mxu1 }
 0x1f2   :  { %v4103_v29 = vmul.f32 -1.442695, %v574_v16  ;;  %v576_v12 = vadd.f32 %v575_v34, %v500_v20  ;;  %v647_v25 = vadd.f32 %v646_v35, %v502_v24 }
 0x1f4   :  { %4543 = vpow2.f32 %v4103_v29  ;;  %v4104_v33 = vmul.f32 -1.442695, %v576_v12  ;;  %v4105_v28 = vmul.f32 -1.442695, %v647_v25 }
 0x1f6   :  { %4545 = vpow2.f32 %v4104_v33 }
 0x1f7   :  { %4547 = vtanh.f32 %v645_v23  ;;  %v6971_v23 = vld [vmem:[#allocation14_spill] sm:$0xff] }
 0x1f8   :  { %4549 = vpow2.f32 %v4105_v28  ;;  %v6969_v28 = vld [vmem:[#allocation12_spill] sm:$0xff] }
 0x201   :  { %v4544_v14 = vpop.eup %4543 }
 0x202   :  { %v652_v32 = vadd.f32 1.0, %v4544_v14 }
 0x203   :  { %v4546_v31 = vpop.eup %4545 }
 0x204   :  { %4551 = vrcp.f32 %v652_v32  ;;  %v658_v16 = vadd.f32 1.0, %v4546_v31  ;;  %v4548_v20 = vpop.eup %4547  ;;  %v6968_v32 = vld [vmem:[#allocation11_spill] sm:$0xff] }
 0x205   :  { %v4550_v29 = vpop.eup %4549  ;;  %v6972_v31 = vld [vmem:[#allocation15_spill] sm:$0xff] }
 0x206   :  { %4553 = vrcp.f32 %v658_v16  ;;  %v665_v17 = vadd.f32 1.0, %v4550_v29  ;;  %v6973_v16 = vld [vmem:[#allocation16_spill] sm:$0xff]  ;;  %v6975_v29 = vld [vmem:[#allocation18_spill] sm:$0xff] }
 0x208   :  { %4555 = vrcp.f32 %v665_v17  ;;  %v6979_v17 = vld [vmem:[#allocation22_spill] sm:$0xff] }
 0x211   :  { %v4552_v12 = vpop.eup %4551 }
 0x212   :  { %v669_v33 = vmul.f32 %v4552_v12, %v4548_v20  ;;  %v6974_v20 = vld [vmem:[#allocation17_spill] sm:$0xff]  ;;  %v6976_v12 = vld [vmem:[#allocation19_spill] sm:$0xff] }
 0x213   :  { %v4554_v34 = vpop.eup %4553 }
 0x214   :  { %v668_v24 = vmul.f32 %v4554_v34, %v5461_v21  ;;  %v6967_v21 = vld [vmem:[#allocation10_spill] sm:$0xff]  ;;  %v6978_v34 = vld [vmem:[#allocation21_spill] sm:$0xff] }
 0x215   :  { %v4556_v14 = vpop.eup %4555 }
 0x216   :  { %v5535_v35 = vadd.f32 %v669_v33, %v668_v24  ;;  %v6977_v33 = vld [vmem:[#allocation20_spill] sm:$0xff]  ;;  %v6980_v24 = vld [vmem:[#allocation23_spill] sm:$0xff] }
 0x218   :  { %4557 = vtanh.f32 %v5535_v35 }
 0x225   :  { %v4558_v25 = vpop.eup %4557 }
 0x226   :  { %v672_v18 = vmul.f32 %v4558_v25, %v4556_v14  ;;  %v6981_v14 = vld [vmem:[#allocation24_spill] sm:$0xff]  ;;  %v6982_v25 = vld [vmem:[#allocation25_spill] sm:$0xff] }
 0x228   :  { %746 = vmatmul.mubr.f32.vlgmr.msra.gmra.mxu0 %v672_v18  ;;  %817 = vmatmul.mubr.f32.vlgmr.msra.gmra.mxu1 %v672_v18  ;;  %v6983_v18 = vld [vmem:[#allocation26_spill] sm:$0xff] }
 0x229   :  { %856 = vmatpush1.msra.mxu0 %v4974_v36  ;;  %927 = vmatpush1.msra.mxu1 %v4979_v37 }
 0x22a   :  { %857 = vmatprep.subr.mxu0 %v4986_v38  ;;  %928 = vmatprep.subr.mxu1 %v4991_v39 }
 0x22b   :  { %858 = vmatpush1.msra.mxu0 %v4998_v40  ;;  %929 = vmatpush1.msra.mxu1 %v5003_v41 }
 0x22c   :  { %859 = vmatprep.subr.mxu0 %v5010_v42  ;;  %930 = vmatprep.subr.mxu1 %v5015_v43 }
 0x22d   :  { %860 = vmatpush1.msra.mxu0 %v5022_v44  ;;  %931 = vmatpush1.msra.mxu1 %v5027_v45 }
 0x22e   :  { %861 = vmatprep.subr.mxu0 %v5034_v46  ;;  %932 = vmatprep.subr.mxu1 %v5039_v47 }
 0x22f   :  { %862 = vmatpush1.msra.mxu0 %v5046_v48  ;;  %933 = vmatpush1.msra.mxu1 %v5051_v49 }
 0x230   :  { %863 = vmatprep.subr.mxu0 %v5058_v50  ;;  %934 = vmatprep.subr.mxu1 %v5063_v51 }
 0x231   :  { %864 = vmatpush1.msra.mxu0 %v5070_v52  ;;  %935 = vmatpush1.msra.mxu1 %v5075_v53 }
 0x232   :  { %865 = vmatprep.subr.mxu0 %v5082_v54  ;;  %936 = vmatprep.subr.mxu1 %v5087_v55 }
 0x233   :  { %866 = vmatpush1.msra.mxu0 %v5094_v56  ;;  %937 = vmatpush1.msra.mxu1 %v5099_v57 }
 0x234   :  { %867 = vmatprep.subr.mxu0 %v5106_v58  ;;  %938 = vmatprep.subr.mxu1 %v5111_v59 }
 0x235   :  { %868 = vmatpush1.msra.mxu0 %v5118_v60  ;;  %939 = vmatpush1.msra.mxu1 %v5123_v61 }
 0x236   :  { %869 = vmatprep.subr.mxu0 %v5130_v62  ;;  %940 = vmatprep.subr.mxu1 %v5135_v63 }
 0x237   :  { %870 = vmatpush1.msra.mxu0 %v5142_v0  ;;  %941 = vmatpush1.msra.mxu1 %v5147_v1 }
 0x238   :  { %871 = vmatprep.subr.mxu0 %v5154_v2  ;;  %942 = vmatprep.subr.mxu1 %v5159_v3 }
 0x239   :  { %872 = vmatpush1.msra.mxu0 %v5166_v4  ;;  %943 = vmatpush1.msra.mxu1 %v5171_v5 }
 0x23a   :  { %873 = vmatprep.subr.mxu0 %v5178_v6  ;;  %944 = vmatprep.subr.mxu1 %v5183_v7 }
 0x23b   :  { %874 = vmatpush1.msra.mxu0 %v5190_v8  ;;  %945 = vmatpush1.msra.mxu1 %v5195_v9 }
 0x23c   :  { %875 = vmatprep.subr.mxu0 %v5202_v10  ;;  %946 = vmatprep.subr.mxu1 %v5207_v11 }
 0x23d   :  { %876 = vmatpush1.msra.mxu0 %v6942_v30  ;;  %947 = vmatpush1.msra.mxu1 %v6943_v15 }
 0x23e   :  { %877 = vmatprep.subr.mxu0 %v6944_v22  ;;  %948 = vmatprep.subr.mxu1 %v6967_v21 }
 0x23f   :  { %878 = vmatpush1.msra.mxu0 %v6968_v32  ;;  %949 = vmatpush1.msra.mxu1 %v6969_v28 }
 0x240   :  { %879 = vmatprep.subr.mxu0 %v6970_v27  ;;  %950 = vmatprep.subr.mxu1 %v6971_v23 }
 0x241   :  { %880 = vmatpush1.msra.mxu0 %v6972_v31  ;;  %951 = vmatpush1.msra.mxu1 %v6973_v16  ;;  %v6984_v16 = vld [vmem:[#allocation27_spill] sm:$0xff] }
 0x242   :  { %881 = vmatprep.subr.mxu0 %v6974_v20  ;;  %952 = vmatprep.subr.mxu1 %v6975_v29  ;;  %v6985_v20 = vmov 0.0   ;;  %v6986_v29 = vld [vmem:[#allocation28_spill] sm:$0xff] }
 0x243   :  { %882 = vmatpush1.msra.mxu0 %v6976_v12  ;;  %953 = vmatpush1.msra.mxu1 %v6977_v33  ;;  %v6987_v33 = vld [vmem:[#allocation5_spill] sm:$0xff] }
 0x244   :  { %883 = vmatprep.subr.mxu0 %v6978_v34  ;;  %954 = vmatprep.subr.mxu1 %v6979_v17  ;;  %v6988_v34 = vld [vmem:[#allocation6_spill] sm:$0xff] }
 0x245   :  { %884 = vmatpush1.msra.mxu0 %v6980_v24  ;;  %955 = vmatpush1.msra.mxu1 %v6981_v14  ;;  %v6989_v17 = vld [vmem:[#allocation34_spill] sm:$0xff] }
 0x246   :  { %885 = vmatprep.subr.mxu0 %v6982_v25  ;;  %956 = vmatprep.subr.mxu1 %v6983_v18  ;;  %v673_v24 = vrot.slane %v6989_v17, 4  ;;  %v674_v25 = vrot.slane %v5451_v13, 4 }
 0x247   :  { %886 = vmatpush1.msra.mxu0 %v6984_v16  ;;  %919 = vmatprep.mubr.f32.mxu0 %v6985_v20 }
 0x248   :  { %957 = vmatpush1.msra.mxu1 %v6986_v29  ;;  %990 = vmatprep.mubr.f32.mxu1 %v6985_v20  ;;  %v676_v20 = vrot.slane %v5455_v19, 4 }
 0x249   :  { %1021 = vmatprep.subr.mxu0 %v6987_v33  ;;  %1092 = vmatprep.subr.mxu1 %v6988_v34  ;;  %v675_v33 = vrot.slane %v5458_v26, 4 }
 0x2e8   :  { %v747_v12 = vpop.f32.mrf.mxu0  ;;  %v818_v16 = vpop.f32.mrf.mxu1 }
 0x2e9   :  { %v748_v14 = vadd.f32 %v747_v12, %v673_v24  ;;  %v819_v34 = vadd.f32 %v818_v16, %v675_v33 }
 0x2ea   :  { %v749_v31 = vpop.f32.mrf.mxu0  ;;  %v820_v29 = vpop.f32.mrf.mxu1 }
 0x2eb   :  { %v4106_v18 = vmul.f32 -1.442695, %v748_v14  ;;  %v750_v23 = vadd.f32 %v749_v31, %v674_v25  ;;  %v821_v28 = vadd.f32 %v820_v29, %v676_v20 }
 0x2ed   :  { %4559 = vpow2.f32 %v4106_v18  ;;  %v4107_v27 = vmul.f32 -1.442695, %v750_v23  ;;  %v4108_v32 = vmul.f32 -1.442695, %v821_v28 }
 0x2ef   :  { %4561 = vpow2.f32 %v4107_v27 }
 0x2f0   :  { %4563 = vtanh.f32 %v819_v34 }
 0x2f1   :  { %4565 = vpow2.f32 %v4108_v32 }
 0x2fa   :  { %v4560_v17 = vpop.eup %4559 }
 0x2fb   :  { %v826_v21 = vadd.f32 1.0, %v4560_v17 }
 0x2fc   :  { %v4562_v12 = vpop.eup %4561 }
 0x2fd   :  { %4567 = vrcp.f32 %v826_v21  ;;  %v832_v24 = vadd.f32 1.0, %v4562_v12  ;;  %v4564_v31 = vpop.eup %4563 }
 0x2fe   :  { %v4566_v14 = vpop.eup %4565 }
 0x2ff   :  { %4569 = vrcp.f32 %v832_v24  ;;  %v839_v18 = vadd.f32 1.0, %v4566_v14  ;;  %v5705_v14 = vld [vmem:[%s6793_s2 + $0x1f0] sm:$0xff] }
 0x301   :  { %4571 = vrcp.f32 %v839_v18  ;;  %v5729_v18 = vld [vmem:[%s6793_s2 + $0x1d0] sm:$0xff] }
 0x30a   :  { %v4568_v23 = vpop.eup %4567 }
 0x30b   :  { %v843_v27 = vmul.f32 %v4568_v23, %v4564_v31  ;;  %v5699_v31 = vld [vmem:[%s6793_s2 + $0x1e0] sm:$0xff]  ;;  %v5711_v23 = vld [vmem:[%s6793_s2 + $0x1c8] sm:$0xff] }
 0x30c   :  { %v4570_v25 = vpop.eup %4569 }
 0x30d   :  { %v842_v20 = vmul.f32 %v4570_v25, %v5535_v35  ;;  %v5723_v25 = vld [vmem:[%s6793_s2 + $0x1c0] sm:$0xff] }
 0x30e   :  { %v4572_v28 = vpop.eup %4571 }
 0x30f   :  { %v5609_v29 = vadd.f32 %v843_v27, %v842_v20  ;;  %v5717_v27 = vld [vmem:[%s6793_s2 + $0x1d8] sm:$0xff]  ;;  %v5735_v20 = vld [vmem:[%s6793_s2 + $0x1a8] sm:$0xff] }
 0x311   :  { %4573 = vtanh.f32 %v5609_v29 }
 0x31e   :  { %v4574_v16 = vpop.eup %4573 }
 0x31f   :  { %v846_v17 = vmul.f32 %v4574_v16, %v4572_v28  ;;  %v5747_v28 = vld [vmem:[%s6793_s2 + $0x1a0] sm:$0xff]  ;;  %v5753_v16 = vld [vmem:[%s6793_s2 + $0x1b0] sm:$0xff] }
 0x321   :  { %920 = vmatmul.mubr.f32.vlgmr.msra.gmra.mxu0 %v846_v17  ;;  %991 = vmatmul.mubr.f32.vlgmr.msra.gmra.mxu1 %v846_v17  ;;  %v5759_v17 = vld [vmem:[%s6793_s2 + $0x188] sm:$0xff] }
 0x322   :  { %1022 = vmatpush1.msra.mxu0 %v4974_v36  ;;  %1093 = vmatpush1.msra.mxu1 %v4979_v37  ;;  %v6990_v36 = vld [vmem:[#allocation10_spill] sm:$0xff]  ;;  %v6991_v37 = vld [vmem:[#allocation11_spill] sm:$0xff] }
 0x323   :  { %1023 = vmatprep.subr.mxu0 %v4986_v38  ;;  %1094 = vmatprep.subr.mxu1 %v4991_v39  ;;  %v6992_v38 = vld [vmem:[#allocation12_spill] sm:$0xff]  ;;  %v6993_v39 = vld [vmem:[#allocation13_spill] sm:$0xff] }
 0x324   :  { %1024 = vmatpush1.msra.mxu0 %v4998_v40  ;;  %1095 = vmatpush1.msra.mxu1 %v5003_v41  ;;  %v6994_v40 = vld [vmem:[#allocation14_spill] sm:$0xff]  ;;  %v6995_v41 = vld [vmem:[#allocation15_spill] sm:$0xff] }
 0x325   :  { %1025 = vmatprep.subr.mxu0 %v5010_v42  ;;  %1096 = vmatprep.subr.mxu1 %v5015_v43  ;;  %v6996_v42 = vld [vmem:[#allocation16_spill] sm:$0xff]  ;;  %v6997_v43 = vld [vmem:[#allocation17_spill] sm:$0xff] }
 0x326   :  { %1026 = vmatpush1.msra.mxu0 %v5022_v44  ;;  %1097 = vmatpush1.msra.mxu1 %v5027_v45  ;;  %v6998_v44 = vld [vmem:[#allocation18_spill] sm:$0xff]  ;;  %v6999_v45 = vld [vmem:[#allocation19_spill] sm:$0xff] }
 0x327   :  { %1027 = vmatprep.subr.mxu0 %v5034_v46  ;;  %1098 = vmatprep.subr.mxu1 %v5039_v47  ;;  %v7000_v46 = vld [vmem:[#allocation20_spill] sm:$0xff]  ;;  %v7001_v47 = vld [vmem:[#allocation21_spill] sm:$0xff] }
 0x328   :  { %1028 = vmatpush1.msra.mxu0 %v5046_v48  ;;  %1099 = vmatpush1.msra.mxu1 %v5051_v49  ;;  %v7002_v48 = vld [vmem:[#allocation22_spill] sm:$0xff]  ;;  %v7003_v49 = vld [vmem:[#allocation23_spill] sm:$0xff] }
 0x329   :  { %1029 = vmatprep.subr.mxu0 %v5058_v50  ;;  %1100 = vmatprep.subr.mxu1 %v5063_v51  ;;  %v7004_v50 = vld [vmem:[#allocation24_spill] sm:$0xff]  ;;  %v7005_v51 = vld [vmem:[#allocation25_spill] sm:$0xff] }
 0x32a   :  { %1030 = vmatpush1.msra.mxu0 %v5070_v52  ;;  %1101 = vmatpush1.msra.mxu1 %v5075_v53  ;;  %v7006_v52 = vld [vmem:[#allocation26_spill] sm:$0xff]  ;;  %v7007_v53 = vld [vmem:[#allocation27_spill] sm:$0xff] }
 0x32b   :  { %1031 = vmatprep.subr.mxu0 %v5082_v54  ;;  %1102 = vmatprep.subr.mxu1 %v5087_v55  ;;  %v7008_v54 = vmov 0.0   ;;  %v7009_v55 = vld [vmem:[#allocation28_spill] sm:$0xff] }
 0x32c   :  { %1032 = vmatpush1.msra.mxu0 %v5094_v56  ;;  %1103 = vmatpush1.msra.mxu1 %v5099_v57  ;;  %v5679_v56 = vld [vmem:[%s6793_s2 + $0x1e8] sm:$0xff]  ;;  %v5685_v57 = vld [vmem:[%s6793_s2 + $0x1f8] sm:$0xff] }
 0x32d   :  { %1033 = vmatprep.subr.mxu0 %v5106_v58  ;;  %1104 = vmatprep.subr.mxu1 %v5111_v59  ;;  %7010 = vst [vmem:[#allocation7_spill] sm:$0xff] %v5679_v56  ;;  %7011 = vst [vmem:[#allocation8_spill] sm:$0xff] %v5685_v57  ;;  %v7012_v58 = vld [vmem:[#allocation34_spill] sm:$0xff] }
 0x32e   :  { %1034 = vmatpush1.msra.mxu0 %v5118_v60  ;;  %1105 = vmatpush1.msra.mxu1 %v5123_v61  ;;  %v847_v59 = vrot.slane %v7012_v58, 6  ;;  %v5879_v58 = vld [vmem:[%s6793_s2 + $0xe8] sm:$0xff] }
 0x32f   :  { %1035 = vmatprep.subr.mxu0 %v5130_v62  ;;  %1106 = vmatprep.subr.mxu1 %v5135_v63  ;;  %v848_v62 = vrot.slane %v5451_v13, 6 }
 0x330   :  { %1036 = vmatpush1.msra.mxu0 %v5142_v0  ;;  %1107 = vmatpush1.msra.mxu1 %v5147_v1 }
 0x331   :  { %1037 = vmatprep.subr.mxu0 %v5154_v2  ;;  %1108 = vmatprep.subr.mxu1 %v5159_v3 }
 0x332   :  { %1038 = vmatpush1.msra.mxu0 %v5166_v4  ;;  %1109 = vmatpush1.msra.mxu1 %v5171_v5  ;;  %v850_v5 = vrot.slane %v5455_v19, 6 }
 0x333   :  { %1039 = vmatprep.subr.mxu0 %v5178_v6  ;;  %1110 = vmatprep.subr.mxu1 %v5183_v7  ;;  %v849_v7 = vrot.slane %v5458_v26, 6 }
 0x334   :  { %1040 = vmatpush1.msra.mxu0 %v5190_v8  ;;  %1111 = vmatpush1.msra.mxu1 %v5195_v9 }
 0x335   :  { %1041 = vmatprep.subr.mxu0 %v5202_v10  ;;  %1112 = vmatprep.subr.mxu1 %v5207_v11 }
 0x336   :  { %1042 = vmatpush1.msra.mxu0 %v6942_v30  ;;  %1113 = vmatpush1.msra.mxu1 %v6943_v15 }
 0x337   :  { %1043 = vmatprep.subr.mxu0 %v6944_v22  ;;  %1114 = vmatprep.subr.mxu1 %v6990_v36  ;;  %v5765_v36 = vld [vmem:[%s6793_s2 + $0x198] sm:$0xff] }
 0x338   :  { %1044 = vmatpush1.msra.mxu0 %v6991_v37  ;;  %1115 = vmatpush1.msra.mxu1 %v6992_v38  ;;  %v5771_v37 = vld [vmem:[%s6793_s2 + $0x180] sm:$0xff]  ;;  %v5777_v38 = vld [vmem:[%s6793_s2 + $0x190] sm:$0xff] }
 0x339   :  { %1045 = vmatprep.subr.mxu0 %v6993_v39  ;;  %1116 = vmatprep.subr.mxu1 %v6994_v40  ;;  %v5783_v39 = vld [vmem:[%s6793_s2 + $0x168] sm:$0xff]  ;;  %v5789_v40 = vld [vmem:[%s6793_s2 + $0x178] sm:$0xff] }
 0x33a   :  { %1046 = vmatpush1.msra.mxu0 %v6995_v41  ;;  %1117 = vmatpush1.msra.mxu1 %v6996_v42  ;;  %v5795_v41 = vld [vmem:[%s6793_s2 + $0x160] sm:$0xff]  ;;  %v5801_v42 = vld [vmem:[%s6793_s2 + $0x170] sm:$0xff] }
 0x33b   :  { %1047 = vmatprep.subr.mxu0 %v6997_v43  ;;  %1118 = vmatprep.subr.mxu1 %v6998_v44  ;;  %v5807_v43 = vld [vmem:[%s6793_s2 + $0x148] sm:$0xff]  ;;  %v5813_v44 = vld [vmem:[%s6793_s2 + $0x158] sm:$0xff] }
 0x33c   :  { %1048 = vmatpush1.msra.mxu0 %v6999_v45  ;;  %1119 = vmatpush1.msra.mxu1 %v7000_v46  ;;  %v5819_v45 = vld [vmem:[%s6793_s2 + $0x140] sm:$0xff]  ;;  %v5825_v46 = vld [vmem:[%s6793_s2 + $0x150] sm:$0xff] }
 0x33d   :  { %1049 = vmatprep.subr.mxu0 %v7001_v47  ;;  %1120 = vmatprep.subr.mxu1 %v7002_v48  ;;  %v5831_v47 = vld [vmem:[%s6793_s2 + $0x128] sm:$0xff]  ;;  %v5837_v48 = vld [vmem:[%s6793_s2 + $0x138] sm:$0xff] }
 0x33e   :  { %1050 = vmatpush1.msra.mxu0 %v7003_v49  ;;  %1121 = vmatpush1.msra.mxu1 %v7004_v50  ;;  %v5843_v49 = vld [vmem:[%s6793_s2 + $0x120] sm:$0xff]  ;;  %v5849_v50 = vld [vmem:[%s6793_s2 + $0x130] sm:$0xff] }
 0x33f   :  { %1051 = vmatprep.subr.mxu0 %v7005_v51  ;;  %1122 = vmatprep.subr.mxu1 %v7006_v52  ;;  %v5855_v51 = vld [vmem:[%s6793_s2 + $0x108] sm:$0xff]  ;;  %v5861_v52 = vld [vmem:[%s6793_s2 + $0x118] sm:$0xff] }
 0x340   :  { %1052 = vmatpush1.msra.mxu0 %v7007_v53  ;;  %1085 = vmatprep.mubr.f32.mxu0 %v7008_v54  ;;  %v5867_v53 = vld [vmem:[%s6793_s2 + $0x100] sm:$0xff] }
 0x341   :  { %1123 = vmatpush1.msra.mxu1 %v7009_v55  ;;  %1156 = vmatprep.mubr.f32.mxu1 %v7008_v54  ;;  %v5873_v55 = vld [vmem:[%s6793_s2 + $0x110] sm:$0xff] }
 0x342   :  { %1199 = vmatprep.subr.mxu0 %v5679_v56  ;;  %1270 = vmatprep.subr.mxu1 %v5685_v57 }
 0x3e1   :  { %v921_v60 = vpop.f32.mrf.mxu0  ;;  %v992_v2 = vpop.f32.mrf.mxu1 }
 0x3e2   :  { %v922_v61 = vadd.f32 %v921_v60, %v847_v59  ;;  %v993_v8 = vadd.f32 %v992_v2, %v849_v7  ;;  %v5885_v59 = vld [vmem:[%s6793_s2 + $0xf8] sm:$0xff]  ;;  %v5891_v60 = vld [vmem:[%s6793_s2 + $0xe0] sm:$0xff]  ;;  %v5927_v2 = vld [vmem:[%s6793_s2 + $0xa8] sm:$0xff] }
 0x3e3   :  { %v923_v63 = vpop.f32.mrf.mxu0  ;;  %v994_v4 = vpop.f32.mrf.mxu1  ;;  %v5957_v7 = vld [vmem:[%s6793_s2 + $0x98] sm:$0xff] }
 0x3e4   :  { %v4109_v0 = vmul.f32 -1.442695, %v922_v61  ;;  %v924_v1 = vadd.f32 %v923_v63, %v848_v62  ;;  %v995_v6 = vadd.f32 %v994_v4, %v850_v5  ;;  %v5897_v61 = vld [vmem:[%s6793_s2 + $0xf0] sm:$0xff]  ;;  %v5903_v62 = vld [vmem:[%s6793_s2 + $0xc8] sm:$0xff]  ;;  %v5909_v63 = vld [vmem:[%s6793_s2 + $0xd8] sm:$0xff]  ;;  %7013 = vst [vmem:[#allocation9_spill] sm:$0xff] %v5957_v7 }
 0x3e5   :  { %v5939_v4 = vld [vmem:[%s6793_s2 + $0xa0] sm:$0xff]  ;;  %v5945_v5 = vld [vmem:[%s6793_s2 + $0xb0] sm:$0xff] }
 0x3e6   :  { %4575 = vpow2.f32 %v4109_v0  ;;  %v4110_v3 = vmul.f32 -1.442695, %v924_v1  ;;  %v4111_v9 = vmul.f32 -1.442695, %v995_v6  ;;  %v5915_v0 = vld [vmem:[%s6793_s2 + $0xc0] sm:$0xff]  ;;  %v5921_v1 = vld [vmem:[%s6793_s2 + $0xd0] sm:$0xff] }
 0x3e7   :  { %v5951_v6 = vld [vmem:[%s6793_s2 + $0x88] sm:$0xff] }
 0x3e8   :  { %4577 = vpow2.f32 %v4110_v3  ;;  %v5933_v3 = vld [vmem:[%s6793_s2 + $0xb8] sm:$0xff] }
 0x3e9   :  { %4579 = vtanh.f32 %v993_v8  ;;  %v5963_v8 = vld [vmem:[%s6793_s2 + $0x80] sm:$0xff] }
 0x3ea   :  { %4581 = vpow2.f32 %v4111_v9  ;;  %7014 = vst [vmem:[#allocation5_spill] sm:$0xff] %v5963_v8  ;;  %v5969_v9 = vld [vmem:[%s6793_s2 + $0x90] sm:$0xff] }
 0x3eb   :  { %7015 = vst [vmem:[#allocation6_spill] sm:$0xff] %v5969_v9 }
 0x3f3   :  { %v4576_v10 = vpop.eup %4575 }
 0x3f4   :  { %v1000_v11 = vadd.f32 1.0, %v4576_v10  ;;  %v5975_v10 = vld [vmem:[%s6793_s2 + $0x68] sm:$0xff] }
 0x3f5   :  { %v4578_v30 = vpop.eup %4577  ;;  %7016 = vst [vmem:[#allocation10_spill] sm:$0xff] %v5975_v10 }
 0x3f6   :  { %4583 = vrcp.f32 %v1000_v11  ;;  %v1006_v13 = vadd.f32 1.0, %v4578_v30  ;;  %v4580_v15 = vpop.eup %4579  ;;  %v5981_v11 = vld [vmem:[%s6793_s2 + $0x78] sm:$0xff]  ;;  %v5987_v30 = vld [vmem:[%s6793_s2 + $0x60] sm:$0xff] }
 0x3f7   :  { %v4582_v22 = vpop.eup %4581  ;;  %7017 = vst [vmem:[#allocation11_spill] sm:$0xff] %v5981_v11  ;;  %7018 = vst [vmem:[#allocation12_spill] sm:$0xff] %v5987_v30 }
 0x3f8   :  { %4585 = vrcp.f32 %v1006_v13  ;;  %v1013_v33 = vadd.f32 1.0, %v4582_v22  ;;  %v5993_v13 = vld [vmem:[%s6793_s2 + $0x70] sm:$0xff]  ;;  %v6005_v22 = vld [vmem:[%s6793_s2 + $0x58] sm:$0xff] }
 0x3f9   :  { %7019 = vst [vmem:[#allocation13_spill] sm:$0xff] %v5993_v13  ;;  %7021 = vst [vmem:[#allocation15_spill] sm:$0xff] %v6005_v22 }
 0x3fa   :  { %4587 = vrcp.f32 %v1013_v33  ;;  %v6029_v33 = vld [vmem:[%s6793_s2 + $0x38] sm:$0xff] }
 0x3fb   :  { %7025 = vst [vmem:[#allocation19_spill] sm:$0xff] %v6029_v33 }
 0x403   :  { %v4584_v35 = vpop.eup %4583 }
 0x404   :  { %v1017_v21 = vmul.f32 %v4584_v35, %v4580_v15  ;;  %v5999_v15 = vld [vmem:[%s6793_s2 + $0x48] sm:$0xff]  ;;  %v6011_v35 = vld [vmem:[%s6793_s2 + $0x40] sm:$0xff] }
 0x405   :  { %v4586_v32 = vpop.eup %4585  ;;  %7020 = vst [vmem:[#allocation14_spill] sm:$0xff] %v5999_v15  ;;  %7022 = vst [vmem:[#allocation16_spill] sm:$0xff] %v6011_v35 }
 0x406   :  { %v1016_v19 = vmul.f32 %v4586_v32, %v5609_v29  ;;  %v5741_v29 = vld [vmem:[%s6793_s2 + $0x1b8] sm:$0xff]  ;;  %v6023_v32 = vld [vmem:[%s6793_s2 + $0x28] sm:$0xff] }
 0x407   :  { %v4588_v26 = vpop.eup %4587  ;;  %7024 = vst [vmem:[#allocation18_spill] sm:$0xff] %v6023_v32 }
 0x408   :  { %v5693_v34 = vadd.f32 %v1017_v21, %v1016_v19  ;;  %v6017_v21 = vld [vmem:[%s6793_s2 + $0x50] sm:$0xff]  ;;  %v6035_v19 = vld [vmem:[%s6793_s2 + $0x20] sm:$0xff] }
 0x409   :  { %7023 = vst [vmem:[#allocation17_spill] sm:$0xff] %v6017_v21  ;;  %7026 = vst [vmem:[#allocation20_spill] sm:$0xff] %v6035_v19 }
 0x40a   :  { %4589 = vtanh.f32 %v5693_v34 }
 0x417   :  { %v4590_v12 = vpop.eup %4589 }
 0x418   :  { %v1020_v24 = vmul.f32 %v4590_v12, %v4588_v26  ;;  %v6041_v26 = vld [vmem:[%s6793_s2 + $0x30] sm:$0xff]  ;;  %v6047_v12 = vld [vmem:[%s6793_s2 + $0x8] sm:$0xff] }
 0x419   :  { %7027 = vst [vmem:[#allocation21_spill] sm:$0xff] %v6041_v26  ;;  %7028 = vst [vmem:[#allocation22_spill] sm:$0xff] %v6047_v12 }
 0x41a   :  { %1086 = vmatmul.mubr.f32.vlgmr.msra.gmra.mxu0 %v1020_v24  ;;  %1157 = vmatmul.mubr.f32.vlgmr.msra.gmra.mxu1 %v1020_v24  ;;  %v6053_v24 = vld [vmem:[%s6793_s2 + $0x18] sm:$0xff] }
 0x41b   :  { %1200 = vmatpush1.msra.mxu0 %v5699_v31  ;;  %1271 = vmatpush1.msra.mxu1 %v5705_v14  ;;  %7029 = vst [vmem:[#allocation23_spill] sm:$0xff] %v6053_v24 }
 0x41c   :  { %1201 = vmatprep.subr.mxu0 %v5711_v23  ;;  %1272 = vmatprep.subr.mxu1 %v5717_v27 }
 0x41d   :  { %1202 = vmatpush1.msra.mxu0 %v5723_v25  ;;  %1273 = vmatpush1.msra.mxu1 %v5729_v18 }
 0x41e   :  { %1203 = vmatprep.subr.mxu0 %v5735_v20  ;;  %1274 = vmatprep.subr.mxu1 %v5741_v29 }
 0x41f   :  { %1204 = vmatpush1.msra.mxu0 %v5747_v28  ;;  %1275 = vmatpush1.msra.mxu1 %v5753_v16 }
 0x420   :  { %1205 = vmatprep.subr.mxu0 %v5759_v17  ;;  %1276 = vmatprep.subr.mxu1 %v5765_v36 }
 0x421   :  { %1206 = vmatpush1.msra.mxu0 %v5771_v37  ;;  %1277 = vmatpush1.msra.mxu1 %v5777_v38 }
 0x422   :  { %1207 = vmatprep.subr.mxu0 %v5783_v39  ;;  %1278 = vmatprep.subr.mxu1 %v5789_v40 }
 0x423   :  { %1208 = vmatpush1.msra.mxu0 %v5795_v41  ;;  %1279 = vmatpush1.msra.mxu1 %v5801_v42 }
 0x424   :  { %1209 = vmatprep.subr.mxu0 %v5807_v43  ;;  %1280 = vmatprep.subr.mxu1 %v5813_v44 }
 0x425   :  { %1210 = vmatpush1.msra.mxu0 %v5819_v45  ;;  %1281 = vmatpush1.msra.mxu1 %v5825_v46 }
 0x426   :  { %1211 = vmatprep.subr.mxu0 %v5831_v47  ;;  %1282 = vmatprep.subr.mxu1 %v5837_v48 }
 0x427   :  { %1212 = vmatpush1.msra.mxu0 %v5843_v49  ;;  %1283 = vmatpush1.msra.mxu1 %v5849_v50 }
 0x428   :  { %1213 = vmatprep.subr.mxu0 %v5855_v51  ;;  %1284 = vmatprep.subr.mxu1 %v5861_v52 }
 0x429   :  { %1214 = vmatpush1.msra.mxu0 %v5867_v53  ;;  %1285 = vmatpush1.msra.mxu1 %v5873_v55 }
 0x42a   :  { %1215 = vmatprep.subr.mxu0 %v5879_v58  ;;  %1286 = vmatprep.subr.mxu1 %v5885_v59 }
 0x42b   :  { %1216 = vmatpush1.msra.mxu0 %v5891_v60  ;;  %1287 = vmatpush1.msra.mxu1 %v5897_v61 }
 0x42c   :  { %1217 = vmatprep.subr.mxu0 %v5903_v62  ;;  %1288 = vmatprep.subr.mxu1 %v5909_v63 }
 0x42d   :  { %1218 = vmatpush1.msra.mxu0 %v5915_v0  ;;  %1289 = vmatpush1.msra.mxu1 %v5921_v1 }
 0x42e   :  { %1219 = vmatprep.subr.mxu0 %v5927_v2  ;;  %1290 = vmatprep.subr.mxu1 %v5933_v3 }
 0x42f   :  { %1220 = vmatpush1.msra.mxu0 %v5939_v4  ;;  %1291 = vmatpush1.msra.mxu1 %v5945_v5 }
 0x430   :  { %1221 = vmatprep.subr.mxu0 %v5951_v6  ;;  %1292 = vmatprep.subr.mxu1 %v5957_v7 }
 0x431   :  { %1222 = vmatpush1.msra.mxu0 %v5963_v8  ;;  %1293 = vmatpush1.msra.mxu1 %v5969_v9 }
 0x432   :  { %1223 = vmatprep.subr.mxu0 %v5975_v10  ;;  %1294 = vmatprep.subr.mxu1 %v5981_v11  ;;  %v7035_v10 = vld [vmem:[#allocation32_spill] sm:$0xff] }
 0x433   :  { %1224 = vmatpush1.msra.mxu0 %v5987_v30  ;;  %1295 = vmatpush1.msra.mxu1 %v5993_v13  ;;  %v7034_v30 = vld [vmem:[#allocation33_spill] sm:$0xff] }
 0x434   :  { %1225 = vmatprep.subr.mxu0 %v5999_v15  ;;  %1296 = vmatprep.subr.mxu1 %v6005_v22 }
 0x435   :  { %1226 = vmatpush1.msra.mxu0 %v6011_v35  ;;  %1297 = vmatpush1.msra.mxu1 %v6017_v21  ;;  %v7033_v21 = vld [vmem:[#allocation31_spill] sm:$0xff] }
 0x436   :  { %1227 = vmatprep.subr.mxu0 %v6023_v32  ;;  %1298 = vmatprep.subr.mxu1 %v6029_v33 }
 0x437   :  { %1228 = vmatpush1.msra.mxu0 %v6035_v19  ;;  %1299 = vmatpush1.msra.mxu1 %v6041_v26  ;;  %v6059_v19 = vld [vmem:[%s6793_s2] sm:$0xff]  ;;  %v7032_v26 = vld [vmem:[#allocation30_spill] sm:$0xff] }
 0x438   :  { %1229 = vmatprep.subr.mxu0 %v6047_v12  ;;  %1300 = vmatprep.subr.mxu1 %v6053_v24  ;;  %7030 = vst [vmem:[#allocation24_spill] sm:$0xff] %v6059_v19  ;;  %v6066_v12 = vld [vmem:[%s6793_s2 + $0x10] sm:$0xff] }
 0x439   :  { %1230 = vmatpush1.msra.mxu0 %v6059_v19  ;;  %1263 = vmatprep.mubr.f32.mxu0 %v7008_v54  ;;  %7031 = vst [vmem:[#allocation25_spill] sm:$0xff] %v6066_v12 }
 0x43a   :  { %1301 = vmatpush1.msra.mxu1 %v6066_v12  ;;  %1334 = vmatprep.mubr.f32.mxu1 %v7008_v54 }
 0x43b   :  { %1373 = vmatprep.subr.mxu0 %v5679_v56  ;;  %1444 = vmatprep.subr.mxu1 %v5685_v57 }
 0x4da   :  { %v1087_v24 = vpop.f32.mrf.mxu0  ;;  %v1158_v22 = vpop.f32.mrf.mxu1 }
 0x4db   :  { %v1088_v33 = vadd.f32 %v1087_v24, %v7032_v26  ;;  %v1159_v56 = vadd.f32 %v1158_v22, %v7035_v10 }
 0x4dc   :  { %v1089_v32 = vpop.f32.mrf.mxu0  ;;  %v1160_v13 = vpop.f32.mrf.mxu1 }
 0x4dd   :  { %v4112_v19 = vmul.f32 -1.442695, %v1088_v33  ;;  %v1090_v35 = vadd.f32 %v1089_v32, %v7033_v21  ;;  %v1161_v12 = vadd.f32 %v1160_v13, %v7034_v30 }
 0x4df   :  { %4591 = vpow2.f32 %v4112_v19  ;;  %v4113_v15 = vmul.f32 -1.442695, %v1090_v35  ;;  %v4114_v11 = vmul.f32 -1.442695, %v1161_v12  ;;  %v7042_v12 = vld [vmem:[#allocation15_spill] sm:$0xff] }
 0x4e1   :  { %4593 = vpow2.f32 %v4113_v15 }
 0x4e2   :  { %4595 = vpow2.f32 %v4114_v11 }
 0x4ec   :  { %v4592_v54 = vpop.eup %4591 }
 0x4ed   :  { %v1166_v9 = vadd.f32 1.0, %v4592_v54 }
 0x4ee   :  { %v4594_v57 = vpop.eup %4593 }
 0x4ef   :  { %4597 = vrcp.f32 %v1166_v9  ;;  %v1172_v24 = vadd.f32 1.0, %v4594_v57  ;;  %v4596_v33 = vpop.eup %4595  ;;  %v7037_v57 = vld [vmem:[#allocation10_spill] sm:$0xff]  ;;  %v7039_v9 = vld [vmem:[#allocation12_spill] sm:$0xff] }
 0x4f0   :  { %4599 = vtanh.f32 %v1159_v56  ;;  %v1179_v35 = vadd.f32 1.0, %v4596_v33  ;;  %v7036_v56 = vld [vmem:[#allocation6_spill] sm:$0xff]  ;;  %v7044_v33 = vld [vmem:[#allocation17_spill] sm:$0xff] }
 0x4f1   :  { %4601 = vrcp.f32 %v1172_v24  ;;  %v7043_v24 = vld [vmem:[#allocation16_spill] sm:$0xff] }
 0x4f2   :  { %4603 = vrcp.f32 %v1179_v35  ;;  %v7047_v35 = vld [vmem:[#allocation20_spill] sm:$0xff] }
 0x4fc   :  { %v4598_v32 = vpop.eup %4597 }
 0x4fd   :  { %v4600_v19 = vpop.eup %4599 }
 0x4fe   :  { %v4602_v21 = vpop.eup %4601  ;;  %v1183_v15 = vmul.f32 %v4600_v19, %v4598_v32  ;;  %v7045_v32 = vld [vmem:[#allocation18_spill] sm:$0xff]  ;;  %v7046_v19 = vld [vmem:[#allocation19_spill] sm:$0xff] }
 0x4ff   :  { %v1182_v26 = vmul.f32 %v4602_v21, %v5693_v34  ;;  %v4604_v54 = vpop.eup %4603  ;;  %v7038_v34 = vld [vmem:[#allocation11_spill] sm:$0xff]  ;;  %v7040_v21 = vld [vmem:[#allocation13_spill] sm:$0xff] }
 0x501   :  { %v6077_v13 = vadd.f32 %v1183_v15, %v1182_v26  ;;  %v7041_v26 = vld [vmem:[#allocation14_spill] sm:$0xff]  ;;  %v7048_v15 = vld [vmem:[#allocation21_spill] sm:$0xff] }
 0x503   :  { %4605 = vtanh.f32 %v6077_v13 }
 0x510   :  { %v4606_v22 = vpop.eup %4605 }
 0x511   :  { %v1186_v11 = vmul.f32 %v4606_v22, %v4604_v54  ;;  %v7049_v54 = vld [vmem:[#allocation22_spill] sm:$0xff]  ;;  %v7050_v22 = vld [vmem:[#allocation23_spill] sm:$0xff] }
 0x513   :  { %1264 = vmatmul.mubr.f32.vlgmr.msra.gmra.mxu0 %v1186_v11  ;;  %1335 = vmatmul.mubr.f32.vlgmr.msra.gmra.mxu1 %v1186_v11  ;;  %v7051_v11 = vld [vmem:[#allocation24_spill] sm:$0xff] }
 0x514   :  { %1374 = vmatpush1.msra.mxu0 %v5699_v31  ;;  %1445 = vmatpush1.msra.mxu1 %v5705_v14 }
 0x515   :  { %1375 = vmatprep.subr.mxu0 %v5711_v23  ;;  %1446 = vmatprep.subr.mxu1 %v5717_v27 }
 0x516   :  { %1376 = vmatpush1.msra.mxu0 %v5723_v25  ;;  %1447 = vmatpush1.msra.mxu1 %v5729_v18 }
 0x517   :  { %1377 = vmatprep.subr.mxu0 %v5735_v20  ;;  %1448 = vmatprep.subr.mxu1 %v5741_v29 }
 0x518   :  { %1378 = vmatpush1.msra.mxu0 %v5747_v28  ;;  %1449 = vmatpush1.msra.mxu1 %v5753_v16 }
 0x519   :  { %1379 = vmatprep.subr.mxu0 %v5759_v17  ;;  %1450 = vmatprep.subr.mxu1 %v5765_v36 }
 0x51a   :  { %1380 = vmatpush1.msra.mxu0 %v5771_v37  ;;  %1451 = vmatpush1.msra.mxu1 %v5777_v38 }
 0x51b   :  { %1381 = vmatprep.subr.mxu0 %v5783_v39  ;;  %1452 = vmatprep.subr.mxu1 %v5789_v40 }
 0x51c   :  { %1382 = vmatpush1.msra.mxu0 %v5795_v41  ;;  %1453 = vmatpush1.msra.mxu1 %v5801_v42 }
 0x51d   :  { %1383 = vmatprep.subr.mxu0 %v5807_v43  ;;  %1454 = vmatprep.subr.mxu1 %v5813_v44 }
 0x51e   :  { %1384 = vmatpush1.msra.mxu0 %v5819_v45  ;;  %1455 = vmatpush1.msra.mxu1 %v5825_v46 }
 0x51f   :  { %1385 = vmatprep.subr.mxu0 %v5831_v47  ;;  %1456 = vmatprep.subr.mxu1 %v5837_v48 }
 0x520   :  { %1386 = vmatpush1.msra.mxu0 %v5843_v49  ;;  %1457 = vmatpush1.msra.mxu1 %v5849_v50 }
 0x521   :  { %1387 = vmatprep.subr.mxu0 %v5855_v51  ;;  %1458 = vmatprep.subr.mxu1 %v5861_v52 }
 0x522   :  { %1388 = vmatpush1.msra.mxu0 %v5867_v53  ;;  %1459 = vmatpush1.msra.mxu1 %v5873_v55 }
 0x523   :  { %1389 = vmatprep.subr.mxu0 %v5879_v58  ;;  %1460 = vmatprep.subr.mxu1 %v5885_v59 }
 0x524   :  { %1390 = vmatpush1.msra.mxu0 %v5891_v60  ;;  %1461 = vmatpush1.msra.mxu1 %v5897_v61 }
 0x525   :  { %1391 = vmatprep.subr.mxu0 %v5903_v62  ;;  %1462 = vmatprep.subr.mxu1 %v5909_v63 }
 0x526   :  { %1392 = vmatpush1.msra.mxu0 %v5915_v0  ;;  %1463 = vmatpush1.msra.mxu1 %v5921_v1 }
 0x527   :  { %1393 = vmatprep.subr.mxu0 %v5927_v2  ;;  %1464 = vmatprep.subr.mxu1 %v5933_v3 }
 0x528   :  { %1394 = vmatpush1.msra.mxu0 %v5939_v4  ;;  %1465 = vmatpush1.msra.mxu1 %v5945_v5 }
 0x529   :  { %1395 = vmatprep.subr.mxu0 %v5951_v6  ;;  %1466 = vmatprep.subr.mxu1 %v5957_v7 }
 0x52a   :  { %1396 = vmatpush1.msra.mxu0 %v5963_v8  ;;  %1467 = vmatpush1.msra.mxu1 %v7036_v56 }
 0x52b   :  { %1397 = vmatprep.subr.mxu0 %v7037_v57  ;;  %1468 = vmatprep.subr.mxu1 %v7038_v34 }
 0x52c   :  { %1398 = vmatpush1.msra.mxu0 %v7039_v9  ;;  %1469 = vmatpush1.msra.mxu1 %v7040_v21  ;;  %v7057_v21 = vld [vmem:[#allocation31_spill] sm:$0xff] }
 0x52d   :  { %1399 = vmatprep.subr.mxu0 %v7041_v26  ;;  %1470 = vmatprep.subr.mxu1 %v7042_v12  ;;  %v7052_v26 = vmov 0.0   ;;  %v7053_v12 = vld [vmem:[#allocation25_spill] sm:$0xff] }
 0x52e   :  { %1400 = vmatpush1.msra.mxu0 %v7043_v24  ;;  %1471 = vmatpush1.msra.mxu1 %v7044_v33  ;;  %v7054_v33 = vld [vmem:[#allocation7_spill] sm:$0xff] }
 0x52f   :  { %1401 = vmatprep.subr.mxu0 %v7045_v32  ;;  %1472 = vmatprep.subr.mxu1 %v7046_v19  ;;  %v7055_v32 = vld [vmem:[#allocation8_spill] sm:$0xff]  ;;  %v7056_v19 = vld [vmem:[#allocation30_spill] sm:$0xff] }
 0x530   :  { %1402 = vmatpush1.msra.mxu0 %v7047_v35  ;;  %1473 = vmatpush1.msra.mxu1 %v7048_v15  ;;  %v1191_v35 = vrot.slane %v7056_v19, 2 }
 0x531   :  { %1403 = vmatprep.subr.mxu0 %v7049_v54  ;;  %1474 = vmatprep.subr.mxu1 %v7050_v22  ;;  %v1192_v54 = vrot.slane %v7057_v21, 2 }
 0x532   :  { %1404 = vmatpush1.msra.mxu0 %v7051_v11  ;;  %1437 = vmatprep.mubr.f32.mxu0 %v7052_v26 }
 0x533   :  { %1475 = vmatpush1.msra.mxu1 %v7053_v12  ;;  %1508 = vmatprep.mubr.f32.mxu1 %v7052_v26  ;;  %v1194_v26 = vrot.slane %v7034_v30, 2 }
 0x534   :  { %1547 = vmatprep.subr.mxu0 %v7054_v33  ;;  %1618 = vmatprep.subr.mxu1 %v7055_v32  ;;  %v1193_v33 = vrot.slane %v7035_v10, 2 }
 0x5d3   :  { %v1265_v24 = vpop.f32.mrf.mxu0  ;;  %v1336_v11 = vpop.f32.mrf.mxu1 }
 0x5d4   :  { %v1266_v15 = vadd.f32 %v1265_v24, %v1191_v35  ;;  %v1337_v19 = vadd.f32 %v1336_v11, %v1193_v33 }
 0x5d5   :  { %v1267_v9 = vpop.f32.mrf.mxu0  ;;  %v1338_v12 = vpop.f32.mrf.mxu1 }
 0x5d6   :  { %v4115_v22 = vmul.f32 -1.442695, %v1266_v15  ;;  %v1268_v34 = vadd.f32 %v1267_v9, %v1192_v54  ;;  %v1339_v56 = vadd.f32 %v1338_v12, %v1194_v26 }
 0x5d8   :  { %4607 = vpow2.f32 %v4115_v22  ;;  %v4116_v57 = vmul.f32 -1.442695, %v1268_v34  ;;  %v4117_v32 = vmul.f32 -1.442695, %v1339_v56 }
 0x5da   :  { %4609 = vpow2.f32 %v4116_v57 }
 0x5db   :  { %4611 = vpow2.f32 %v4117_v32 }
 0x5e5   :  { %v4608_v8 = vpop.eup %4607 }
 0x5e6   :  { %v1344_v7 = vadd.f32 1.0, %v4608_v8 }
 0x5e7   :  { %v4610_v24 = vpop.eup %4609 }
 0x5e8   :  { %4613 = vrcp.f32 %v1344_v7  ;;  %v1350_v35 = vadd.f32 1.0, %v4610_v24  ;;  %v4612_v9 = vpop.eup %4611 }
 0x5e9   :  { %4615 = vtanh.f32 %v1337_v19  ;;  %v1357_v54 = vadd.f32 1.0, %v4612_v9 }
 0x5ea   :  { %4617 = vrcp.f32 %v1350_v35 }
 0x5eb   :  { %4619 = vrcp.f32 %v1357_v54  ;;  %v1756_v54 = vld [vmem:[%s6795_s4 + $0x158] sm:$0xff] }
 0x5f5   :  { %v4614_v15 = vpop.eup %4613 }
 0x5f6   :  { %v4616_v34 = vpop.eup %4615 }
 0x5f7   :  { %v4618_v57 = vpop.eup %4617  ;;  %v1361_v22 = vmul.f32 %v4616_v34, %v4614_v15  ;;  %v1759_v15 = vld [vmem:[%s6795_s4 + $0x170] sm:$0xff]  ;;  %v1758_v34 = vld [vmem:[%s6795_s4 + $0x168] sm:$0xff] }
 0x5f8   :  { %v1360_v26 = vmul.f32 %v4618_v57, %v6077_v13  ;;  %v4620_v8 = vpop.eup %4619  ;;  %v1760_v57 = vld [vmem:[%s6795_s4 + $0x178] sm:$0xff] }
 0x5fa   :  { %v6151_v12 = vadd.f32 %v1361_v22, %v1360_v26  ;;  %v1755_v22 = vld [vmem:[%s6795_s4 + $0x150] sm:$0xff]  ;;  %v1757_v26 = vld [vmem:[%s6795_s4 + $0x160] sm:$0xff] }
 0x5fc   :  { %4621 = vtanh.f32 %v6151_v12 }
 0x609   :  { %v4622_v56 = vpop.eup %4621 }
 0x60a   :  { %v1364_v11 = vmul.f32 %v4622_v56, %v4620_v8  ;;  %v1752_v8 = vld [vmem:[%s6795_s4 + $0x138] sm:$0xff]  ;;  %v1754_v56 = vld [vmem:[%s6795_s4 + $0x148] sm:$0xff] }
 0x60c   :  { %1438 = vmatmul.mubr.f32.vlgmr.msra.gmra.mxu0 %v1364_v11  ;;  %1509 = vmatmul.mubr.f32.vlgmr.msra.gmra.mxu1 %v1364_v11  ;;  %v1750_v11 = vld [vmem:[%s6795_s4 + $0x128] sm:$0xff] }
 0x60d   :  { %1548 = vmatpush1.msra.mxu0 %v5699_v31  ;;  %1619 = vmatpush1.msra.mxu1 %v5705_v14  ;;  %v7058_v31 = vld [vmem:[#allocation9_spill] sm:$0xff] }
 0x60e   :  { %1549 = vmatprep.subr.mxu0 %v5711_v23  ;;  %1620 = vmatprep.subr.mxu1 %v5717_v27  ;;  %v7059_v14 = vld [vmem:[#allocation5_spill] sm:$0xff]  ;;  %v7060_v23 = vld [vmem:[#allocation6_spill] sm:$0xff] }
 0x60f   :  { %1550 = vmatpush1.msra.mxu0 %v5723_v25  ;;  %1621 = vmatpush1.msra.mxu1 %v5729_v18  ;;  %v7061_v27 = vld [vmem:[#allocation10_spill] sm:$0xff]  ;;  %v7062_v25 = vld [vmem:[#allocation11_spill] sm:$0xff]  ;;  %v7063_v18 = vld [vmem:[#allocation12_spill] sm:$0xff] }
 0x610   :  { %1551 = vmatprep.subr.mxu0 %v5735_v20  ;;  %1622 = vmatprep.subr.mxu1 %v5741_v29  ;;  %v7064_v20 = vld [vmem:[#allocation13_spill] sm:$0xff]  ;;  %v7065_v29 = vld [vmem:[#allocation14_spill] sm:$0xff] }
 0x611   :  { %1552 = vmatpush1.msra.mxu0 %v5747_v28  ;;  %1623 = vmatpush1.msra.mxu1 %v5753_v16  ;;  %v7066_v28 = vld [vmem:[#allocation15_spill] sm:$0xff]  ;;  %v7067_v16 = vld [vmem:[#allocation16_spill] sm:$0xff] }
 0x612   :  { %1553 = vmatprep.subr.mxu0 %v5759_v17  ;;  %1624 = vmatprep.subr.mxu1 %v5765_v36  ;;  %v7068_v17 = vld [vmem:[#allocation17_spill] sm:$0xff]  ;;  %v7069_v36 = vld [vmem:[#allocation18_spill] sm:$0xff] }
 0x613   :  { %1554 = vmatpush1.msra.mxu0 %v5771_v37  ;;  %1625 = vmatpush1.msra.mxu1 %v5777_v38  ;;  %v7070_v37 = vld [vmem:[#allocation19_spill] sm:$0xff]  ;;  %v7071_v38 = vld [vmem:[#allocation20_spill] sm:$0xff] }
 0x614   :  { %1555 = vmatprep.subr.mxu0 %v5783_v39  ;;  %1626 = vmatprep.subr.mxu1 %v5789_v40  ;;  %v7072_v39 = vld [vmem:[#allocation21_spill] sm:$0xff]  ;;  %v7073_v40 = vld [vmem:[#allocation22_spill] sm:$0xff] }
 0x615   :  { %1556 = vmatpush1.msra.mxu0 %v5795_v41  ;;  %1627 = vmatpush1.msra.mxu1 %v5801_v42  ;;  %v7074_v41 = vld [vmem:[#allocation23_spill] sm:$0xff]  ;;  %v7075_v42 = vld [vmem:[#allocation24_spill] sm:$0xff] }
 0x616   :  { %1557 = vmatprep.subr.mxu0 %v5807_v43  ;;  %1628 = vmatprep.subr.mxu1 %v5813_v44  ;;  %v7076_v43 = vmov 0.0   ;;  %v7077_v44 = vld [vmem:[#allocation25_spill] sm:$0xff] }
 0x617   :  { %1558 = vmatpush1.msra.mxu0 %v5819_v45  ;;  %1629 = vmatpush1.msra.mxu1 %v5825_v46  ;;  %v7078_v45 = vld [vmem:[#allocation30_spill] sm:$0xff] }
 0x618   :  { %1559 = vmatprep.subr.mxu0 %v5831_v47  ;;  %1630 = vmatprep.subr.mxu1 %v5837_v48  ;;  %v1365_v46 = vrot.slane %v7078_v45, 4 }
 0x619   :  { %1560 = vmatpush1.msra.mxu0 %v5843_v49  ;;  %1631 = vmatpush1.msra.mxu1 %v5849_v50  ;;  %v1366_v49 = vrot.slane %v7057_v21, 4 }
 0x61a   :  { %1561 = vmatprep.subr.mxu0 %v5855_v51  ;;  %1632 = vmatprep.subr.mxu1 %v5861_v52 }
 0x61b   :  { %1562 = vmatpush1.msra.mxu0 %v5867_v53  ;;  %1633 = vmatpush1.msra.mxu1 %v5873_v55 }
 0x61c   :  { %1563 = vmatprep.subr.mxu0 %v5879_v58  ;;  %1634 = vmatprep.subr.mxu1 %v5885_v59  ;;  %v1368_v59 = vrot.slane %v7034_v30, 4 }
 0x61d   :  { %1564 = vmatpush1.msra.mxu0 %v5891_v60  ;;  %1635 = vmatpush1.msra.mxu1 %v5897_v61  ;;  %v1367_v61 = vrot.slane %v7035_v10, 4 }
 0x61e   :  { %1565 = vmatprep.subr.mxu0 %v5903_v62  ;;  %1636 = vmatprep.subr.mxu1 %v5909_v63 }
 0x61f   :  { %1566 = vmatpush1.msra.mxu0 %v5915_v0  ;;  %1637 = vmatpush1.msra.mxu1 %v5921_v1 }
 0x620   :  { %1567 = vmatprep.subr.mxu0 %v5927_v2  ;;  %1638 = vmatprep.subr.mxu1 %v5933_v3 }
 0x621   :  { %1568 = vmatpush1.msra.mxu0 %v5939_v4  ;;  %1639 = vmatpush1.msra.mxu1 %v5945_v5 }
 0x622   :  { %1569 = vmatprep.subr.mxu0 %v5951_v6  ;;  %1640 = vmatprep.subr.mxu1 %v7058_v31  ;;  %v1749_v31 = vld [vmem:[%s6795_s4 + $0x120] sm:$0xff] }
 0x623   :  { %1570 = vmatpush1.msra.mxu0 %v7059_v14  ;;  %1641 = vmatpush1.msra.mxu1 %v7060_v23  ;;  %v1751_v14 = vld [vmem:[%s6795_s4 + $0x130] sm:$0xff] }
 0x624   :  { %1571 = vmatprep.subr.mxu0 %v7061_v27  ;;  %1642 = vmatprep.subr.mxu1 %v7062_v25  ;;  %v1747_v23 = vld [vmem:[%s6795_s4 + $0x110] sm:$0xff]  ;;  %v1746_v27 = vld [vmem:[%s6795_s4 + $0x108] sm:$0xff]  ;;  %v1748_v25 = vld [vmem:[%s6795_s4 + $0x118] sm:$0xff] }
 0x625   :  { %1572 = vmatpush1.msra.mxu0 %v7063_v18  ;;  %1643 = vmatpush1.msra.mxu1 %v7064_v20  ;;  %v1744_v18 = vld [vmem:[%s6795_s4 + $0xf8] sm:$0xff]  ;;  %v1743_v20 = vld [vmem:[%s6795_s4 + $0xf0] sm:$0xff] }
 0x626   :  { %1573 = vmatprep.subr.mxu0 %v7065_v29  ;;  %1644 = vmatprep.subr.mxu1 %v7066_v28  ;;  %v1745_v29 = vld [vmem:[%s6795_s4 + $0x100] sm:$0xff] }
 0x627   :  { %1574 = vmatpush1.msra.mxu0 %v7067_v16  ;;  %1645 = vmatpush1.msra.mxu1 %v7068_v17  ;;  %v1741_v28 = vld [vmem:[%s6795_s4 + $0xe0] sm:$0xff]  ;;  %v1740_v16 = vld [vmem:[%s6795_s4 + $0xd8] sm:$0xff]  ;;  %v1742_v17 = vld [vmem:[%s6795_s4 + $0xe8] sm:$0xff] }
 0x628   :  { %1575 = vmatprep.subr.mxu0 %v7069_v36  ;;  %1646 = vmatprep.subr.mxu1 %v7070_v37  ;;  %v1738_v36 = vld [vmem:[%s6795_s4 + $0xc8] sm:$0xff]  ;;  %v1737_v37 = vld [vmem:[%s6795_s4 + $0xc0] sm:$0xff] }
 0x629   :  { %1576 = vmatpush1.msra.mxu0 %v7071_v38  ;;  %1647 = vmatpush1.msra.mxu1 %v7072_v39  ;;  %v1739_v38 = vld [vmem:[%s6795_s4 + $0xd0] sm:$0xff] }
 0x62a   :  { %1577 = vmatprep.subr.mxu0 %v7073_v40  ;;  %1648 = vmatprep.subr.mxu1 %v7074_v41  ;;  %v1735_v39 = vld [vmem:[%s6795_s4 + $0xb0] sm:$0xff]  ;;  %v1734_v40 = vld [vmem:[%s6795_s4 + $0xa8] sm:$0xff]  ;;  %v1736_v41 = vld [vmem:[%s6795_s4 + $0xb8] sm:$0xff] }
 0x62b   :  { %1578 = vmatpush1.msra.mxu0 %v7075_v42  ;;  %1611 = vmatprep.mubr.f32.mxu0 %v7076_v43  ;;  %v1732_v42 = vld [vmem:[%s6795_s4 + $0x98] sm:$0xff] }
 0x62c   :  { %1649 = vmatpush1.msra.mxu1 %v7077_v44  ;;  %1682 = vmatprep.mubr.f32.mxu1 %v7076_v43  ;;  %v1731_v44 = vld [vmem:[%s6795_s4 + $0x90] sm:$0xff] }
 0x62d   :  { %4276 = vmatprep.subr.mxu1 %v7076_v43  ;;  %1778 = vmatprep.subr.mxu0 %v1759_v15  ;;  %v1542_v15 = vrot.slane %v7034_v30, 6 }
 0x6cc   :  { %v1439_v47 = vpop.f32.mrf.mxu0  ;;  %v1510_v53 = vpop.f32.mrf.mxu1 }
 0x6cd   :  { %v1440_v48 = vadd.f32 %v1439_v47, %v1365_v46  ;;  %v1511_v0 = vadd.f32 %v1510_v53, %v1367_v61  ;;  %v1733_v46 = vld [vmem:[%s6795_s4 + $0xa0] sm:$0xff]  ;;  %v1723_v53 = vld [vmem:[%s6795_s4 + $0x50] sm:$0xff] }
 0x6ce   :  { %v1441_v50 = vpop.f32.mrf.mxu0  ;;  %v1512_v58 = vpop.f32.mrf.mxu1  ;;  %v1729_v47 = vld [vmem:[%s6795_s4 + $0x80] sm:$0xff] }
 0x6cf   :  { %v4118_v51 = vmul.f32 -1.442695, %v1440_v48  ;;  %v1442_v52 = vadd.f32 %v1441_v50, %v1366_v49  ;;  %v1513_v60 = vadd.f32 %v1512_v58, %v1368_v59  ;;  %v1728_v48 = vld [vmem:[%s6795_s4 + $0x78] sm:$0xff]  ;;  %v1730_v49 = vld [vmem:[%s6795_s4 + $0x88] sm:$0xff]  ;;  %v1721_v61 = vld [vmem:[%s6795_s4 + $0x40] sm:$0xff] }
 0x6d0   :  { %v1726_v50 = vld [vmem:[%s6795_s4 + $0x68] sm:$0xff]  ;;  %v1724_v58 = vld [vmem:[%s6795_s4 + $0x58] sm:$0xff] }
 0x6d1   :  { %4623 = vpow2.f32 %v4118_v51  ;;  %v4119_v55 = vmul.f32 -1.442695, %v1442_v52  ;;  %v4120_v62 = vmul.f32 -1.442695, %v1513_v60  ;;  %v1725_v51 = vld [vmem:[%s6795_s4 + $0x60] sm:$0xff]  ;;  %v1727_v52 = vld [vmem:[%s6795_s4 + $0x70] sm:$0xff] }
 0x6d2   :  { %v1720_v59 = vld [vmem:[%s6795_s4 + $0x38] sm:$0xff]  ;;  %v1719_v60 = vld [vmem:[%s6795_s4 + $0x30] sm:$0xff] }
 0x6d3   :  { %4625 = vpow2.f32 %v4119_v55  ;;  %v1722_v55 = vld [vmem:[%s6795_s4 + $0x48] sm:$0xff] }
 0x6d4   :  { %4627 = vpow2.f32 %v4120_v62  ;;  %v1717_v62 = vld [vmem:[%s6795_s4 + $0x20] sm:$0xff] }
 0x6de   :  { %v4624_v63 = vpop.eup %4623 }
 0x6df   :  { %v1518_v1 = vadd.f32 1.0, %v4624_v63  ;;  %v1716_v63 = vld [vmem:[%s6795_s4 + $0x18] sm:$0xff] }
 0x6e0   :  { %v4626_v2 = vpop.eup %4625 }
 0x6e1   :  { %4629 = vrcp.f32 %v1518_v1  ;;  %v1524_v3 = vadd.f32 1.0, %v4626_v2  ;;  %v4628_v4 = vpop.eup %4627  ;;  %v1714_v1 = vld [vmem:[%s6795_s4 + $0x8] sm:$0xff]  ;;  %v1713_v2 = vld [vmem:[%s6795_s4] sm:$0xff] }
 0x6e2   :  { %4631 = vtanh.f32 %v1511_v0  ;;  %v1531_v13 = vadd.f32 1.0, %v4628_v4  ;;  %v1718_v0 = vld [vmem:[%s6795_s4 + $0x28] sm:$0xff]  ;;  %v1539_v4 = vrot.slane %v7078_v45, 6 }
 0x6e3   :  { %4633 = vrcp.f32 %v1524_v3  ;;  %v1715_v3 = vld [vmem:[%s6795_s4 + $0x10] sm:$0xff] }
 0x6e4   :  { %4635 = vrcp.f32 %v1531_v13 }
 0x6ee   :  { %v4630_v5 = vpop.eup %4629 }
 0x6ef   :  { %v4632_v6 = vpop.eup %4631 }
 0x6f0   :  { %v4634_v7 = vpop.eup %4633  ;;  %v1535_v19 = vmul.f32 %v4632_v6, %v4630_v5 }
 0x6f1   :  { %v1534_v33 = vmul.f32 %v4634_v7, %v6151_v12  ;;  %v4636_v24 = vpop.eup %4635  ;;  %v1753_v12 = vld [vmem:[%s6795_s4 + $0x140] sm:$0xff]  ;;  %v1540_v7 = vrot.slane %v7057_v21, 6  ;;  %s4781_s4 = smov 48  }
 0x6f3   :  { %v6224_v32 = vadd.f32 %v1535_v19, %v1534_v33 }
 0x6f5   :  { %4637 = vtanh.f32 %v6224_v32 }
 0x702   :  { %v4638_v35 = vpop.eup %4637 }
 0x703   :  { %v1538_v9 = vmul.f32 %v4638_v35, %v4636_v24 }
 0x705   :  { %1612 = vmatmul.mubr.f32.vlgmr.msra.gmra.mxu0 %v1538_v9  ;;  %1683 = vmatmul.mubr.f32.vlgmr.msra.gmra.mxu1 %v1538_v9 }
 0x706   :  { %1842 = vmatprep.mubr.f32.mxu0 %v7076_v43  ;;  %1779 = vmatpush1.msra.mxu0 %v1758_v34 }
 0x707   :  { %4277 = vmatpush3.msra.mxu1 %v1760_v57  ;;  %1780 = vmatprep.subr.mxu0 %v1756_v54  ;;  %v1541_v57 = vrot.slane %v7035_v10, 6 }
 0x708   :  { %4278 = vmatprep.subr.mxu1 %v7076_v43  ;;  %1781 = vmatpush1.msra.mxu0 %v1755_v22 }
 0x709   :  { %4279 = vmatpush3.msra.mxu1 %v1757_v26  ;;  %1782 = vmatprep.subr.mxu0 %v1753_v12 }
 0x70a   :  { %4280 = vmatprep.subr.mxu1 %v7076_v43  ;;  %1783 = vmatpush1.msra.mxu0 %v1752_v8 }
 0x70b   :  { %4281 = vmatpush3.msra.mxu1 %v1754_v56  ;;  %1784 = vmatprep.subr.mxu0 %v1750_v11 }
 0x70c   :  { %4282 = vmatprep.subr.mxu1 %v7076_v43  ;;  %1785 = vmatpush1.msra.mxu0 %v1749_v31 }
 0x70d   :  { %4283 = vmatpush3.msra.mxu1 %v1751_v14  ;;  %1786 = vmatprep.subr.mxu0 %v1747_v23 }
 0x70e   :  { %4284 = vmatprep.subr.mxu1 %v7076_v43  ;;  %1787 = vmatpush1.msra.mxu0 %v1746_v27 }
 0x70f   :  { %4285 = vmatpush3.msra.mxu1 %v1748_v25  ;;  %1788 = vmatprep.subr.mxu0 %v1744_v18 }
 0x710   :  { %4286 = vmatprep.subr.mxu1 %v7076_v43  ;;  %1789 = vmatpush1.msra.mxu0 %v1743_v20  ;;  %v7079_v20 = vld [vmem:[#allocation29_spill] sm:$0xff] }
 0x711   :  { %4287 = vmatpush3.msra.mxu1 %v1745_v29  ;;  %1790 = vmatprep.subr.mxu0 %v1741_v28  ;;  %v7080_v29 = vsub.s32 2, %v7079_v20 }
 0x712   :  { %4288 = vmatprep.subr.mxu1 %v7076_v43  ;;  %1791 = vmatpush1.msra.mxu0 %v1740_v16  ;;  %v7081_v16 = vsub.s32 0, %v7079_v20 }
 0x713   :  { %4289 = vmatpush3.msra.mxu1 %v1742_v17  ;;  %1792 = vmatprep.subr.mxu0 %v1738_v36  ;;  %v7082_v36 = vsub.s32 1, %v7079_v20 }
 0x714   :  { %4290 = vmatprep.subr.mxu1 %v7076_v43  ;;  %1793 = vmatpush1.msra.mxu0 %v1737_v37 }
 0x715   :  { %4291 = vmatpush3.msra.mxu1 %v1739_v38  ;;  %1794 = vmatprep.subr.mxu0 %v1735_v39 }
 0x716   :  { %4292 = vmatprep.subr.mxu1 %v7076_v43  ;;  %1795 = vmatpush1.msra.mxu0 %v1734_v40 }
 0x717   :  { %4293 = vmatpush3.msra.mxu1 %v1736_v41  ;;  %1796 = vmatprep.subr.mxu0 %v1732_v42 }
 0x718   :  { %4294 = vmatprep.subr.mxu1 %v7076_v43  ;;  %1797 = vmatpush1.msra.mxu0 %v1731_v44 }
 0x719   :  { %4295 = vmatpush3.msra.mxu1 %v1733_v46  ;;  %1798 = vmatprep.subr.mxu0 %v1729_v47 }
 0x71a   :  { %4296 = vmatprep.subr.mxu1 %v7076_v43  ;;  %1799 = vmatpush1.msra.mxu0 %v1728_v48 }
 0x71b   :  { %4297 = vmatpush3.msra.mxu1 %v1730_v49  ;;  %1800 = vmatprep.subr.mxu0 %v1726_v50 }
 0x71c   :  { %4298 = vmatprep.subr.mxu1 %v7076_v43  ;;  %1801 = vmatpush1.msra.mxu0 %v1725_v51 }
 0x71d   :  { %4299 = vmatpush3.msra.mxu1 %v1727_v52  ;;  %1802 = vmatprep.subr.mxu0 %v1723_v53 }
 0x71e   :  { %4300 = vmatprep.subr.mxu1 %v7076_v43  ;;  %1803 = vmatpush1.msra.mxu0 %v1722_v55 }
 0x71f   :  { %4301 = vmatpush3.msra.mxu1 %v1724_v58  ;;  %1804 = vmatprep.subr.mxu0 %v1720_v59 }
 0x720   :  { %4302 = vmatprep.subr.mxu1 %v7076_v43  ;;  %1805 = vmatpush1.msra.mxu0 %v1719_v60 }
 0x721   :  { %4303 = vmatpush3.msra.mxu1 %v1721_v61  ;;  %1806 = vmatprep.subr.mxu0 %v1717_v62 }
 0x722   :  { %4304 = vmatprep.subr.mxu1 %v7076_v43  ;;  %1807 = vmatpush1.msra.mxu0 %v1716_v63 }
 0x723   :  { %4305 = vmatpush3.msra.mxu1 %v1718_v0  ;;  %1808 = vmatprep.subr.mxu0 %v1714_v1 }
 0x724   :  { %4306 = vmatprep.subr.mxu1 %v7076_v43  ;;  %1809 = vmatpush1.msra.mxu0 %v1713_v2 }
 0x725   :  { %4307 = vmatpush3.msra.mxu1 %v1715_v3  ;;  %4308 = vmatprep.mubr.msk.f32.mxu1 %vm4776_vm1, %v7076_v43 }
 0x726   :  { %4316 = vmatprep.subr.mxu1 %v7076_v43  ;;  %4311 = vmatprep.subr.mxu0 %v7076_v43 }
 0x7c5   :  { %v1613_v5 = vpop.f32.mrf.mxu0  ;;  %v1684_v24 = vpop.f32.mrf.mxu1 }
 0x7c6   :  { %v1614_v6 = vadd.f32 %v1613_v5, %v1539_v4  ;;  %v1685_v45 = vadd.f32 %v1684_v24, %v1541_v57 }
 0x7c7   :  { %v1615_v13 = vpop.f32.mrf.mxu0  ;;  %v1686_v9 = vpop.f32.mrf.mxu1 }
 0x7c8   :  { %v4121_v19 = vmul.f32 -1.442695, %v1614_v6  ;;  %v1616_v33 = vadd.f32 %v1615_v13, %v1540_v7  ;;  %v1687_v34 = vadd.f32 %v1686_v9, %v1542_v15  ;;  %v2256_v13 = vld [vmem:[%s6797_s6 + $0x18] sm:$0xff]  ;;  %v2088_v15 = vld [vmem:[%s6797_s6 + $0x8] sm:$0xff] }
 0x7ca   :  { %4639 = vpow2.f32 %v4121_v19  ;;  %v4122_v35 = vmul.f32 -1.442695, %v1616_v33  ;;  %v4123_v54 = vmul.f32 -1.442695, %v1687_v34  ;;  %v2255_v19 = vld [vmem:[%s6797_s6 + $0x10] sm:$0xff]  ;;  %v2087_v34 = vld [vmem:[%s6797_s6] sm:$0xff] }
 0x7cc   :  { %4641 = vpow2.f32 %v4122_v35 }
 0x7cd   :  { %4643 = vpow2.f32 %v4123_v54 }
 0x7d7   :  { %v4640_v22 = vpop.eup %4639 }
 0x7d8   :  { %v1692_v26 = vadd.f32 1.0, %v4640_v22 }
 0x7d9   :  { %v4642_v12 = vpop.eup %4641 }
 0x7da   :  { %4645 = vrcp.f32 %v1692_v26  ;;  %v1698_v21 = vadd.f32 1.0, %v4642_v12  ;;  %v4644_v8 = vpop.eup %4643 }
 0x7db   :  { %4647 = vtanh.f32 %v1685_v45  ;;  %v1705_v14 = vadd.f32 1.0, %v4644_v8 }
 0x7dc   :  { %4649 = vrcp.f32 %v1698_v21 }
 0x7dd   :  { %4651 = vrcp.f32 %v1705_v14 }
 0x7e7   :  { %v4646_v56 = vpop.eup %4645 }
 0x7e8   :  { %v4648_v11 = vpop.eup %4647 }
 0x7e9   :  { %v4650_v31 = vpop.eup %4649  ;;  %v1709_v23 = vmul.f32 %v4648_v11, %v4646_v56 }
 0x7ea   :  { %v1708_v30 = vmul.f32 %v4650_v31, %v6224_v32  ;;  %v4652_v10 = vpop.eup %4651  ;;  %v1761_v32 = vld [vmem:[%s6796_s5] sm:$0x7]  ;;  %s4777_s5 = smov 112  }
 0x7eb   :  { %v1774_v28 = vrot.slane %v1761_v32, %v7080_v29  ;;  %v1766_v17 = vrot.slane %v1761_v32, %v7081_v16  ;;  %v1770_v37 = vrot.slane %v1761_v32, %v7082_v36  ;;  %v2570_v29 = vld [vmem:[%s6797_s6 + $0x28] sm:$0xff] }
 0x7ec   :  { %v1710_v27 = vadd.f32 %v1709_v23, %v1708_v30 }
 0x7ee   :  { %4653 = vtanh.f32 %v1710_v27 }
 0x7fb   :  { %v4654_v25 = vpop.eup %4653 }
 0x7fc   :  { %v6396_v18 = vmul.f32 %v4654_v25, %v4652_v10 }
 0x7fe   :  { %1843 = vmatmul.mubr.f32.vlgmr.msra.gmra.mxu0 %v6396_v18  ;;  %4309 = vmatmul.mubr.f32.vlgmr.msra.gmra.mxu1 %v6396_v18 }
 0x7ff   :  { %4313 = vmatprep.mubr.msk.f32.mxu0 %vm4776_vm1, %v7076_v43  ;;  %4318 = vmatprep.mubr.msk.f32.mxu1 %vm4776_vm1, %v7076_v43 }
 0x8be   :  { %v1844_v38 = vpop.f32.mrf.mxu0  ;;  %v1915_v39 = vpop.f32.mrf.mxu1 }
 0x8bf   :  { %v6413_v40 = vadd.f32 %v1915_v39, %v1774_v28  ;;  %v1845_v41 = vadd.f32 %v1844_v38, %v1766_v17  ;;  %v2569_v28 = vld [vmem:[%s6797_s6 + $0x20] sm:$0xff] }
 0x8c0   :  { %v1846_v42 = vpop.f32.mrf.mxu0  ;;  %v4310_v44 = vpop.f32.mrf.mxu1 }
 0x8c1   :  { %v6415_v46 = vadd.f32 %v1846_v42, %v1770_v37  ;;  %4317 = vmatpush3.msk.msra.mxu1 %vm2013_vm2, %v6413_v40  ;;  %v6424_v47 = vmul.f32 0.25, %v1845_v41 }
 0x8c2   :  { %4326 = vmatprep.subr.mxu1 %v7076_v43 }
 0x8c3   :  { %2091 = vrot.lane.b32.xlu0 %v6415_v46, %s4777_s5  ;;  %4312 = vmatpush3.xpose.msk.msra.mxu0 %vm1920_vm3, %v6415_v46 }
 0x8c4   :  { %4321 = vmatprep.subr.mxu0 %v7076_v43 }
 0x8c6   :  { %4314 = vmatmul.mubr.msk.f32.vlgmr.msra.gmra.mxu0 %vm1920_vm3, %v6424_v47 }
 0x8c7   :  { %2089 = vrot.lane.b32.xlu0 %v6424_v47, %s4777_s5  ;;  %4323 = vmatprep.mubr.msk.f32.mxu0 %vm4776_vm1, %v7076_v43 }
 0x935   :  { %v2092_v48 = vpop.permute.xlu0 %2091 }
 0x936   :  { %4322 = vmatpush3.xpose.msk.msra.mxu0 %vm1920_vm3, %v2092_v48 }
 0x937   :  { %4331 = vmatprep.subr.mxu0 %v7076_v43 }
 0x939   :  { %v2090_v49 = vpop.permute.xlu0 %2089 }
 0x93a   :  { %4324 = vmatmul.mubr.msk.f32.vlgmr.msra.gmra.mxu0 %vm1920_vm3, %v2090_v49 }
 0x93b   :  { %4335 = vmatprep.mubr.msk.f32.mxu0 %vm4776_vm1, %v7076_v43  ;;  %4332 = vmatpush3.msra.mxu0 %v2256_v13 }
 0x93c   :  { %4333 = vmatprep.subr.mxu0 %v7076_v43 }
 0x93d   :  { %4334 = vmatpush3.msra.mxu0 %v2255_v19 }
 0x93e   :  { %4345 = vmatprep.subr.mxu0 %v7076_v43 }
 0x986   :  { %v1993_v50 = vpop.f32.mrf.mxu0 }
 0x987   :  { %v1998_v51 = vsel %vm1997_vm4, %v1993_v50, -inf }
 0x988   :  { %1999 = vmax.xlane.f32.xlu1 %v1998_v51  ;;  %v4315_v52 = vpop.f32.mrf.mxu0 }
 0x9fa   :  { %v2163_v53 = vpop.f32.mrf.mxu0 }
 0x9fb   :  { %v2167_v55 = vsel %vm1997_vm4, %v2163_v53, -inf }
 0x9fc   :  { %2168 = vmax.xlane.f32.xlu1 %v2167_v55  ;;  %v4325_v58 = vpop.f32.mrf.mxu0 }
 0xa11   :  { %v2000_v59 = vpop.xlane.xlu1 %1999 }
 0xa12   :  { %v2001_v60 = vsub.f32 %v1993_v50, %v2000_v59 }
 0xa14   :  { %v2002_v61 = vmul.f32 1.442695, %v2001_v60  ;;  %v2812_v60 = vld [vmem:[%s6797_s6 + $0x38] sm:$0xff] }
 0xa16   :  { %4655 = vpow2.f32 %v2002_v61  ;;  %v2811_v61 = vld [vmem:[%s6797_s6 + $0x30] sm:$0xff] }
 0xa23   :  { %v4656_v62 = vpop.eup %4655 }
 0xa24   :  { %v2004_v63 = vsel %vm1997_vm4, %v4656_v62, 0.0 }
 0xa25   :  { %2005 = vadd.xlane.f32.xlu0 %v2004_v63 }
 0xa3b   :  { %2492 = vrot.lane.b32.xlu0 %v6413_v40, %s4778_s1 }
 0xa85   :  { %v2169_v0 = vpop.xlane.xlu1 %2168 }
 0xa86   :  { %v2170_v1 = vsub.f32 %v2163_v53, %v2169_v0 }
 0xa88   :  { %v2171_v2 = vmul.f32 1.442695, %v2170_v1 }
 0xa8a   :  { %4657 = vpow2.f32 %v2171_v2 }
 0xa97   :  { %v4658_v3 = vpop.eup %4657 }
 0xa98   :  { %v2173_v4 = vsel %vm1997_vm4, %v4658_v3, 0.0 }
 0xa99   :  { %2174 = vadd.xlane.f32.xlu1 %v2173_v4 }
 0xaaa   :  { %2178 = vrot.lane.b32.xlu1 %v6413_v40, %s4777_s5 }
 0xaae   :  { %v2006_v5 = vpop.xlane.xlu0 %2005  ;;  %2405 = vrot.lane.b32.xlu1 %v6415_v46, %s4778_s1 }
 0xaaf   :  { %4659 = vrcp.f32 %v2006_v5 }
 0xab2   :  { %2403 = vrot.lane.b32.xlu1 %v6424_v47, %s4778_s1  ;;  %v2493_v54 = vpop.permute.xlu0 %2492 }
 0xabc   :  { %v4660_v6 = vpop.eup %4659 }
 0xabd   :  { %v2008_v7 = vmul.f32 %v4660_v6, %v4656_v62 }
 0xabf   :  { %4319 = vmatmul.mubr.msk.f32.vlgmr.msra.gmra.mxu1 %vm2009_vm5, %v2008_v7 }
 0xac0   :  { %4328 = vmatprep.mubr.msk.f32.mxu1 %vm4776_vm1, %v7076_v43 }
 0xb22   :  { %v2175_v33 = vpop.xlane.xlu1 %2174 }
 0xb23   :  { %4661 = vrcp.f32 %v2175_v33 }
 0xb26   :  { %v2179_v24 = vpop.permute.xlu1 %2178 }
 0xb27   :  { %4327 = vmatpush3.msk.msra.mxu1 %vm2013_vm2, %v2179_v24 }
 0xb28   :  { %4338 = vmatprep.subr.mxu1 %v7076_v43 }
 0xb2a   :  { %v2406_v45 = vpop.permute.xlu1 %2405 }
 0xb2e   :  { %v2404_v21 = vpop.permute.xlu1 %2403 }
 0xb30   :  { %v4662_v35 = vpop.eup %4661 }
 0xb31   :  { %v2177_v9 = vmul.f32 %v4662_v35, %v4658_v3 }
 0xb33   :  { %4329 = vmatmul.mubr.msk.f32.vlgmr.msra.gmra.mxu1 %vm2009_vm5, %v2177_v9 }
 0xb34   :  { %4339 = vmatpush3.msra.mxu1 %v2088_v15  ;;  %4342 = vmatprep.mubr.msk.f32.mxu1 %vm4776_vm1, %v7076_v43 }
 0xb35   :  { %4340 = vmatprep.subr.mxu1 %v7076_v43 }
 0xb36   :  { %4341 = vmatpush3.msra.mxu1 %v2087_v34 }
 0xb37   :  { %4350 = vmatprep.subr.mxu1 %v7076_v43 }
 0xb7f   :  { %v2083_v57 = vpop.f32.mrf.mxu1 }
 0xb80   :  { %4343 = vmatmul.mubr.msk.f32.vlgmr.msra.gmra.mxu1 %vm1920_vm3, %v2083_v57 }
 0xb81   :  { %4351 = vmatpush3.msk.msra.mxu1 %vm2013_vm2, %v2493_v54  ;;  %v4320_v22 = vpop.f32.mrf.mxu1  ;;  %4352 = vmatprep.mubr.msk.f32.mxu1 %vm4776_vm1, %v7076_v43  ;;  %v3054_v54 = vld [vmem:[%s6797_s6 + $0x48] sm:$0xff] }
 0xb82   :  { %4362 = vmatprep.subr.mxu1 %v7076_v43  ;;  %v3053_v22 = vld [vmem:[%s6797_s6 + $0x40] sm:$0xff] }
 0xbf3   :  { %v2251_v26 = vpop.f32.mrf.mxu1 }
 0xbf4   :  { %4336 = vmatmul.mubr.msk.f32.vlgmr.msra.gmra.mxu0 %vm1920_vm3, %v2251_v26 }
 0xbf5   :  { %4346 = vmatpush3.xpose.msk.msra.mxu0 %vm1920_vm3, %v2406_v45  ;;  %v4330_v12 = vpop.f32.mrf.mxu1  ;;  %4347 = vmatprep.mubr.msk.f32.mxu0 %vm4776_vm1, %v7076_v43 }
 0xbf6   :  { %4355 = vmatprep.subr.mxu0 %v7076_v43 }
 0xbf8   :  { %4348 = vmatmul.mubr.msk.f32.vlgmr.msra.gmra.mxu0 %vm1920_vm3, %v2404_v21 }
 0xbf9   :  { %4359 = vmatprep.mubr.msk.f32.mxu0 %vm4776_vm1, %v7076_v43  ;;  %4356 = vmatpush3.msra.mxu0 %v2570_v29 }
 0xbfa   :  { %4357 = vmatprep.subr.mxu0 %v7076_v43 }
 0xbfb   :  { %4358 = vmatpush3.msra.mxu0 %v2569_v28 }
 0xbfc   :  { %4367 = vmatprep.subr.mxu0 %v7076_v43 }
 0xc40   :  { %v2399_v8 = vpop.f32.mrf.mxu1 }
 0xc42   :  { %v4344_v56 = vpop.f32.mrf.mxu1 }
 0xcb4   :  { %v2326_v11 = vpop.f32.mrf.mxu0 }
 0xcb5   :  { %v2400_v58 = vadd.f32 %v2399_v8, %v2326_v11 }
 0xcb6   :  { %v4337_v31 = vpop.f32.mrf.mxu0 }
 0xcb8   :  { %v2477_v14 = vpop.f32.mrf.mxu0 }
 0xcb9   :  { %v2481_v23 = vsel %vm1997_vm4, %v2477_v14, -inf }
 0xcba   :  { %2482 = vmax.xlane.f32.xlu1 %v2481_v23  ;;  %v4349_v30 = vpop.f32.mrf.mxu0 }
 0xccb   :  { %2734 = vrot.lane.b32.xlu1 %v6413_v40, %s4779_s3 }
 0xccf   :  { %2889 = vrot.lane.b32.xlu1 %v6415_v46, %s4780_s25 }
 0xd43   :  { %v2483_v27 = vpop.xlane.xlu1 %2482 }
 0xd44   :  { %v2484_v10 = vsub.f32 %v2477_v14, %v2483_v27 }
 0xd46   :  { %v2485_v25 = vmul.f32 1.442695, %v2484_v10 }
 0xd47   :  { %v2735_v41 = vpop.permute.xlu1 %2734 }
 0xd48   :  { %4663 = vpow2.f32 %v2485_v25 }
 0xd4b   :  { %v2890_v0 = vpop.permute.xlu1 %2889 }
 0xd55   :  { %v4664_v32 = vpop.eup %4663 }
 0xd56   :  { %v2487_v20 = vsel %vm1997_vm4, %v4664_v32, 0.0 }
 0xd57   :  { %2488 = vadd.xlane.f32.xlu0 %v2487_v20 }
 0xd6d   :  { %2647 = vrot.lane.b32.xlu0 %v6415_v46, %s4779_s3 }
 0xd71   :  { %2645 = vrot.lane.b32.xlu0 %v6424_v47, %s4779_s3 }
 0xde0   :  { %v2489_v16 = vpop.xlane.xlu0 %2488 }
 0xde1   :  { %4665 = vrcp.f32 %v2489_v16 }
 0xde4   :  { %v2648_v36 = vpop.permute.xlu0 %2647 }
 0xde8   :  { %v2646_v38 = vpop.permute.xlu0 %2645 }
 0xdee   :  { %v4666_v17 = vpop.eup %4665 }
 0xdef   :  { %v2491_v37 = vmul.f32 %v4666_v17, %v4664_v32  ;;  %v3296_v17 = vld [vmem:[%s6797_s6 + $0x58] sm:$0xff] }
 0xdf1   :  { %4353 = vmatmul.mubr.msk.f32.vlgmr.msra.gmra.mxu1 %vm2009_vm5, %v2491_v37 }
 0xdf2   :  { %4363 = vmatpush3.xpose.msk.msra.mxu1 %vm1920_vm3, %v2648_v36  ;;  %4364 = vmatprep.mubr.msk.f32.mxu1 %vm4776_vm1, %v7076_v43  ;;  %v3295_v36 = vld [vmem:[%s6797_s6 + $0x50] sm:$0xff] }
 0xdf3   :  { %4372 = vmatprep.subr.mxu1 %v7076_v43 }
 0xdf5   :  { %4365 = vmatmul.mubr.msk.f32.vlgmr.msra.gmra.mxu1 %vm1920_vm3, %v2646_v38 }
 0xdf6   :  { %4376 = vmatprep.mubr.msk.f32.mxu1 %vm4776_vm1, %v7076_v43  ;;  %4373 = vmatpush3.msra.mxu1 %v2812_v60 }
 0xdf7   :  { %4374 = vmatprep.subr.mxu1 %v7076_v43 }
 0xdf8   :  { %4375 = vmatpush3.msra.mxu1 %v2811_v61 }
 0xdf9   :  { %4384 = vmatprep.subr.mxu1 %v7076_v43 }
 0xeb1   :  { %v2565_v39 = vpop.f32.mrf.mxu1 }
 0xeb2   :  { %4360 = vmatmul.mubr.msk.f32.vlgmr.msra.gmra.mxu0 %vm1920_vm3, %v2565_v39 }
 0xeb3   :  { %4368 = vmatpush3.msk.msra.mxu0 %vm2013_vm2, %v2735_v41  ;;  %v4354_v42 = vpop.f32.mrf.mxu1  ;;  %4369 = vmatprep.mubr.msk.f32.mxu0 %vm4776_vm1, %v7076_v43 }
 0xeb4   :  { %4379 = vmatprep.subr.mxu0 %v7076_v43 }
 0xeb5   :  { %v2719_v44 = vpop.f32.mrf.mxu1 }
 0xeb6   :  { %v2723_v48 = vsel %vm1997_vm4, %v2719_v44, -inf }
 0xeb7   :  { %2724 = vmax.xlane.f32.xlu0 %v2723_v48  ;;  %v4366_v49 = vpop.f32.mrf.mxu1 }
 0xecd   :  { %2976 = vrot.lane.b32.xlu0 %v6413_v40, %s4780_s25 }
 0xf40   :  { %v2725_v50 = vpop.xlane.xlu0 %2724 }
 0xf41   :  { %v2726_v51 = vsub.f32 %v2719_v44, %v2725_v50 }
 0xf43   :  { %v2727_v52 = vmul.f32 1.442695, %v2726_v51 }
 0xf44   :  { %v2977_v6 = vpop.permute.xlu0 %2976 }
 0xf45   :  { %4667 = vpow2.f32 %v2727_v52 }
 0xf52   :  { %v4668_v53 = vpop.eup %4667 }
 0xf53   :  { %v2729_v55 = vsel %vm1997_vm4, %v4668_v53, 0.0 }
 0xf54   :  { %2730 = vadd.xlane.f32.xlu1 %v2729_v55 }
 0xf65   :  { %2887 = vrot.lane.b32.xlu1 %v6424_v47, %s4780_s25 }
 0xf72   :  { %v2640_v59 = vpop.f32.mrf.mxu0 }
 0xf73   :  { %v2644_v62 = vadd.f32 %v2640_v59, %v2400_v58 }
 0xf74   :  { %v4361_v63 = vpop.f32.mrf.mxu0 }
 0xfdd   :  { %v2731_v1 = vpop.xlane.xlu1 %2730 }
 0xfde   :  { %4669 = vrcp.f32 %v2731_v1 }
 0xfe1   :  { %v2888_v4 = vpop.permute.xlu1 %2887 }
 0xfeb   :  { %v4670_v2 = vpop.eup %4669 }
 0xfec   :  { %v2733_v3 = vmul.f32 %v4670_v2, %v4668_v53 }
 0xfee   :  { %4370 = vmatmul.mubr.msk.f32.vlgmr.msra.gmra.mxu0 %vm2009_vm5, %v2733_v3 }
 0xfef   :  { %4380 = vmatpush3.xpose.msk.msra.mxu0 %vm1920_vm3, %v2890_v0  ;;  %4381 = vmatprep.mubr.msk.f32.mxu0 %vm4776_vm1, %v7076_v43  ;;  %v3538_v0 = vld [vmem:[%s6797_s6 + $0x68] sm:$0xff] }
 0xff0   :  { %4389 = vmatprep.subr.mxu0 %v7076_v43 }
 0xff2   :  { %4382 = vmatmul.mubr.msk.f32.vlgmr.msra.gmra.mxu0 %vm1920_vm3, %v2888_v4 }
 0xff3   :  { %4393 = vmatprep.mubr.msk.f32.mxu0 %vm4776_vm1, %v7076_v43  ;;  %4390 = vmatpush3.msra.mxu0 %v3054_v54  ;;  %v3780_v54 = vld [vmem:[%s6797_s6 + $0x78] sm:$0xff] }
 0xff4   :  { %4391 = vmatprep.subr.mxu0 %v7076_v43 }
 0xff5   :  { %4392 = vmatpush3.msra.mxu0 %v3053_v22  ;;  %v3779_v22 = vld [vmem:[%s6797_s6 + $0x70] sm:$0xff] }
 0xff6   :  { %4401 = vmatprep.subr.mxu0 %v7076_v43 }
0x10ae   :  { %v2807_v5 = vpop.f32.mrf.mxu0 }
0x10af   :  { %4377 = vmatmul.mubr.msk.f32.vlgmr.msra.gmra.mxu1 %vm1920_vm3, %v2807_v5 }
0x10b0   :  { %4385 = vmatpush3.msk.msra.mxu1 %vm2013_vm2, %v2977_v6  ;;  %v4371_v7 = vpop.f32.mrf.mxu0  ;;  %4386 = vmatprep.mubr.msk.f32.mxu1 %vm4776_vm1, %v7076_v43 }
0x10b1   :  { %4396 = vmatprep.subr.mxu1 %v7076_v43 }
0x10b2   :  { %v2961_v13 = vpop.f32.mrf.mxu0 }
0x10b3   :  { %v2965_v19 = vsel %vm1997_vm4, %v2961_v13, -inf }
0x10b4   :  { %2966 = vmax.xlane.f32.xlu1 %v2965_v19  ;;  %v4383_v33 = vpop.f32.mrf.mxu0 }
0x10c5   :  { %3218 = vrot.lane.b32.xlu1 %v6413_v40, %s4781_s4 }
0x10c9   :  { %3373 = vrot.lane.b32.xlu1 %v6415_v46, %s4782_s18 }
0x113d   :  { %v2967_v24 = vpop.xlane.xlu1 %2966 }
0x113e   :  { %v2968_v35 = vsub.f32 %v2961_v13, %v2967_v24 }
0x1140   :  { %v2969_v9 = vmul.f32 1.442695, %v2968_v35 }
0x1141   :  { %v3219_v14 = vpop.permute.xlu1 %3218 }
0x1142   :  { %4671 = vpow2.f32 %v2969_v9 }
0x1145   :  { %v3374_v39 = vpop.permute.xlu1 %3373 }
0x114f   :  { %v4672_v15 = vpop.eup %4671 }
0x1150   :  { %v2971_v34 = vsel %vm1997_vm4, %v4672_v15, 0.0 }
0x1151   :  { %2972 = vadd.xlane.f32.xlu0 %v2971_v34 }
0x1167   :  { %3131 = vrot.lane.b32.xlu0 %v6415_v46, %s4781_s4 }
0x116b   :  { %3129 = vrot.lane.b32.xlu0 %v6424_v47, %s4781_s4 }
0x116f   :  { %v2882_v57 = vpop.f32.mrf.mxu1 }
0x1170   :  { %v2886_v45 = vadd.f32 %v2882_v57, %v2644_v62 }
0x1171   :  { %v4378_v26 = vpop.f32.mrf.mxu1 }
0x11da   :  { %v2973_v12 = vpop.xlane.xlu0 %2972 }
0x11db   :  { %4673 = vrcp.f32 %v2973_v12 }
0x11de   :  { %v3132_v8 = vpop.permute.xlu0 %3131 }
0x11e2   :  { %v3130_v11 = vpop.permute.xlu0 %3129 }
0x11e8   :  { %v4674_v21 = vpop.eup %4673 }
0x11e9   :  { %v2975_v56 = vmul.f32 %v4674_v21, %v4672_v15 }
0x11eb   :  { %4387 = vmatmul.mubr.msk.f32.vlgmr.msra.gmra.mxu1 %vm2009_vm5, %v2975_v56 }
0x11ec   :  { %4397 = vmatpush3.xpose.msk.msra.mxu1 %vm1920_vm3, %v3132_v8  ;;  %4398 = vmatprep.mubr.msk.f32.mxu1 %vm4776_vm1, %v7076_v43 }
0x11ed   :  { %4406 = vmatprep.subr.mxu1 %v7076_v43 }
0x11ef   :  { %4399 = vmatmul.mubr.msk.f32.vlgmr.msra.gmra.mxu1 %vm1920_vm3, %v3130_v11 }
0x11f0   :  { %4410 = vmatprep.mubr.msk.f32.mxu1 %vm4776_vm1, %v7076_v43  ;;  %4407 = vmatpush3.msra.mxu1 %v3296_v17 }
0x11f1   :  { %4408 = vmatprep.subr.mxu1 %v7076_v43 }
0x11f2   :  { %4409 = vmatpush3.msra.mxu1 %v3295_v36 }
0x11f3   :  { %4418 = vmatprep.subr.mxu1 %v7076_v43 }
0x12ab   :  { %v3049_v31 = vpop.f32.mrf.mxu1 }
0x12ac   :  { %4394 = vmatmul.mubr.msk.f32.vlgmr.msra.gmra.mxu0 %vm1920_vm3, %v3049_v31 }
0x12ad   :  { %4402 = vmatpush3.msk.msra.mxu0 %vm2013_vm2, %v3219_v14  ;;  %v4388_v23 = vpop.f32.mrf.mxu1  ;;  %4403 = vmatprep.mubr.msk.f32.mxu0 %vm4776_vm1, %v7076_v43 }
0x12ae   :  { %4413 = vmatprep.subr.mxu0 %v7076_v43  ;;  %v4164_v23 = vld [vmem:[%s6798_s7] ss:$0 sm:$0xff] }
0x12af   :  { %v3203_v30 = vpop.f32.mrf.mxu1 }
0x12b0   :  { %v3207_v27 = vsel %vm1997_vm4, %v3203_v30, -inf }
0x12b1   :  { %3208 = vmax.xlane.f32.xlu0 %v3207_v27  ;;  %v4400_v10 = vpop.f32.mrf.mxu1 }
0x12c7   :  { %3460 = vrot.lane.b32.xlu0 %v6413_v40, %s4782_s18 }
0x133a   :  { %v3209_v25 = vpop.xlane.xlu0 %3208 }
0x133b   :  { %v3210_v32 = vsub.f32 %v3203_v30, %v3209_v25 }
0x133d   :  { %v3211_v20 = vmul.f32 1.442695, %v3210_v32 }
0x133e   :  { %v3461_v50 = vpop.permute.xlu0 %3460 }
0x133f   :  { %4675 = vpow2.f32 %v3211_v20  ;;  %v3909_v20 = vld [vmem:[%s6801_s10 + $0x78] sm:$0xff] }
0x134c   :  { %v4676_v29 = vpop.eup %4675 }
0x134d   :  { %v3213_v28 = vsel %vm1997_vm4, %v4676_v29, 0.0 }
0x134e   :  { %3214 = vadd.xlane.f32.xlu1 %v3213_v28  ;;  %v3907_v28 = vld [vmem:[%s6801_s10 + $0x68] sm:$0xff] }
0x135f   :  { %3371 = vrot.lane.b32.xlu1 %v6424_v47, %s4782_s18 }
0x136c   :  { %v3124_v16 = vpop.f32.mrf.mxu0 }
0x136d   :  { %v3128_v37 = vadd.f32 %v3124_v16, %v2886_v45 }
0x136e   :  { %v4395_v38 = vpop.f32.mrf.mxu0 }
0x13d7   :  { %v3215_v41 = vpop.xlane.xlu1 %3214 }
0x13d8   :  { %4677 = vrcp.f32 %v3215_v41  ;;  %v3904_v41 = vld [vmem:[%s6801_s10 + $0x50] sm:$0xff] }
0x13db   :  { %v3372_v48 = vpop.permute.xlu1 %3371 }
0x13e5   :  { %v4678_v42 = vpop.eup %4677 }
0x13e6   :  { %v3217_v44 = vmul.f32 %v4678_v42, %v4676_v29  ;;  %v3908_v29 = vld [vmem:[%s6801_s10 + $0x70] sm:$0xff]  ;;  %v3903_v42 = vld [vmem:[%s6801_s10 + $0x48] sm:$0xff] }
0x13e8   :  { %4404 = vmatmul.mubr.msk.f32.vlgmr.msra.gmra.mxu0 %vm2009_vm5, %v3217_v44  ;;  %v3902_v44 = vld [vmem:[%s6801_s10 + $0x40] sm:$0xff] }
0x13e9   :  { %4414 = vmatpush3.xpose.msk.msra.mxu0 %vm1920_vm3, %v3374_v39  ;;  %4415 = vmatprep.mubr.msk.f32.mxu0 %vm4776_vm1, %v7076_v43  ;;  %v3905_v39 = vld [vmem:[%s6801_s10 + $0x58] sm:$0xff] }
0x13ea   :  { %4423 = vmatprep.subr.mxu0 %v7076_v43 }
0x13ec   :  { %4416 = vmatmul.mubr.msk.f32.vlgmr.msra.gmra.mxu0 %vm1920_vm3, %v3372_v48  ;;  %v3901_v48 = vld [vmem:[%s6801_s10 + $0x38] sm:$0xff] }
0x13ed   :  { %4427 = vmatprep.mubr.msk.f32.mxu0 %vm4776_vm1, %v7076_v43  ;;  %4424 = vmatpush3.msra.mxu0 %v3538_v0  ;;  %v3998_v0 = vld [vmem:[%s6803_s12 + $0x50] sm:$0xff] }
0x13ee   :  { %4425 = vmatprep.subr.mxu0 %v7076_v43 }
0x14a8   :  { %v3291_v49 = vpop.f32.mrf.mxu0 }
0x14a9   :  { %4411 = vmatmul.mubr.msk.f32.vlgmr.msra.gmra.mxu1 %vm1920_vm3, %v3291_v49  ;;  %v3900_v49 = vld [vmem:[%s6801_s10 + $0x30] sm:$0xff] }
0x14aa   :  { %4419 = vmatpush3.msk.msra.mxu1 %vm2013_vm2, %v3461_v50  ;;  %v4405_v51 = vpop.f32.mrf.mxu0  ;;  %4420 = vmatprep.mubr.msk.f32.mxu1 %vm4776_vm1, %v7076_v43  ;;  %v3899_v50 = vld [vmem:[%s6801_s10 + $0x28] sm:$0xff] }
0x14ab   :  { %4430 = vmatprep.subr.mxu1 %v7076_v43  ;;  %v3898_v51 = vld [vmem:[%s6801_s10 + $0x20] sm:$0xff] }
0x14ac   :  { %v3445_v52 = vpop.f32.mrf.mxu0 }
0x14ad   :  { %v3449_v53 = vsel %vm1997_vm4, %v3445_v52, -inf }
0x14ae   :  { %3450 = vmax.xlane.f32.xlu1 %v3449_v53  ;;  %v4417_v55 = vpop.f32.mrf.mxu0  ;;  %v3896_v53 = vld [vmem:[%s6801_s10 + $0x10] sm:$0xff] }
0x14af   :  { %v3895_v55 = vld [vmem:[%s6801_s10 + $0x8] sm:$0xff] }
0x1537   :  { %v3451_v58 = vpop.xlane.xlu1 %3450 }
0x1538   :  { %v3452_v59 = vsub.f32 %v3445_v52, %v3451_v58  ;;  %v3897_v52 = vld [vmem:[%s6801_s10 + $0x18] sm:$0xff]  ;;  %v3894_v58 = vld [vmem:[%s6801_s10] sm:$0xff] }
0x153a   :  { %v3453_v60 = vmul.f32 1.442695, %v3452_v59  ;;  %v4003_v59 = vld [vmem:[%s6803_s12 + $0x78] sm:$0xff] }
0x153c   :  { %4679 = vpow2.f32 %v3453_v60  ;;  %v4002_v60 = vld [vmem:[%s6803_s12 + $0x70] sm:$0xff] }
0x1549   :  { %v4680_v61 = vpop.eup %4679 }
0x154a   :  { %v3455_v62 = vsel %vm1997_vm4, %v4680_v61, 0.0 }
0x154b   :  { %3456 = vadd.xlane.f32.xlu0 %v3455_v62  ;;  %v4000_v62 = vld [vmem:[%s6803_s12 + $0x60] sm:$0xff] }
0x1561   :  { %3615 = vrot.lane.b32.xlu0 %v6415_v46, %s4783_s23 }
0x1565   :  { %3613 = vrot.lane.b32.xlu0 %v6424_v47, %s4783_s23  ;;  %v3537_v47 = vld [vmem:[%s6797_s6 + $0x60] sm:$0xff] }
0x1566   :  { %4426 = vmatpush3.msra.mxu0 %v3537_v47 }
0x1567   :  { %4435 = vmatprep.subr.mxu0 %v7076_v43 }
0x1569   :  { %v3366_v63 = vpop.f32.mrf.mxu1 }
0x156a   :  { %v3370_v1 = vadd.f32 %v3366_v63, %v3128_v37  ;;  %v3999_v63 = vld [vmem:[%s6803_s12 + $0x58] sm:$0xff] }
0x156b   :  { %v4412_v2 = vpop.f32.mrf.mxu1 }
0x156c   :  { %v3996_v2 = vld [vmem:[%s6803_s12 + $0x40] sm:$0xff] }
0x15d4   :  { %v3457_v3 = vpop.xlane.xlu0 %3456 }
0x15d5   :  { %4681 = vrcp.f32 %v3457_v3  ;;  %v3995_v3 = vld [vmem:[%s6803_s12 + $0x38] sm:$0xff] }
0x15d8   :  { %v3616_v5 = vpop.permute.xlu0 %3615 }
0x15dc   :  { %v3614_v46 = vpop.permute.xlu0 %3613 }
0x15e2   :  { %v4682_v4 = vpop.eup %4681 }
0x15e3   :  { %v3459_v6 = vmul.f32 %v4682_v4, %v4680_v61  ;;  %v4001_v61 = vld [vmem:[%s6803_s12 + $0x68] sm:$0xff]  ;;  %v3994_v4 = vld [vmem:[%s6803_s12 + $0x30] sm:$0xff] }
0x15e5   :  { %4421 = vmatmul.mubr.msk.f32.vlgmr.msra.gmra.mxu1 %vm2009_vm5, %v3459_v6  ;;  %v3992_v6 = vld [vmem:[%s6803_s12 + $0x20] sm:$0xff] }
0x15e6   :  { %4431 = vmatpush3.xpose.msk.msra.mxu1 %vm1920_vm3, %v3616_v5  ;;  %4432 = vmatprep.mubr.msk.f32.mxu1 %vm4776_vm1, %v7076_v43  ;;  %v3993_v5 = vld [vmem:[%s6803_s12 + $0x28] sm:$0xff] }
0x15e7   :  { %4440 = vmatprep.subr.mxu1 %v7076_v43 }
0x15e9   :  { %4433 = vmatmul.mubr.msk.f32.vlgmr.msra.gmra.mxu1 %vm1920_vm3, %v3614_v46  ;;  %v3991_v46 = vld [vmem:[%s6803_s12 + $0x18] sm:$0xff] }
0x15ea   :  { %4444 = vmatprep.mubr.msk.f32.mxu1 %vm4776_vm1, %v7076_v43  ;;  %4441 = vmatpush3.msra.mxu1 %v3780_v54  ;;  %v3988_v54 = vld [vmem:[%s6803_s12] sm:$0xff] }
0x15eb   :  { %4442 = vmatprep.subr.mxu1 %v7076_v43 }
0x15ec   :  { %4443 = vmatpush3.msra.mxu1 %v3779_v22  ;;  %v4167_v22 = vld [vmem:[%s6802_s11] ss:$0 sm:$0xff] }
0x15ed   :  { %4482 = vmatprep.subr.mxu1 %v7076_v43 }
0x16a5   :  { %v3533_v7 = vpop.f32.mrf.mxu1 }
0x16a6   :  { %4428 = vmatmul.mubr.msk.f32.vlgmr.msra.gmra.mxu0 %vm1920_vm3, %v3533_v7 }
0x16a7   :  { %v4422_v13 = vpop.f32.mrf.mxu1  ;;  %4437 = vmatprep.mubr.msk.f32.mxu0 %vm4776_vm1, %v7076_v43 }
0x16a9   :  { %v3687_v19 = vpop.f32.mrf.mxu1 }
0x16aa   :  { %v3691_v33 = vsel %vm1997_vm4, %v3687_v19, -inf }
0x16ab   :  { %3692 = vmax.xlane.f32.xlu0 %v3691_v33  ;;  %v4434_v24 = vpop.f32.mrf.mxu1  ;;  %v4165_v33 = vld [vmem:[%s6799_s8] ss:$0 sm:$0xff] }
0x1734   :  { %v3693_v35 = vpop.xlane.xlu0 %3692 }
0x1735   :  { %v3694_v9 = vsub.f32 %v3687_v19, %v3693_v35  ;;  %v4166_v35 = vld [vmem:[%s6800_s9] ss:$0 sm:$0xff] }
0x1737   :  { %v3695_v15 = vmul.f32 1.442695, %v3694_v9 }
0x1739   :  { %4683 = vpow2.f32 %v3695_v15 }
0x1746   :  { %v4684_v34 = vpop.eup %4683 }
0x1747   :  { %v3697_v57 = vsel %vm1997_vm4, %v4684_v34, 0.0 }
0x1748   :  { %3698 = vadd.xlane.f32.xlu1 %v3697_v57  ;;  %v3989_v57 = vld [vmem:[%s6803_s12 + $0x8] sm:$0xff] }
0x1759   :  { %3702 = vrot.lane.b32.xlu1 %v6413_v40, %s4783_s23 }
0x1766   :  { %v3608_v45 = vpop.f32.mrf.mxu0 }
0x1767   :  { %v3612_v26 = vadd.f32 %v3608_v45, %v3370_v1  ;;  %v3997_v1 = vld [vmem:[%s6803_s12 + $0x48] sm:$0xff] }
0x1768   :  { %v4429_v12 = vpop.f32.mrf.mxu0 }
0x17d1   :  { %v3699_v21 = vpop.xlane.xlu1 %3698 }
0x17d2   :  { %4685 = vrcp.f32 %v3699_v21 }
0x17d5   :  { %v3703_v40 = vpop.permute.xlu1 %3702 }
0x17d6   :  { %4436 = vmatpush3.msk.msra.mxu0 %vm2013_vm2, %v3703_v40  ;;  %v4168_v40 = vld [vmem:[%s6804_s13] ss:$0 sm:$0xff] }
0x17d7   :  { %4447 = vmatprep.subr.mxu0 %v7076_v43 }
0x17df   :  { %v4686_v8 = vpop.eup %4685 }
0x17e0   :  { %v3701_v56 = vmul.f32 %v4686_v8, %v4684_v34  ;;  %v3990_v34 = vld [vmem:[%s6803_s12 + $0x10] sm:$0xff]  ;;  %s4753_s12 = scalar_lea.vmem %s4089_s30, 32 }
0x17e1   :  { %p4754_p0 = scmp.ne.s32.totalorder %s4089_s30, %s4753_s12  ;;  %p4759_p2 = scmp.lt.s32.totalorder %s4753_s12, %s4753_s12 }
0x17e2   :  { %4438 = vmatmul.mubr.msk.f32.vlgmr.msra.gmra.mxu0 %vm2009_vm5, %v3701_v56 }
0x17e3   :  { %4479 = vmatprep.mubr.msk.f32.mxu0 %vm4776_vm1, %v7076_v43  ;;  %4448 = vmatpush3.msra.mxu0 %v3909_v20  ;;  %p4760_p3 = por %p4759_p2, %p4758_p1 }
0x17e4   :  { %4449 = vmatprep.subr.mxu0 %v7076_v43 }
0x17e5   :  { %4450 = vmatpush3.msra.mxu0 %v3908_v29  ;;  %p4761_p4 = pnand %p4760_p3, %p4754_p0 }
0x17e6   :  { %4451 = vmatprep.subr.mxu0 %v7076_v43 }
0x17e7   :  { %4452 = vmatpush3.msra.mxu0 %v3907_v28 }
0x17e8   :  { %4453 = vmatprep.subr.mxu0 %v7076_v43 }
0x18a2   :  { %v3775_v11 = vpop.f32.mrf.mxu0 }
0x18a3   :  { %4445 = vmatmul.mubr.msk.f32.vlgmr.msra.gmra.mxu1 %vm1920_vm3, %v3775_v11 }
0x18a4   :  { %v4439_v31 = vpop.f32.mrf.mxu0  ;;  %4514 = vmatprep.mubr.msk.f32.mxu1 %vm4776_vm1, %v7076_v43  ;;  %4483 = vmatpush3.msra.mxu1 %v4003_v59 }
0x18a5   :  { %4484 = vmatprep.subr.mxu1 %v7076_v43 }
0x18a6   :  { %4485 = vmatpush3.msra.mxu1 %v4002_v60 }
0x18a7   :  { %4486 = vmatprep.subr.mxu1 %v7076_v43 }
0x18a8   :  { %4487 = vmatpush3.msra.mxu1 %v4001_v61 }
0x18a9   :  { %4488 = vmatprep.subr.mxu1 %v7076_v43 }
0x18aa   :  { %4489 = vmatpush3.msra.mxu1 %v4000_v62 }
0x18ab   :  { %4490 = vmatprep.subr.mxu1 %v7076_v43 }
0x18ac   :  { %4491 = vmatpush3.msra.mxu1 %v3999_v63 }
0x18ad   :  { %4492 = vmatprep.subr.mxu1 %v7076_v43 }
0x18ae   :  { %4493 = vmatpush3.msra.mxu1 %v3998_v0 }
0x18af   :  { %4494 = vmatprep.subr.mxu1 %v7076_v43 }
0x18b0   :  { %4495 = vmatpush3.msra.mxu1 %v3997_v1 }
0x18b1   :  { %4496 = vmatprep.subr.mxu1 %v7076_v43 }
0x18b2   :  { %4497 = vmatpush3.msra.mxu1 %v3996_v2 }
0x18b3   :  { %4498 = vmatprep.subr.mxu1 %v7076_v43 }
0x18b4   :  { %4499 = vmatpush3.msra.mxu1 %v3995_v3 }
0x18b5   :  { %4500 = vmatprep.subr.mxu1 %v7076_v43 }
0x18b6   :  { %4501 = vmatpush3.msra.mxu1 %v3994_v4 }
0x18b7   :  { %4502 = vmatprep.subr.mxu1 %v7076_v43 }
0x18b8   :  { %4503 = vmatpush3.msra.mxu1 %v3993_v5 }
0x18b9   :  { %4504 = vmatprep.subr.mxu1 %v7076_v43 }
0x18ba   :  { %4505 = vmatpush3.msra.mxu1 %v3992_v6 }
0x18bb   :  { %4506 = vmatprep.subr.mxu1 %v7076_v43 }
0x18bc   :  { %4507 = vmatpush3.msra.mxu1 %v3991_v46 }
0x18bd   :  { %4508 = vmatprep.subr.mxu1 %v7076_v43 }
0x18be   :  { %4509 = vmatpush3.msra.mxu1 %v3990_v34 }
0x18bf   :  { %4510 = vmatprep.subr.mxu1 %v7076_v43 }
0x18c0   :  { %4511 = vmatpush3.msra.mxu1 %v3989_v57 }
0x18c1   :  { %4512 = vmatprep.subr.mxu1 %v7076_v43 }
0x18c2   :  { %4513 = vmatpush3.msra.mxu1 %v3988_v54 }
0x1963   :  { %v3850_v14 = vpop.f32.mrf.mxu1 }
0x1964   :  { %v3854_v30 = vadd.f32 %v3850_v14, %v3612_v26 }
0x1965   :  { %v4446_v27 = vpop.f32.mrf.mxu1 }
0x1966   :  { %v3862_v10 = vadd.f32 %v4164_v23, %v3854_v30 }
0x1968   :  { %v3863_v25 = vadd.f32 %v3862_v10, %v6396_v18  ;;  %v3906_v18 = vld [vmem:[%s6801_s10 + $0x60] sm:$0xff] }
0x1969   :  { %4454 = vmatpush3.msra.mxu0 %v3906_v18 }
0x196a   :  { %v3864_v32 = vsel %vm2013_vm2, %v3863_v25, 0.0  ;;  %4455 = vmatprep.subr.mxu0 %v7076_v43 }
0x196b   :  { %3865 = vadd.xlane.f32.xlu1 %v3864_v32  ;;  %4456 = vmatpush3.msra.mxu0 %v3905_v39 }
0x196c   :  { %4457 = vmatprep.subr.mxu0 %v7076_v43 }
0x196d   :  { %4458 = vmatpush3.msra.mxu0 %v3904_v41 }
0x196e   :  { %4459 = vmatprep.subr.mxu0 %v7076_v43 }
0x196f   :  { %4460 = vmatpush3.msra.mxu0 %v3903_v42 }
0x1970   :  { %4461 = vmatprep.subr.mxu0 %v7076_v43 }
0x1971   :  { %4462 = vmatpush3.msra.mxu0 %v3902_v44 }
0x1972   :  { %4463 = vmatprep.subr.mxu0 %v7076_v43 }
0x1973   :  { %4464 = vmatpush3.msra.mxu0 %v3901_v48 }
0x1974   :  { %4465 = vmatprep.subr.mxu0 %v7076_v43 }
0x1975   :  { %4466 = vmatpush3.msra.mxu0 %v3900_v49 }
0x1976   :  { %4467 = vmatprep.subr.mxu0 %v7076_v43 }
0x1977   :  { %4468 = vmatpush3.msra.mxu0 %v3899_v50 }
0x1978   :  { %4469 = vmatprep.subr.mxu0 %v7076_v43 }
0x1979   :  { %4470 = vmatpush3.msra.mxu0 %v3898_v51 }
0x197a   :  { %4471 = vmatprep.subr.mxu0 %v7076_v43 }
0x197b   :  { %4472 = vmatpush3.msra.mxu0 %v3897_v52 }
0x197c   :  { %4473 = vmatprep.subr.mxu0 %v7076_v43 }
0x197d   :  { %4474 = vmatpush3.msra.mxu0 %v3896_v53 }
0x197e   :  { %4475 = vmatprep.subr.mxu0 %v7076_v43 }
0x197f   :  { %4476 = vmatpush3.msra.mxu0 %v3895_v55 }
0x1980   :  { %4477 = vmatprep.subr.mxu0 %v7076_v43 }
0x1981   :  { %4478 = vmatpush3.msra.mxu0 %v3894_v58 }
0x19f4   :  { %v3866_v16 = vpop.xlane.xlu1 %3865 }
0x19f5   :  { %v3868_v17 = vmul.f32 0.0078125, %v3866_v16 }
0x19f7   :  { %v6660_v36 = vsub.f32 %v3863_v25, %v3868_v17 }
0x19f9   :  { %v3870_v37 = vmul.f32 %v6660_v36, %v6660_v36 }
0x19fb   :  { %v3871_v38 = vsel %vm2013_vm2, %v3870_v37, 0.0 }
0x19fc   :  { %3872 = vadd.xlane.f32.xlu0 %v3871_v38 }
0x1a85   :  { %v3873_v47 = vpop.xlane.xlu0 %3872 }
0x1a86   :  { %v3874_v7 = vmul.f32 0.0078125, %v3873_v47 }
0x1a88   :  { %v3875_v13 = vadd.f32 1e-05, %v3874_v7 }
0x1a8a   :  { %4687 = vrsqrt.f32 %v3875_v13 }
0x1a97   :  { %v4688_v19 = vpop.eup %4687 }
0x1a98   :  { %v3877_v24 = vmul.f32 %v4688_v19, %v6660_v36 }
0x1a9a   :  { %v3885_v9 = vmul.f32 %v4165_v33, %v3877_v24 }
0x1a9c   :  { %v3893_v15 = vadd.f32 %v4166_v35, %v3885_v9 }
0x1a9e   :  { %4480 = vmatmul.mubr.f32.vlgmr.msra.gmra.mxu0 %v3893_v15 }
0x1b5e   :  { %v3983_v45 = vpop.f32.mrf.mxu0 }
0x1b5f   :  { %v3984_v26 = vadd.f32 %v4167_v22, %v3983_v45 }
0x1b60   :  { %v4481_v12 = vpop.f32.mrf.mxu0 }
0x1b61   :  { %v3987_v21 = vmax.f32 %v3984_v26, 0.0 }
0x1b63   :  { %4515 = vmatmul.mubr.f32.vlgmr.msra.gmra.mxu1 %v3987_v21 }
0x1c23   :  { %v4077_v8 = vpop.f32.mrf.mxu1 }
0x1c24   :  { %v4078_v56 = vadd.f32 %v4168_v40, %v4077_v8 }
0x1c25   :  { %v4516_v43 = vpop.f32.mrf.mxu1 }
0x1c26   :  { %4081 = vst [vmem:[#allocation2] sm:$0x3] %v4078_v56 }
0x1c27   :  { %4764 = shalt.err (!%p4761_p4)
}
0x1c28   :  { %4091 = dma.vmem_to_hbm [thread:$0]  %s4089_s30, 32, %s6805_s14, [#allocation3]  }
0x1c29   :  { %4773 = dma.done.wait [#allocation3], 32  }
0x1c2a   :  { %4774 = vsyncadd [#allocation3], 4294967264 }
0x1c2b   :  { %4095 = vsyncpa [#allocation3], 1 }

</bundles_post_ra>
